<compile_context>
chip_gen: v6e
topology: v6e:2x2x1
jax: 0.10.0
libtpu: 0.0.40
codegen_flags: <defaults>
</compile_context>

<pallas_src>
import functools

import jax
import jax.numpy as jnp
from jax.experimental import pallas as pl
from jax.experimental.pallas import tpu as pltpu

H = 128          # hidden size
D_IN = 20        # model input features
D_PAD = 128      # layer-0 input features padded to one full lane tile
FC_OUT = 2
SUBLANES = 8     # f32 sublane count -> batch padding target


def _lstm_cell(gates, c_prev):
    """gates: (B, 4H) f32 pre-activations in torch order (i, f, g, o) -> (h, c)."""
    i = jax.nn.sigmoid(gates[:, 0 * H:1 * H])
    f = jax.nn.sigmoid(gates[:, 1 * H:2 * H])
    g = jnp.tanh(gates[:, 2 * H:3 * H])
    o = jax.nn.sigmoid(gates[:, 3 * H:4 * H])
    c = f * c_prev + i * g
    h = o * jnp.tanh(c)
    return h, c


# -----------------------------------------------------------------------------
# The whole model in one kernel.
#   x_ref        : (T*BP, D_PAD)  bf16   time-major, batch padded to BP
#   wih*_ref     : (d_in, 4H)     bf16   input->gate weights (transposed, padded)
#   whh*_ref     : (H, 4H)        bf16   recurrent weights (transposed)
#   b*_ref       : (1, 4H)        f32    bias_ih + bias_hh
#   fcw_ref/fcb  : (2H, 2)/(1, 2) f32
#   out_ref      : (BP, 2)        f32
#   scratch      : gx buffers + hidden-sequence buffer, all VMEM f32
# -----------------------------------------------------------------------------
def _ymodel_kernel(x_ref,
                   wih0f_ref, wih0b_ref, whh0f_ref, whh0b_ref, b0f_ref, b0b_ref,
                   wih1f_ref, wih1b_ref, whh1f_ref, b1f_ref, b1b_ref,
                   fcw_ref, fcb_ref,
                   out_ref,
                   gx0f_sc, gx0b_sc, h0_sc, gx1f_sc,
                   *, T, BP):
    x = x_ref[...]                                           # (T*BP, D_PAD) bf16

    # ---- Layer 0: hoisted input projections (one big MXU dot per direction) ----
    gx0f_sc[...] = (jnp.dot(x, wih0f_ref[...], preferred_element_type=jnp.float32)
                    + b0f_ref[...])
    gx0b_sc[...] = (jnp.dot(x, wih0b_ref[...], preferred_element_type=jnp.float32)
                    + b0b_ref[...])

    whh0f = whh0f_ref[...]
    whh0b = whh0b_ref[...]
    zeros = jnp.zeros((BP, H), jnp.float32)

    # ---- Layer 0: bidirectional recurrence, fwd/bwd chains interleaved ----
    h_f, c_f, h_b, c_b = zeros, zeros, zeros, zeros
    for s in range(T):                                       # T=8: static unroll
        rf = s * BP
        rb = (T - 1 - s) * BP
        g_f = gx0f_sc[pl.ds(rf, BP), :]
        g_b = gx0b_sc[pl.ds(rb, BP), :]
        if s > 0:                                            # h_prev == 0 at s == 0
            g_f = g_f + jnp.dot(h_f.astype(jnp.bfloat16), whh0f,
                                preferred_element_type=jnp.float32)
            g_b = g_b + jnp.dot(h_b.astype(jnp.bfloat16), whh0b,
                                preferred_element_type=jnp.float32)
        h_f, c_f = _lstm_cell(g_f, c_f)
        h_b, c_b = _lstm_cell(g_b, c_b)
        # concat(h_fwd, h_bwd) stored at the original time index (reverse-by-index).
        h0_sc[pl.ds(rf, BP), pl.ds(0, H)] = h_f
        h0_sc[pl.ds(rb, BP), pl.ds(H, H)] = h_b

    # ---- Layer 1: forward-direction input projection over the whole sequence ----
    h0_bf = h0_sc[...].astype(jnp.bfloat16)                  # (T*BP, 2H)
    gx1f_sc[...] = (jnp.dot(h0_bf, wih1f_ref[...], preferred_element_type=jnp.float32)
                    + b1f_ref[...])

    # ---- Layer 1 backward direction: only time T-1 is consumed and its initial
    #      state is zero, so one cell evaluation (no W_hh term) is exact. ----
    h0_last = h0_sc[pl.ds((T - 1) * BP, BP), :].astype(jnp.bfloat16)
    g1b = (jnp.dot(h0_last, wih1b_ref[...], preferred_element_type=jnp.float32)
           + b1b_ref[...])
    h1b, _ = _lstm_cell(g1b, zeros)

    # ---- Layer 1 forward recurrence (only the final hidden state is consumed) ----
    whh1f = whh1f_ref[...]
    h1, c1 = zeros, zeros
    for s in range(T):
        g = gx1f_sc[pl.ds(s * BP, BP), :]
        if s > 0:
            g = g + jnp.dot(h1.astype(jnp.bfloat16), whh1f,
                            preferred_element_type=jnp.float32)
        h1, c1 = _lstm_cell(g, c1)

    # ---- Fused FC on concat(h1_fwd[T-1], h1_bwd@T-1): one (BP,2H)@(2H,2) dot ----
    h1cat = jnp.concatenate([h1, h1b], axis=-1)              # (BP, 2H) f32
    out_ref[...] = (jnp.dot(h1cat, fcw_ref[...], preferred_element_type=jnp.float32)
                    + fcb_ref[...])


# -----------------------------------------------------------------------------
# One-time weight preparation (outside the jitted per-call path).
# -----------------------------------------------------------------------------
def prepare_params(params):
    def proj(w_ih, b_ih, b_hh, d_pad):
        w = w_ih.T.astype(jnp.float32)                       # (d_in, 4H)
        if w.shape[0] < d_pad:
            w = jnp.pad(w, ((0, d_pad - w.shape[0]), (0, 0)))
        return w.astype(jnp.bfloat16), (b_ih + b_hh).reshape(1, 4 * H).astype(jnp.float32)

    wih0f, whh0f, bih0f, bhh0f = params["l0_fwd"]
    wih0b, whh0b, bih0b, bhh0b = params["l0_bwd"]
    wih1f, whh1f, bih1f, bhh1f = params["l1_fwd"]
    wih1b, whh1b, bih1b, bhh1b = params["l1_bwd"]

    wih0f_p, b0f = proj(wih0f, bih0f, bhh0f, D_PAD)
    wih0b_p, b0b = proj(wih0b, bih0b, bhh0b, D_PAD)
    wih1f_p, b1f = proj(wih1f, bih1f, bhh1f, 2 * H)
    wih1b_p, b1b = proj(wih1b, bih1b, bhh1b, 2 * H)

    return dict(
        wih0f=wih0f_p, wih0b=wih0b_p,
        whh0f=whh0f.T.astype(jnp.bfloat16), whh0b=whh0b.T.astype(jnp.bfloat16),
        b0f=b0f, b0b=b0b,
        wih1f=wih1f_p, wih1b=wih1b_p,
        whh1f=whh1f.T.astype(jnp.bfloat16),
        # whh1b is mathematically unused (layer-1 backward @ t=T-1 starts from zero state).
        b1f=b1f, b1b=b1b,
        fcw=params["fc_w"].T.astype(jnp.float32),            # (2H, FC_OUT)
        fcb=params["fc_b"].reshape(1, FC_OUT).astype(jnp.float32),
    )


# -----------------------------------------------------------------------------
# Full forward pass (matches YModel.forward in eval mode)
# -----------------------------------------------------------------------------
def ymodel_forward(x_btd, prep):
    B, T, d_in = x_btd.shape
    bp = ((B + SUBLANES - 1) // SUBLANES) * SUBLANES         # pad batch to sublanes

    # Time-major, batch padded to bp, features zero-padded to a full lane tile.
    x_tm = jnp.transpose(x_btd, (1, 0, 2)).astype(jnp.float32)       # (T, B, D_IN)
    x_tm = jnp.pad(x_tm, ((0, 0), (0, bp - B), (0, D_PAD - d_in)))
    x_flat = x_tm.reshape(T * bp, D_PAD).astype(jnp.bfloat16)

    vmem = pl.BlockSpec(memory_space=pltpu.MemorySpace.VMEM)
    out = pl.pallas_call(
        functools.partial(_ymodel_kernel, T=T, BP=bp),
        out_shape=jax.ShapeDtypeStruct((bp, FC_OUT), jnp.float32),
        in_specs=[vmem] * 14,
        out_specs=vmem,
        scratch_shapes=[
            pltpu.VMEM((T * bp, 4 * H), jnp.float32),        # gx layer-0 fwd
            pltpu.VMEM((T * bp, 4 * H), jnp.float32),        # gx layer-0 bwd
            pltpu.VMEM((T * bp, 2 * H), jnp.float32),        # h0 sequence (fwd | bwd)
            pltpu.VMEM((T * bp, 4 * H), jnp.float32),        # gx layer-1 fwd
        ],
    )(x_flat,
      prep["wih0f"], prep["wih0b"], prep["whh0f"], prep["whh0b"], prep["b0f"], prep["b0b"],
      prep["wih1f"], prep["wih1b"], prep["whh1f"], prep["b1f"], prep["b1b"],
      prep["fcw"], prep["fcb"])
    return out[:B]


# -----------------------------------------------------------------------------
# Deterministic parameter init (same shapes / gate layout as torch.nn.LSTM)
# -----------------------------------------------------------------------------
def init_params(key):
    def uni(k, shape, bound):
        return jax.random.uniform(k, shape, jnp.float32, -bound, bound)

    params = {}
    bound = 1.0 / (H ** 0.5)
    k = key
    for layer, d_in in [(0, D_IN), (1, 2 * H)]:
        for tag in ("fwd", "bwd"):
            k, k1, k2, k3, k4 = jax.random.split(k, 5)
            params[f"l{layer}_{tag}"] = (
                uni(k1, (4 * H, d_in), bound),   # weight_ih
                uni(k2, (4 * H, H), bound),      # weight_hh
                uni(k3, (4 * H,), bound),        # bias_ih
                uni(k4, (4 * H,), bound),        # bias_hh
            )
    fc_bound = 1.0 / ((2 * H) ** 0.5)
    k, k1, k2 = jax.random.split(k, 3)
    params["fc_w"] = uni(k1, (FC_OUT, 2 * H), fc_bound)
    params["fc_b"] = uni(k2, (FC_OUT,), fc_bound)
    return params


if __name__ == "__main__":
    key = jax.random.PRNGKey(0)
    pkey, xkey = jax.random.split(key)

    B, T = 2, 8
    params = init_params(pkey)
    prep = prepare_params(params)            # one-time weight layout prep

    x = jax.random.normal(xkey, (B, T, D_IN), jnp.float32)

    fwd = jax.jit(ymodel_forward)
    out = jax.block_until_ready(fwd(x, prep))

    assert out.shape == (B, FC_OUT), out.shape
    assert out.dtype == jnp.float32
    assert bool(jnp.all(jnp.isfinite(out)))
    print("KERNEL_OK")
</pallas_src>

<mosaic_0001>
module attributes {stable_mosaic.version = 11 : i64} {
  func.func @_ymodel_kernel(%arg0: memref<64x128xbf16, #tpu.memory_space<vmem>>, %arg1: memref<128x512xbf16, #tpu.memory_space<vmem>>, %arg2: memref<128x512xbf16, #tpu.memory_space<vmem>>, %arg3: memref<128x512xbf16, #tpu.memory_space<vmem>>, %arg4: memref<128x512xbf16, #tpu.memory_space<vmem>>, %arg5: memref<1x512xf32, #tpu.memory_space<vmem>>, %arg6: memref<1x512xf32, #tpu.memory_space<vmem>>, %arg7: memref<256x512xbf16, #tpu.memory_space<vmem>>, %arg8: memref<256x512xbf16, #tpu.memory_space<vmem>>, %arg9: memref<128x512xbf16, #tpu.memory_space<vmem>>, %arg10: memref<1x512xf32, #tpu.memory_space<vmem>>, %arg11: memref<1x512xf32, #tpu.memory_space<vmem>>, %arg12: memref<256x2xf32, #tpu.memory_space<vmem>>, %arg13: memref<1x2xf32, #tpu.memory_space<vmem>>, %arg14: memref<8x2xf32, #tpu.memory_space<vmem>>, %arg15: memref<64x512xf32, #tpu.memory_space<vmem>>, %arg16: memref<64x512xf32, #tpu.memory_space<vmem>>, %arg17: memref<64x256xf32, #tpu.memory_space<vmem>>, %arg18: memref<64x512xf32, #tpu.memory_space<vmem>>) attributes {dimension_semantics = [], scalar_prefetch = 0 : i64, scratch_operands = 4 : i64, tpu.core_type = #tpu.core_type<tc>} {
    %c0 = arith.constant 0 : index
    %c0_0 = arith.constant 0 : index
    %0 = vector.load %arg0[%c0, %c0_0] : memref<64x128xbf16, #tpu.memory_space<vmem>>, vector<64x128xbf16>
    %c0_1 = arith.constant 0 : index
    %c0_2 = arith.constant 0 : index
    %1 = vector.load %arg1[%c0_1, %c0_2] : memref<128x512xbf16, #tpu.memory_space<vmem>>, vector<128x512xbf16>
    %cst = arith.constant dense<0.000000e+00> : vector<64x512xf32>
    %2 = tpu.matmul %0, %1, %cst {dimension_numbers = #tpu.dot_dimension_numbers<[1], [0], [0], [1], [0, 0, 1, 1], [], []>} : vector<64x128xbf16>, vector<128x512xbf16>, vector<64x512xf32> -> vector<64x512xf32>
    %c0_3 = arith.constant 0 : index
    %c0_4 = arith.constant 0 : index
    %3 = vector.load %arg5[%c0_3, %c0_4] : memref<1x512xf32, #tpu.memory_space<vmem>>, vector<1x512xf32>
    %4 = vector.broadcast %3 : vector<1x512xf32> to vector<64x512xf32>
    %5 = arith.addf %2, %4 : vector<64x512xf32>
    %c0_5 = arith.constant 0 : index
    %c0_6 = arith.constant 0 : index
    %6 = vector.load %arg15[%c0_5, %c0_6] : memref<64x512xf32, #tpu.memory_space<vmem>>, vector<64x512xf32>
    tpu.vector_store %arg15[%c0_5, %c0_6], %5 {strides = array<i32>} : memref<64x512xf32, #tpu.memory_space<vmem>>, vector<64x512xf32>,
    %c0_7 = arith.constant 0 : index
    %c0_8 = arith.constant 0 : index
    %7 = vector.load %arg2[%c0_7, %c0_8] : memref<128x512xbf16, #tpu.memory_space<vmem>>, vector<128x512xbf16>
    %cst_9 = arith.constant dense<0.000000e+00> : vector<64x512xf32>
    %8 = tpu.matmul %0, %7, %cst_9 {dimension_numbers = #tpu.dot_dimension_numbers<[1], [0], [0], [1], [0, 0, 1, 1], [], []>} : vector<64x128xbf16>, vector<128x512xbf16>, vector<64x512xf32> -> vector<64x512xf32>
    %c0_10 = arith.constant 0 : index
    %c0_11 = arith.constant 0 : index
    %9 = vector.load %arg6[%c0_10, %c0_11] : memref<1x512xf32, #tpu.memory_space<vmem>>, vector<1x512xf32>
    %10 = vector.broadcast %9 : vector<1x512xf32> to vector<64x512xf32>
    %11 = arith.addf %8, %10 : vector<64x512xf32>
    %c0_12 = arith.constant 0 : index
    %c0_13 = arith.constant 0 : index
    %12 = vector.load %arg16[%c0_12, %c0_13] : memref<64x512xf32, #tpu.memory_space<vmem>>, vector<64x512xf32>
    tpu.vector_store %arg16[%c0_12, %c0_13], %11 {strides = array<i32>} : memref<64x512xf32, #tpu.memory_space<vmem>>, vector<64x512xf32>,
    %c0_14 = arith.constant 0 : index
    %c0_15 = arith.constant 0 : index
    %13 = vector.load %arg3[%c0_14, %c0_15] : memref<128x512xbf16, #tpu.memory_space<vmem>>, vector<128x512xbf16>
    %c0_16 = arith.constant 0 : index
    %c0_17 = arith.constant 0 : index
    %14 = vector.load %arg4[%c0_16, %c0_17] : memref<128x512xbf16, #tpu.memory_space<vmem>>, vector<128x512xbf16>
    %cst_18 = arith.constant 0.000000e+00 : f32
    %15 = vector.broadcast %cst_18 : f32 to vector<8x128xf32>
    %c0_19 = arith.constant 0 : index
    %c0_20 = arith.constant 0 : index
    %16 = vector.load %arg15[%c0_19, %c0_20] : memref<64x512xf32, #tpu.memory_space<vmem>>, vector<8x512xf32>
    %c56 = arith.constant 56 : index
    %c0_21 = arith.constant 0 : index
    %17 = vector.load %arg16[%c56, %c0_21] : memref<64x512xf32, #tpu.memory_space<vmem>>, vector<8x512xf32>
    %18 = vector.extract_strided_slice %16 {offsets = [0, 0], sizes = [8, 128], strides = [1, 1]} : vector<8x512xf32> to vector<8x128xf32>
    %19 = arith.negf %18 : vector<8x128xf32>
    %20 = math.exp %19 : vector<8x128xf32>
    %cst_22 = arith.constant 1.000000e+00 : f32
    %21 = vector.broadcast %cst_22 : f32 to vector<8x128xf32>
    %22 = arith.addf %21, %20 : vector<8x128xf32>
    %23 = arith.divf %21, %22 : vector<8x128xf32>
    %24 = vector.extract_strided_slice %16 {offsets = [0, 128], sizes = [8, 128], strides = [1, 1]} : vector<8x512xf32> to vector<8x128xf32>
    %25 = arith.negf %24 : vector<8x128xf32>
    %26 = math.exp %25 : vector<8x128xf32>
    %cst_23 = arith.constant 1.000000e+00 : f32
    %27 = vector.broadcast %cst_23 : f32 to vector<8x128xf32>
    %28 = arith.addf %27, %26 : vector<8x128xf32>
    %29 = arith.divf %27, %28 : vector<8x128xf32>
    %30 = vector.extract_strided_slice %16 {offsets = [0, 256], sizes = [8, 128], strides = [1, 1]} : vector<8x512xf32> to vector<8x128xf32>
    %31 = math.tanh %30 : vector<8x128xf32>
    %32 = vector.extract_strided_slice %16 {offsets = [0, 384], sizes = [8, 128], strides = [1, 1]} : vector<8x512xf32> to vector<8x128xf32>
    %33 = arith.negf %32 : vector<8x128xf32>
    %34 = math.exp %33 : vector<8x128xf32>
    %cst_24 = arith.constant 1.000000e+00 : f32
    %35 = vector.broadcast %cst_24 : f32 to vector<8x128xf32>
    %36 = arith.addf %35, %34 : vector<8x128xf32>
    %37 = arith.divf %35, %36 : vector<8x128xf32>
    %38 = arith.mulf %29, %15 : vector<8x128xf32>
    %39 = arith.mulf %23, %31 : vector<8x128xf32>
    %40 = arith.addf %38, %39 : vector<8x128xf32>
    %41 = math.tanh %40 : vector<8x128xf32>
    %42 = arith.mulf %37, %41 : vector<8x128xf32>
    %43 = vector.extract_strided_slice %17 {offsets = [0, 0], sizes = [8, 128], strides = [1, 1]} : vector<8x512xf32> to vector<8x128xf32>
    %44 = arith.negf %43 : vector<8x128xf32>
    %45 = math.exp %44 : vector<8x128xf32>
    %cst_25 = arith.constant 1.000000e+00 : f32
    %46 = vector.broadcast %cst_25 : f32 to vector<8x128xf32>
    %47 = arith.addf %46, %45 : vector<8x128xf32>
    %48 = arith.divf %46, %47 : vector<8x128xf32>
    %49 = vector.extract_strided_slice %17 {offsets = [0, 128], sizes = [8, 128], strides = [1, 1]} : vector<8x512xf32> to vector<8x128xf32>
    %50 = arith.negf %49 : vector<8x128xf32>
    %51 = math.exp %50 : vector<8x128xf32>
    %cst_26 = arith.constant 1.000000e+00 : f32
    %52 = vector.broadcast %cst_26 : f32 to vector<8x128xf32>
    %53 = arith.addf %52, %51 : vector<8x128xf32>
    %54 = arith.divf %52, %53 : vector<8x128xf32>
    %55 = vector.extract_strided_slice %17 {offsets = [0, 256], sizes = [8, 128], strides = [1, 1]} : vector<8x512xf32> to vector<8x128xf32>
    %56 = math.tanh %55 : vector<8x128xf32>
    %57 = vector.extract_strided_slice %17 {offsets = [0, 384], sizes = [8, 128], strides = [1, 1]} : vector<8x512xf32> to vector<8x128xf32>
    %58 = arith.negf %57 : vector<8x128xf32>
    %59 = math.exp %58 : vector<8x128xf32>
    %cst_27 = arith.constant 1.000000e+00 : f32
    %60 = vector.broadcast %cst_27 : f32 to vector<8x128xf32>
    %61 = arith.addf %60, %59 : vector<8x128xf32>
    %62 = arith.divf %60, %61 : vector<8x128xf32>
    %63 = arith.mulf %54, %15 : vector<8x128xf32>
    %64 = arith.mulf %48, %56 : vector<8x128xf32>
    %65 = arith.addf %63, %64 : vector<8x128xf32>
    %66 = math.tanh %65 : vector<8x128xf32>
    %67 = arith.mulf %62, %66 : vector<8x128xf32>
    %c0_28 = arith.constant 0 : index
    %c0_29 = arith.constant 0 : index
    %68 = vector.load %arg17[%c0_28, %c0_29] : memref<64x256xf32, #tpu.memory_space<vmem>>, vector<8x128xf32>
    tpu.vector_store %arg17[%c0_28, %c0_29], %42 {strides = array<i32>} : memref<64x256xf32, #tpu.memory_space<vmem>>, vector<8x128xf32>,
    %c56_30 = arith.constant 56 : index
    %c128 = arith.constant 128 : index
    %69 = vector.load %arg17[%c56_30, %c128] : memref<64x256xf32, #tpu.memory_space<vmem>>, vector<8x128xf32>
    tpu.vector_store %arg17[%c56_30, %c128], %67 {strides = array<i32>} : memref<64x256xf32, #tpu.memory_space<vmem>>, vector<8x128xf32>,
    %c8 = arith.constant 8 : index
    %c0_31 = arith.constant 0 : index
    %70 = vector.load %arg15[%c8, %c0_31] : memref<64x512xf32, #tpu.memory_space<vmem>>, vector<8x512xf32>
    %c48 = arith.constant 48 : index
    %c0_32 = arith.constant 0 : index
    %71 = vector.load %arg16[%c48, %c0_32] : memref<64x512xf32, #tpu.memory_space<vmem>>, vector<8x512xf32>
    %72 = arith.truncf %42 : vector<8x128xf32> to vector<8x128xbf16>
    %cst_33 = arith.constant dense<0.000000e+00> : vector<8x512xf32>
    %73 = tpu.matmul %72, %13, %cst_33 {dimension_numbers = #tpu.dot_dimension_numbers<[1], [0], [0], [1], [0, 0, 1, 1], [], []>} : vector<8x128xbf16>, vector<128x512xbf16>, vector<8x512xf32> -> vector<8x512xf32>
    %74 = arith.addf %70, %73 : vector<8x512xf32>
    %75 = arith.truncf %67 : vector<8x128xf32> to vector<8x128xbf16>
    %cst_34 = arith.constant dense<0.000000e+00> : vector<8x512xf32>
    %76 = tpu.matmul %75, %14, %cst_34 {dimension_numbers = #tpu.dot_dimension_numbers<[1], [0], [0], [1], [0, 0, 1, 1], [], []>} : vector<8x128xbf16>, vector<128x512xbf16>, vector<8x512xf32> -> vector<8x512xf32>
    %77 = arith.addf %71, %76 : vector<8x512xf32>
    %78 = vector.extract_strided_slice %74 {offsets = [0, 0], sizes = [8, 128], strides = [1, 1]} : vector<8x512xf32> to vector<8x128xf32>
    %79 = arith.negf %78 : vector<8x128xf32>
    %80 = math.exp %79 : vector<8x128xf32>
    %cst_35 = arith.constant 1.000000e+00 : f32
    %81 = vector.broadcast %cst_35 : f32 to vector<8x128xf32>
    %82 = arith.addf %81, %80 : vector<8x128xf32>
    %83 = arith.divf %81, %82 : vector<8x128xf32>
    %84 = vector.extract_strided_slice %74 {offsets = [0, 128], sizes = [8, 128], strides = [1, 1]} : vector<8x512xf32> to vector<8x128xf32>
    %85 = arith.negf %84 : vector<8x128xf32>
    %86 = math.exp %85 : vector<8x128xf32>
    %cst_36 = arith.constant 1.000000e+00 : f32
    %87 = vector.broadcast %cst_36 : f32 to vector<8x128xf32>
    %88 = arith.addf %87, %86 : vector<8x128xf32>
    %89 = arith.divf %87, %88 : vector<8x128xf32>
    %90 = vector.extract_strided_slice %74 {offsets = [0, 256], sizes = [8, 128], strides = [1, 1]} : vector<8x512xf32> to vector<8x128xf32>
    %91 = math.tanh %90 : vector<8x128xf32>
    %92 = vector.extract_strided_slice %74 {offsets = [0, 384], sizes = [8, 128], strides = [1, 1]} : vector<8x512xf32> to vector<8x128xf32>
    %93 = arith.negf %92 : vector<8x128xf32>
    %94 = math.exp %93 : vector<8x128xf32>
    %cst_37 = arith.constant 1.000000e+00 : f32
    %95 = vector.broadcast %cst_37 : f32 to vector<8x128xf32>
    %96 = arith.addf %95, %94 : vector<8x128xf32>
    %97 = arith.divf %95, %96 : vector<8x128xf32>
    %98 = arith.mulf %89, %40 : vector<8x128xf32>
    %99 = arith.mulf %83, %91 : vector<8x128xf32>
    %100 = arith.addf %98, %99 : vector<8x128xf32>
    %101 = math.tanh %100 : vector<8x128xf32>
    %102 = arith.mulf %97, %101 : vector<8x128xf32>
    %103 = vector.extract_strided_slice %77 {offsets = [0, 0], sizes = [8, 128], strides = [1, 1]} : vector<8x512xf32> to vector<8x128xf32>
    %104 = arith.negf %103 : vector<8x128xf32>
    %105 = math.exp %104 : vector<8x128xf32>
    %cst_38 = arith.constant 1.000000e+00 : f32
    %106 = vector.broadcast %cst_38 : f32 to vector<8x128xf32>
    %107 = arith.addf %106, %105 : vector<8x128xf32>
    %108 = arith.divf %106, %107 : vector<8x128xf32>
    %109 = vector.extract_strided_slice %77 {offsets = [0, 128], sizes = [8, 128], strides = [1, 1]} : vector<8x512xf32> to vector<8x128xf32>
    %110 = arith.negf %109 : vector<8x128xf32>
    %111 = math.exp %110 : vector<8x128xf32>
    %cst_39 = arith.constant 1.000000e+00 : f32
    %112 = vector.broadcast %cst_39 : f32 to vector<8x128xf32>
    %113 = arith.addf %112, %111 : vector<8x128xf32>
    %114 = arith.divf %112, %113 : vector<8x128xf32>
    %115 = vector.extract_strided_slice %77 {offsets = [0, 256], sizes = [8, 128], strides = [1, 1]} : vector<8x512xf32> to vector<8x128xf32>
    %116 = math.tanh %115 : vector<8x128xf32>
    %117 = vector.extract_strided_slice %77 {offsets = [0, 384], sizes = [8, 128], strides = [1, 1]} : vector<8x512xf32> to vector<8x128xf32>
    %118 = arith.negf %117 : vector<8x128xf32>
    %119 = math.exp %118 : vector<8x128xf32>
    %cst_40 = arith.constant 1.000000e+00 : f32
    %120 = vector.broadcast %cst_40 : f32 to vector<8x128xf32>
    %121 = arith.addf %120, %119 : vector<8x128xf32>
    %122 = arith.divf %120, %121 : vector<8x128xf32>
    %123 = arith.mulf %114, %65 : vector<8x128xf32>
    %124 = arith.mulf %108, %116 : vector<8x128xf32>
    %125 = arith.addf %123, %124 : vector<8x128xf32>
    %126 = math.tanh %125 : vector<8x128xf32>
    %127 = arith.mulf %122, %126 : vector<8x128xf32>
    %c8_41 = arith.constant 8 : index
    %c0_42 = arith.constant 0 : index
    %128 = vector.load %arg17[%c8_41, %c0_42] : memref<64x256xf32, #tpu.memory_space<vmem>>, vector<8x128xf32>
    tpu.vector_store %arg17[%c8_41, %c0_42], %102 {strides = array<i32>} : memref<64x256xf32, #tpu.memory_space<vmem>>, vector<8x128xf32>,
    %c48_43 = arith.constant 48 : index
    %c128_44 = arith.constant 128 : index
    %129 = vector.load %arg17[%c48_43, %c128_44] : memref<64x256xf32, #tpu.memory_space<vmem>>, vector<8x128xf32>
    tpu.vector_store %arg17[%c48_43, %c128_44], %127 {strides = array<i32>} : memref<64x256xf32, #tpu.memory_space<vmem>>, vector<8x128xf32>,
    %c16 = arith.constant 16 : index
    %c0_45 = arith.constant 0 : index
    %130 = vector.load %arg15[%c16, %c0_45] : memref<64x512xf32, #tpu.memory_space<vmem>>, vector<8x512xf32>
    %c40 = arith.constant 40 : index
    %c0_46 = arith.constant 0 : index
    %131 = vector.load %arg16[%c40, %c0_46] : memref<64x512xf32, #tpu.memory_space<vmem>>, vector<8x512xf32>
    %132 = arith.truncf %102 : vector<8x128xf32> to vector<8x128xbf16>
    %cst_47 = arith.constant dense<0.000000e+00> : vector<8x512xf32>
    %133 = tpu.matmul %132, %13, %cst_47 {dimension_numbers = #tpu.dot_dimension_numbers<[1], [0], [0], [1], [0, 0, 1, 1], [], []>} : vector<8x128xbf16>, vector<128x512xbf16>, vector<8x512xf32> -> vector<8x512xf32>
    %134 = arith.addf %130, %133 : vector<8x512xf32>
    %135 = arith.truncf %127 : vector<8x128xf32> to vector<8x128xbf16>
    %cst_48 = arith.constant dense<0.000000e+00> : vector<8x512xf32>
    %136 = tpu.matmul %135, %14, %cst_48 {dimension_numbers = #tpu.dot_dimension_numbers<[1], [0], [0], [1], [0, 0, 1, 1], [], []>} : vector<8x128xbf16>, vector<128x512xbf16>, vector<8x512xf32> -> vector<8x512xf32>
    %137 = arith.addf %131, %136 : vector<8x512xf32>
    %138 = vector.extract_strided_slice %134 {offsets = [0, 0], sizes = [8, 128], strides = [1, 1]} : vector<8x512xf32> to vector<8x128xf32>
    %139 = arith.negf %138 : vector<8x128xf32>
    %140 = math.exp %139 : vector<8x128xf32>
    %cst_49 = arith.constant 1.000000e+00 : f32
    %141 = vector.broadcast %cst_49 : f32 to vector<8x128xf32>
    %142 = arith.addf %141, %140 : vector<8x128xf32>
    %143 = arith.divf %141, %142 : vector<8x128xf32>
    %144 = vector.extract_strided_slice %134 {offsets = [0, 128], sizes = [8, 128], strides = [1, 1]} : vector<8x512xf32> to vector<8x128xf32>
    %145 = arith.negf %144 : vector<8x128xf32>
    %146 = math.exp %145 : vector<8x128xf32>
    %cst_50 = arith.constant 1.000000e+00 : f32
    %147 = vector.broadcast %cst_50 : f32 to vector<8x128xf32>
    %148 = arith.addf %147, %146 : vector<8x128xf32>
    %149 = arith.divf %147, %148 : vector<8x128xf32>
    %150 = vector.extract_strided_slice %134 {offsets = [0, 256], sizes = [8, 128], strides = [1, 1]} : vector<8x512xf32> to vector<8x128xf32>
    %151 = math.tanh %150 : vector<8x128xf32>
    %152 = vector.extract_strided_slice %134 {offsets = [0, 384], sizes = [8, 128], strides = [1, 1]} : vector<8x512xf32> to vector<8x128xf32>
    %153 = arith.negf %152 : vector<8x128xf32>
    %154 = math.exp %153 : vector<8x128xf32>
    %cst_51 = arith.constant 1.000000e+00 : f32
    %155 = vector.broadcast %cst_51 : f32 to vector<8x128xf32>
    %156 = arith.addf %155, %154 : vector<8x128xf32>
    %157 = arith.divf %155, %156 : vector<8x128xf32>
    %158 = arith.mulf %149, %100 : vector<8x128xf32>
    %159 = arith.mulf %143, %151 : vector<8x128xf32>
    %160 = arith.addf %158, %159 : vector<8x128xf32>
    %161 = math.tanh %160 : vector<8x128xf32>
    %162 = arith.mulf %157, %161 : vector<8x128xf32>
    %163 = vector.extract_strided_slice %137 {offsets = [0, 0], sizes = [8, 128], strides = [1, 1]} : vector<8x512xf32> to vector<8x128xf32>
    %164 = arith.negf %163 : vector<8x128xf32>
    %165 = math.exp %164 : vector<8x128xf32>
    %cst_52 = arith.constant 1.000000e+00 : f32
    %166 = vector.broadcast %cst_52 : f32 to vector<8x128xf32>
    %167 = arith.addf %166, %165 : vector<8x128xf32>
    %168 = arith.divf %166, %167 : vector<8x128xf32>
    %169 = vector.extract_strided_slice %137 {offsets = [0, 128], sizes = [8, 128], strides = [1, 1]} : vector<8x512xf32> to vector<8x128xf32>
    %170 = arith.negf %169 : vector<8x128xf32>
    %171 = math.exp %170 : vector<8x128xf32>
    %cst_53 = arith.constant 1.000000e+00 : f32
    %172 = vector.broadcast %cst_53 : f32 to vector<8x128xf32>
    %173 = arith.addf %172, %171 : vector<8x128xf32>
    %174 = arith.divf %172, %173 : vector<8x128xf32>
    %175 = vector.extract_strided_slice %137 {offsets = [0, 256], sizes = [8, 128], strides = [1, 1]} : vector<8x512xf32> to vector<8x128xf32>
    %176 = math.tanh %175 : vector<8x128xf32>
    %177 = vector.extract_strided_slice %137 {offsets = [0, 384], sizes = [8, 128], strides = [1, 1]} : vector<8x512xf32> to vector<8x128xf32>
    %178 = arith.negf %177 : vector<8x128xf32>
    %179 = math.exp %178 : vector<8x128xf32>
    %cst_54 = arith.constant 1.000000e+00 : f32
    %180 = vector.broadcast %cst_54 : f32 to vector<8x128xf32>
    %181 = arith.addf %180, %179 : vector<8x128xf32>
    %182 = arith.divf %180, %181 : vector<8x128xf32>
    %183 = arith.mulf %174, %125 : vector<8x128xf32>
    %184 = arith.mulf %168, %176 : vector<8x128xf32>
    %185 = arith.addf %183, %184 : vector<8x128xf32>
    %186 = math.tanh %185 : vector<8x128xf32>
    %187 = arith.mulf %182, %186 : vector<8x128xf32>
    %c16_55 = arith.constant 16 : index
    %c0_56 = arith.constant 0 : index
    %188 = vector.load %arg17[%c16_55, %c0_56] : memref<64x256xf32, #tpu.memory_space<vmem>>, vector<8x128xf32>
    tpu.vector_store %arg17[%c16_55, %c0_56], %162 {strides = array<i32>} : memref<64x256xf32, #tpu.memory_space<vmem>>, vector<8x128xf32>,
    %c40_57 = arith.constant 40 : index
    %c128_58 = arith.constant 128 : index
    %189 = vector.load %arg17[%c40_57, %c128_58] : memref<64x256xf32, #tpu.memory_space<vmem>>, vector<8x128xf32>
    tpu.vector_store %arg17[%c40_57, %c128_58], %187 {strides = array<i32>} : memref<64x256xf32, #tpu.memory_space<vmem>>, vector<8x128xf32>,
    %c24 = arith.constant 24 : index
    %c0_59 = arith.constant 0 : index
    %190 = vector.load %arg15[%c24, %c0_59] : memref<64x512xf32, #tpu.memory_space<vmem>>, vector<8x512xf32>
    %c32 = arith.constant 32 : index
    %c0_60 = arith.constant 0 : index
    %191 = vector.load %arg16[%c32, %c0_60] : memref<64x512xf32, #tpu.memory_space<vmem>>, vector<8x512xf32>
    %192 = arith.truncf %162 : vector<8x128xf32> to vector<8x128xbf16>
    %cst_61 = arith.constant dense<0.000000e+00> : vector<8x512xf32>
    %193 = tpu.matmul %192, %13, %cst_61 {dimension_numbers = #tpu.dot_dimension_numbers<[1], [0], [0], [1], [0, 0, 1, 1], [], []>} : vector<8x128xbf16>, vector<128x512xbf16>, vector<8x512xf32> -> vector<8x512xf32>
    %194 = arith.addf %190, %193 : vector<8x512xf32>
    %195 = arith.truncf %187 : vector<8x128xf32> to vector<8x128xbf16>
    %cst_62 = arith.constant dense<0.000000e+00> : vector<8x512xf32>
    %196 = tpu.matmul %195, %14, %cst_62 {dimension_numbers = #tpu.dot_dimension_numbers<[1], [0], [0], [1], [0, 0, 1, 1], [], []>} : vector<8x128xbf16>, vector<128x512xbf16>, vector<8x512xf32> -> vector<8x512xf32>
    %197 = arith.addf %191, %196 : vector<8x512xf32>
    %198 = vector.extract_strided_slice %194 {offsets = [0, 0], sizes = [8, 128], strides = [1, 1]} : vector<8x512xf32> to vector<8x128xf32>
    %199 = arith.negf %198 : vector<8x128xf32>
    %200 = math.exp %199 : vector<8x128xf32>
    %cst_63 = arith.constant 1.000000e+00 : f32
    %201 = vector.broadcast %cst_63 : f32 to vector<8x128xf32>
    %202 = arith.addf %201, %200 : vector<8x128xf32>
    %203 = arith.divf %201, %202 : vector<8x128xf32>
    %204 = vector.extract_strided_slice %194 {offsets = [0, 128], sizes = [8, 128], strides = [1, 1]} : vector<8x512xf32> to vector<8x128xf32>
    %205 = arith.negf %204 : vector<8x128xf32>
    %206 = math.exp %205 : vector<8x128xf32>
    %cst_64 = arith.constant 1.000000e+00 : f32
    %207 = vector.broadcast %cst_64 : f32 to vector<8x128xf32>
    %208 = arith.addf %207, %206 : vector<8x128xf32>
    %209 = arith.divf %207, %208 : vector<8x128xf32>
    %210 = vector.extract_strided_slice %194 {offsets = [0, 256], sizes = [8, 128], strides = [1, 1]} : vector<8x512xf32> to vector<8x128xf32>
    %211 = math.tanh %210 : vector<8x128xf32>
    %212 = vector.extract_strided_slice %194 {offsets = [0, 384], sizes = [8, 128], strides = [1, 1]} : vector<8x512xf32> to vector<8x128xf32>
    %213 = arith.negf %212 : vector<8x128xf32>
    %214 = math.exp %213 : vector<8x128xf32>
    %cst_65 = arith.constant 1.000000e+00 : f32
    %215 = vector.broadcast %cst_65 : f32 to vector<8x128xf32>
    %216 = arith.addf %215, %214 : vector<8x128xf32>
    %217 = arith.divf %215, %216 : vector<8x128xf32>
    %218 = arith.mulf %209, %160 : vector<8x128xf32>
    %219 = arith.mulf %203, %211 : vector<8x128xf32>
    %220 = arith.addf %218, %219 : vector<8x128xf32>
    %221 = math.tanh %220 : vector<8x128xf32>
    %222 = arith.mulf %217, %221 : vector<8x128xf32>
    %223 = vector.extract_strided_slice %197 {offsets = [0, 0], sizes = [8, 128], strides = [1, 1]} : vector<8x512xf32> to vector<8x128xf32>
    %224 = arith.negf %223 : vector<8x128xf32>
    %225 = math.exp %224 : vector<8x128xf32>
    %cst_66 = arith.constant 1.000000e+00 : f32
    %226 = vector.broadcast %cst_66 : f32 to vector<8x128xf32>
    %227 = arith.addf %226, %225 : vector<8x128xf32>
    %228 = arith.divf %226, %227 : vector<8x128xf32>
    %229 = vector.extract_strided_slice %197 {offsets = [0, 128], sizes = [8, 128], strides = [1, 1]} : vector<8x512xf32> to vector<8x128xf32>
    %230 = arith.negf %229 : vector<8x128xf32>
    %231 = math.exp %230 : vector<8x128xf32>
    %cst_67 = arith.constant 1.000000e+00 : f32
    %232 = vector.broadcast %cst_67 : f32 to vector<8x128xf32>
    %233 = arith.addf %232, %231 : vector<8x128xf32>
    %234 = arith.divf %232, %233 : vector<8x128xf32>
    %235 = vector.extract_strided_slice %197 {offsets = [0, 256], sizes = [8, 128], strides = [1, 1]} : vector<8x512xf32> to vector<8x128xf32>
    %236 = math.tanh %235 : vector<8x128xf32>
    %237 = vector.extract_strided_slice %197 {offsets = [0, 384], sizes = [8, 128], strides = [1, 1]} : vector<8x512xf32> to vector<8x128xf32>
    %238 = arith.negf %237 : vector<8x128xf32>
    %239 = math.exp %238 : vector<8x128xf32>
    %cst_68 = arith.constant 1.000000e+00 : f32
    %240 = vector.broadcast %cst_68 : f32 to vector<8x128xf32>
    %241 = arith.addf %240, %239 : vector<8x128xf32>
    %242 = arith.divf %240, %241 : vector<8x128xf32>
    %243 = arith.mulf %234, %185 : vector<8x128xf32>
    %244 = arith.mulf %228, %236 : vector<8x128xf32>
    %245 = arith.addf %243, %244 : vector<8x128xf32>
    %246 = math.tanh %245 : vector<8x128xf32>
    %247 = arith.mulf %242, %246 : vector<8x128xf32>
    %c24_69 = arith.constant 24 : index
    %c0_70 = arith.constant 0 : index
    %248 = vector.load %arg17[%c24_69, %c0_70] : memref<64x256xf32, #tpu.memory_space<vmem>>, vector<8x128xf32>
    tpu.vector_store %arg17[%c24_69, %c0_70], %222 {strides = array<i32>} : memref<64x256xf32, #tpu.memory_space<vmem>>, vector<8x128xf32>,
    %c32_71 = arith.constant 32 : index
    %c128_72 = arith.constant 128 : index
    %249 = vector.load %arg17[%c32_71, %c128_72] : memref<64x256xf32, #tpu.memory_space<vmem>>, vector<8x128xf32>
    tpu.vector_store %arg17[%c32_71, %c128_72], %247 {strides = array<i32>} : memref<64x256xf32, #tpu.memory_space<vmem>>, vector<8x128xf32>,
    %c32_73 = arith.constant 32 : index
    %c0_74 = arith.constant 0 : index
    %250 = vector.load %arg15[%c32_73, %c0_74] : memref<64x512xf32, #tpu.memory_space<vmem>>, vector<8x512xf32>
    %c24_75 = arith.constant 24 : index
    %c0_76 = arith.constant 0 : index
    %251 = vector.load %arg16[%c24_75, %c0_76] : memref<64x512xf32, #tpu.memory_space<vmem>>, vector<8x512xf32>
    %252 = arith.truncf %222 : vector<8x128xf32> to vector<8x128xbf16>
    %cst_77 = arith.constant dense<0.000000e+00> : vector<8x512xf32>
    %253 = tpu.matmul %252, %13, %cst_77 {dimension_numbers = #tpu.dot_dimension_numbers<[1], [0], [0], [1], [0, 0, 1, 1], [], []>} : vector<8x128xbf16>, vector<128x512xbf16>, vector<8x512xf32> -> vector<8x512xf32>
    %254 = arith.addf %250, %253 : vector<8x512xf32>
    %255 = arith.truncf %247 : vector<8x128xf32> to vector<8x128xbf16>
    %cst_78 = arith.constant dense<0.000000e+00> : vector<8x512xf32>
    %256 = tpu.matmul %255, %14, %cst_78 {dimension_numbers = #tpu.dot_dimension_numbers<[1], [0], [0], [1], [0, 0, 1, 1], [], []>} : vector<8x128xbf16>, vector<128x512xbf16>, vector<8x512xf32> -> vector<8x512xf32>
    %257 = arith.addf %251, %256 : vector<8x512xf32>
    %258 = vector.extract_strided_slice %254 {offsets = [0, 0], sizes = [8, 128], strides = [1, 1]} : vector<8x512xf32> to vector<8x128xf32>
    %259 = arith.negf %258 : vector<8x128xf32>
    %260 = math.exp %259 : vector<8x128xf32>
    %cst_79 = arith.constant 1.000000e+00 : f32
    %261 = vector.broadcast %cst_79 : f32 to vector<8x128xf32>
    %262 = arith.addf %261, %260 : vector<8x128xf32>
    %263 = arith.divf %261, %262 : vector<8x128xf32>
    %264 = vector.extract_strided_slice %254 {offsets = [0, 128], sizes = [8, 128], strides = [1, 1]} : vector<8x512xf32> to vector<8x128xf32>
    %265 = arith.negf %264 : vector<8x128xf32>
    %266 = math.exp %265 : vector<8x128xf32>
    %cst_80 = arith.constant 1.000000e+00 : f32
    %267 = vector.broadcast %cst_80 : f32 to vector<8x128xf32>
    %268 = arith.addf %267, %266 : vector<8x128xf32>
    %269 = arith.divf %267, %268 : vector<8x128xf32>
    %270 = vector.extract_strided_slice %254 {offsets = [0, 256], sizes = [8, 128], strides = [1, 1]} : vector<8x512xf32> to vector<8x128xf32>
    %271 = math.tanh %270 : vector<8x128xf32>
    %272 = vector.extract_strided_slice %254 {offsets = [0, 384], sizes = [8, 128], strides = [1, 1]} : vector<8x512xf32> to vector<8x128xf32>
    %273 = arith.negf %272 : vector<8x128xf32>
    %274 = math.exp %273 : vector<8x128xf32>
    %cst_81 = arith.constant 1.000000e+00 : f32
    %275 = vector.broadcast %cst_81 : f32 to vector<8x128xf32>
    %276 = arith.addf %275, %274 : vector<8x128xf32>
    %277 = arith.divf %275, %276 : vector<8x128xf32>
    %278 = arith.mulf %269, %220 : vector<8x128xf32>
    %279 = arith.mulf %263, %271 : vector<8x128xf32>
    %280 = arith.addf %278, %279 : vector<8x128xf32>
    %281 = math.tanh %280 : vector<8x128xf32>
    %282 = arith.mulf %277, %281 : vector<8x128xf32>
    %283 = vector.extract_strided_slice %257 {offsets = [0, 0], sizes = [8, 128], strides = [1, 1]} : vector<8x512xf32> to vector<8x128xf32>
    %284 = arith.negf %283 : vector<8x128xf32>
    %285 = math.exp %284 : vector<8x128xf32>
    %cst_82 = arith.constant 1.000000e+00 : f32
    %286 = vector.broadcast %cst_82 : f32 to vector<8x128xf32>
    %287 = arith.addf %286, %285 : vector<8x128xf32>
    %288 = arith.divf %286, %287 : vector<8x128xf32>
    %289 = vector.extract_strided_slice %257 {offsets = [0, 128], sizes = [8, 128], strides = [1, 1]} : vector<8x512xf32> to vector<8x128xf32>
    %290 = arith.negf %289 : vector<8x128xf32>
    %291 = math.exp %290 : vector<8x128xf32>
    %cst_83 = arith.constant 1.000000e+00 : f32
    %292 = vector.broadcast %cst_83 : f32 to vector<8x128xf32>
    %293 = arith.addf %292, %291 : vector<8x128xf32>
    %294 = arith.divf %292, %293 : vector<8x128xf32>
    %295 = vector.extract_strided_slice %257 {offsets = [0, 256], sizes = [8, 128], strides = [1, 1]} : vector<8x512xf32> to vector<8x128xf32>
    %296 = math.tanh %295 : vector<8x128xf32>
    %297 = vector.extract_strided_slice %257 {offsets = [0, 384], sizes = [8, 128], strides = [1, 1]} : vector<8x512xf32> to vector<8x128xf32>
    %298 = arith.negf %297 : vector<8x128xf32>
    %299 = math.exp %298 : vector<8x128xf32>
    %cst_84 = arith.constant 1.000000e+00 : f32
    %300 = vector.broadcast %cst_84 : f32 to vector<8x128xf32>
    %301 = arith.addf %300, %299 : vector<8x128xf32>
    %302 = arith.divf %300, %301 : vector<8x128xf32>
    %303 = arith.mulf %294, %245 : vector<8x128xf32>
    %304 = arith.mulf %288, %296 : vector<8x128xf32>
    %305 = arith.addf %303, %304 : vector<8x128xf32>
    %306 = math.tanh %305 : vector<8x128xf32>
    %307 = arith.mulf %302, %306 : vector<8x128xf32>
    %c32_85 = arith.constant 32 : index
    %c0_86 = arith.constant 0 : index
    %308 = vector.load %arg17[%c32_85, %c0_86] : memref<64x256xf32, #tpu.memory_space<vmem>>, vector<8x128xf32>
    tpu.vector_store %arg17[%c32_85, %c0_86], %282 {strides = array<i32>} : memref<64x256xf32, #tpu.memory_space<vmem>>, vector<8x128xf32>,
    %c24_87 = arith.constant 24 : index
    %c128_88 = arith.constant 128 : index
    %309 = vector.load %arg17[%c24_87, %c128_88] : memref<64x256xf32, #tpu.memory_space<vmem>>, vector<8x128xf32>
    tpu.vector_store %arg17[%c24_87, %c128_88], %307 {strides = array<i32>} : memref<64x256xf32, #tpu.memory_space<vmem>>, vector<8x128xf32>,
    %c40_89 = arith.constant 40 : index
    %c0_90 = arith.constant 0 : index
    %310 = vector.load %arg15[%c40_89, %c0_90] : memref<64x512xf32, #tpu.memory_space<vmem>>, vector<8x512xf32>
    %c16_91 = arith.constant 16 : index
    %c0_92 = arith.constant 0 : index
    %311 = vector.load %arg16[%c16_91, %c0_92] : memref<64x512xf32, #tpu.memory_space<vmem>>, vector<8x512xf32>
    %312 = arith.truncf %282 : vector<8x128xf32> to vector<8x128xbf16>
    %cst_93 = arith.constant dense<0.000000e+00> : vector<8x512xf32>
    %313 = tpu.matmul %312, %13, %cst_93 {dimension_numbers = #tpu.dot_dimension_numbers<[1], [0], [0], [1], [0, 0, 1, 1], [], []>} : vector<8x128xbf16>, vector<128x512xbf16>, vector<8x512xf32> -> vector<8x512xf32>
    %314 = arith.addf %310, %313 : vector<8x512xf32>
    %315 = arith.truncf %307 : vector<8x128xf32> to vector<8x128xbf16>
    %cst_94 = arith.constant dense<0.000000e+00> : vector<8x512xf32>
    %316 = tpu.matmul %315, %14, %cst_94 {dimension_numbers = #tpu.dot_dimension_numbers<[1], [0], [0], [1], [0, 0, 1, 1], [], []>} : vector<8x128xbf16>, vector<128x512xbf16>, vector<8x512xf32> -> vector<8x512xf32>
    %317 = arith.addf %311, %316 : vector<8x512xf32>
    %318 = vector.extract_strided_slice %314 {offsets = [0, 0], sizes = [8, 128], strides = [1, 1]} : vector<8x512xf32> to vector<8x128xf32>
    %319 = arith.negf %318 : vector<8x128xf32>
    %320 = math.exp %319 : vector<8x128xf32>
    %cst_95 = arith.constant 1.000000e+00 : f32
    %321 = vector.broadcast %cst_95 : f32 to vector<8x128xf32>
    %322 = arith.addf %321, %320 : vector<8x128xf32>
    %323 = arith.divf %321, %322 : vector<8x128xf32>
    %324 = vector.extract_strided_slice %314 {offsets = [0, 128], sizes = [8, 128], strides = [1, 1]} : vector<8x512xf32> to vector<8x128xf32>
    %325 = arith.negf %324 : vector<8x128xf32>
    %326 = math.exp %325 : vector<8x128xf32>
    %cst_96 = arith.constant 1.000000e+00 : f32
    %327 = vector.broadcast %cst_96 : f32 to vector<8x128xf32>
    %328 = arith.addf %327, %326 : vector<8x128xf32>
    %329 = arith.divf %327, %328 : vector<8x128xf32>
    %330 = vector.extract_strided_slice %314 {offsets = [0, 256], sizes = [8, 128], strides = [1, 1]} : vector<8x512xf32> to vector<8x128xf32>
    %331 = math.tanh %330 : vector<8x128xf32>
    %332 = vector.extract_strided_slice %314 {offsets = [0, 384], sizes = [8, 128], strides = [1, 1]} : vector<8x512xf32> to vector<8x128xf32>
    %333 = arith.negf %332 : vector<8x128xf32>
    %334 = math.exp %333 : vector<8x128xf32>
    %cst_97 = arith.constant 1.000000e+00 : f32
    %335 = vector.broadcast %cst_97 : f32 to vector<8x128xf32>
    %336 = arith.addf %335, %334 : vector<8x128xf32>
    %337 = arith.divf %335, %336 : vector<8x128xf32>
    %338 = arith.mulf %329, %280 : vector<8x128xf32>
    %339 = arith.mulf %323, %331 : vector<8x128xf32>
    %340 = arith.addf %338, %339 : vector<8x128xf32>
    %341 = math.tanh %340 : vector<8x128xf32>
    %342 = arith.mulf %337, %341 : vector<8x128xf32>
    %343 = vector.extract_strided_slice %317 {offsets = [0, 0], sizes = [8, 128], strides = [1, 1]} : vector<8x512xf32> to vector<8x128xf32>
    %344 = arith.negf %343 : vector<8x128xf32>
    %345 = math.exp %344 : vector<8x128xf32>
    %cst_98 = arith.constant 1.000000e+00 : f32
    %346 = vector.broadcast %cst_98 : f32 to vector<8x128xf32>
    %347 = arith.addf %346, %345 : vector<8x128xf32>
    %348 = arith.divf %346, %347 : vector<8x128xf32>
    %349 = vector.extract_strided_slice %317 {offsets = [0, 128], sizes = [8, 128], strides = [1, 1]} : vector<8x512xf32> to vector<8x128xf32>
    %350 = arith.negf %349 : vector<8x128xf32>
    %351 = math.exp %350 : vector<8x128xf32>
    %cst_99 = arith.constant 1.000000e+00 : f32
    %352 = vector.broadcast %cst_99 : f32 to vector<8x128xf32>
    %353 = arith.addf %352, %351 : vector<8x128xf32>
    %354 = arith.divf %352, %353 : vector<8x128xf32>
    %355 = vector.extract_strided_slice %317 {offsets = [0, 256], sizes = [8, 128], strides = [1, 1]} : vector<8x512xf32> to vector<8x128xf32>
    %356 = math.tanh %355 : vector<8x128xf32>
    %357 = vector.extract_strided_slice %317 {offsets = [0, 384], sizes = [8, 128], strides = [1, 1]} : vector<8x512xf32> to vector<8x128xf32>
    %358 = arith.negf %357 : vector<8x128xf32>
    %359 = math.exp %358 : vector<8x128xf32>
    %cst_100 = arith.constant 1.000000e+00 : f32
    %360 = vector.broadcast %cst_100 : f32 to vector<8x128xf32>
    %361 = arith.addf %360, %359 : vector<8x128xf32>
    %362 = arith.divf %360, %361 : vector<8x128xf32>
    %363 = arith.mulf %354, %305 : vector<8x128xf32>
    %364 = arith.mulf %348, %356 : vector<8x128xf32>
    %365 = arith.addf %363, %364 : vector<8x128xf32>
    %366 = math.tanh %365 : vector<8x128xf32>
    %367 = arith.mulf %362, %366 : vector<8x128xf32>
    %c40_101 = arith.constant 40 : index
    %c0_102 = arith.constant 0 : index
    %368 = vector.load %arg17[%c40_101, %c0_102] : memref<64x256xf32, #tpu.memory_space<vmem>>, vector<8x128xf32>
    tpu.vector_store %arg17[%c40_101, %c0_102], %342 {strides = array<i32>} : memref<64x256xf32, #tpu.memory_space<vmem>>, vector<8x128xf32>,
    %c16_103 = arith.constant 16 : index
    %c128_104 = arith.constant 128 : index
    %369 = vector.load %arg17[%c16_103, %c128_104] : memref<64x256xf32, #tpu.memory_space<vmem>>, vector<8x128xf32>
    tpu.vector_store %arg17[%c16_103, %c128_104], %367 {strides = array<i32>} : memref<64x256xf32, #tpu.memory_space<vmem>>, vector<8x128xf32>,
    %c48_105 = arith.constant 48 : index
    %c0_106 = arith.constant 0 : index
    %370 = vector.load %arg15[%c48_105, %c0_106] : memref<64x512xf32, #tpu.memory_space<vmem>>, vector<8x512xf32>
    %c8_107 = arith.constant 8 : index
    %c0_108 = arith.constant 0 : index
    %371 = vector.load %arg16[%c8_107, %c0_108] : memref<64x512xf32, #tpu.memory_space<vmem>>, vector<8x512xf32>
    %372 = arith.truncf %342 : vector<8x128xf32> to vector<8x128xbf16>
    %cst_109 = arith.constant dense<0.000000e+00> : vector<8x512xf32>
    %373 = tpu.matmul %372, %13, %cst_109 {dimension_numbers = #tpu.dot_dimension_numbers<[1], [0], [0], [1], [0, 0, 1, 1], [], []>} : vector<8x128xbf16>, vector<128x512xbf16>, vector<8x512xf32> -> vector<8x512xf32>
    %374 = arith.addf %370, %373 : vector<8x512xf32>
    %375 = arith.truncf %367 : vector<8x128xf32> to vector<8x128xbf16>
    %cst_110 = arith.constant dense<0.000000e+00> : vector<8x512xf32>
    %376 = tpu.matmul %375, %14, %cst_110 {dimension_numbers = #tpu.dot_dimension_numbers<[1], [0], [0], [1], [0, 0, 1, 1], [], []>} : vector<8x128xbf16>, vector<128x512xbf16>, vector<8x512xf32> -> vector<8x512xf32>
    %377 = arith.addf %371, %376 : vector<8x512xf32>
    %378 = vector.extract_strided_slice %374 {offsets = [0, 0], sizes = [8, 128], strides = [1, 1]} : vector<8x512xf32> to vector<8x128xf32>
    %379 = arith.negf %378 : vector<8x128xf32>
    %380 = math.exp %379 : vector<8x128xf32>
    %cst_111 = arith.constant 1.000000e+00 : f32
    %381 = vector.broadcast %cst_111 : f32 to vector<8x128xf32>
    %382 = arith.addf %381, %380 : vector<8x128xf32>
    %383 = arith.divf %381, %382 : vector<8x128xf32>
    %384 = vector.extract_strided_slice %374 {offsets = [0, 128], sizes = [8, 128], strides = [1, 1]} : vector<8x512xf32> to vector<8x128xf32>
    %385 = arith.negf %384 : vector<8x128xf32>
    %386 = math.exp %385 : vector<8x128xf32>
    %cst_112 = arith.constant 1.000000e+00 : f32
    %387 = vector.broadcast %cst_112 : f32 to vector<8x128xf32>
    %388 = arith.addf %387, %386 : vector<8x128xf32>
    %389 = arith.divf %387, %388 : vector<8x128xf32>
    %390 = vector.extract_strided_slice %374 {offsets = [0, 256], sizes = [8, 128], strides = [1, 1]} : vector<8x512xf32> to vector<8x128xf32>
    %391 = math.tanh %390 : vector<8x128xf32>
    %392 = vector.extract_strided_slice %374 {offsets = [0, 384], sizes = [8, 128], strides = [1, 1]} : vector<8x512xf32> to vector<8x128xf32>
    %393 = arith.negf %392 : vector<8x128xf32>
    %394 = math.exp %393 : vector<8x128xf32>
    %cst_113 = arith.constant 1.000000e+00 : f32
    %395 = vector.broadcast %cst_113 : f32 to vector<8x128xf32>
    %396 = arith.addf %395, %394 : vector<8x128xf32>
    %397 = arith.divf %395, %396 : vector<8x128xf32>
    %398 = arith.mulf %389, %340 : vector<8x128xf32>
    %399 = arith.mulf %383, %391 : vector<8x128xf32>
    %400 = arith.addf %398, %399 : vector<8x128xf32>
    %401 = math.tanh %400 : vector<8x128xf32>
    %402 = arith.mulf %397, %401 : vector<8x128xf32>
    %403 = vector.extract_strided_slice %377 {offsets = [0, 0], sizes = [8, 128], strides = [1, 1]} : vector<8x512xf32> to vector<8x128xf32>
    %404 = arith.negf %403 : vector<8x128xf32>
    %405 = math.exp %404 : vector<8x128xf32>
    %cst_114 = arith.constant 1.000000e+00 : f32
    %406 = vector.broadcast %cst_114 : f32 to vector<8x128xf32>
    %407 = arith.addf %406, %405 : vector<8x128xf32>
    %408 = arith.divf %406, %407 : vector<8x128xf32>
    %409 = vector.extract_strided_slice %377 {offsets = [0, 128], sizes = [8, 128], strides = [1, 1]} : vector<8x512xf32> to vector<8x128xf32>
    %410 = arith.negf %409 : vector<8x128xf32>
    %411 = math.exp %410 : vector<8x128xf32>
    %cst_115 = arith.constant 1.000000e+00 : f32
    %412 = vector.broadcast %cst_115 : f32 to vector<8x128xf32>
    %413 = arith.addf %412, %411 : vector<8x128xf32>
    %414 = arith.divf %412, %413 : vector<8x128xf32>
    %415 = vector.extract_strided_slice %377 {offsets = [0, 256], sizes = [8, 128], strides = [1, 1]} : vector<8x512xf32> to vector<8x128xf32>
    %416 = math.tanh %415 : vector<8x128xf32>
    %417 = vector.extract_strided_slice %377 {offsets = [0, 384], sizes = [8, 128], strides = [1, 1]} : vector<8x512xf32> to vector<8x128xf32>
    %418 = arith.negf %417 : vector<8x128xf32>
    %419 = math.exp %418 : vector<8x128xf32>
    %cst_116 = arith.constant 1.000000e+00 : f32
    %420 = vector.broadcast %cst_116 : f32 to vector<8x128xf32>
    %421 = arith.addf %420, %419 : vector<8x128xf32>
    %422 = arith.divf %420, %421 : vector<8x128xf32>
    %423 = arith.mulf %414, %365 : vector<8x128xf32>
    %424 = arith.mulf %408, %416 : vector<8x128xf32>
    %425 = arith.addf %423, %424 : vector<8x128xf32>
    %426 = math.tanh %425 : vector<8x128xf32>
    %427 = arith.mulf %422, %426 : vector<8x128xf32>
    %c48_117 = arith.constant 48 : index
    %c0_118 = arith.constant 0 : index
    %428 = vector.load %arg17[%c48_117, %c0_118] : memref<64x256xf32, #tpu.memory_space<vmem>>, vector<8x128xf32>
    tpu.vector_store %arg17[%c48_117, %c0_118], %402 {strides = array<i32>} : memref<64x256xf32, #tpu.memory_space<vmem>>, vector<8x128xf32>,
    %c8_119 = arith.constant 8 : index
    %c128_120 = arith.constant 128 : index
    %429 = vector.load %arg17[%c8_119, %c128_120] : memref<64x256xf32, #tpu.memory_space<vmem>>, vector<8x128xf32>
    tpu.vector_store %arg17[%c8_119, %c128_120], %427 {strides = array<i32>} : memref<64x256xf32, #tpu.memory_space<vmem>>, vector<8x128xf32>,
    %c56_121 = arith.constant 56 : index
    %c0_122 = arith.constant 0 : index
    %430 = vector.load %arg15[%c56_121, %c0_122] : memref<64x512xf32, #tpu.memory_space<vmem>>, vector<8x512xf32>
    %c0_123 = arith.constant 0 : index
    %c0_124 = arith.constant 0 : index
    %431 = vector.load %arg16[%c0_123, %c0_124] : memref<64x512xf32, #tpu.memory_space<vmem>>, vector<8x512xf32>
    %432 = arith.truncf %402 : vector<8x128xf32> to vector<8x128xbf16>
    %cst_125 = arith.constant dense<0.000000e+00> : vector<8x512xf32>
    %433 = tpu.matmul %432, %13, %cst_125 {dimension_numbers = #tpu.dot_dimension_numbers<[1], [0], [0], [1], [0, 0, 1, 1], [], []>} : vector<8x128xbf16>, vector<128x512xbf16>, vector<8x512xf32> -> vector<8x512xf32>
    %434 = arith.addf %430, %433 : vector<8x512xf32>
    %435 = arith.truncf %427 : vector<8x128xf32> to vector<8x128xbf16>
    %cst_126 = arith.constant dense<0.000000e+00> : vector<8x512xf32>
    %436 = tpu.matmul %435, %14, %cst_126 {dimension_numbers = #tpu.dot_dimension_numbers<[1], [0], [0], [1], [0, 0, 1, 1], [], []>} : vector<8x128xbf16>, vector<128x512xbf16>, vector<8x512xf32> -> vector<8x512xf32>
    %437 = arith.addf %431, %436 : vector<8x512xf32>
    %438 = vector.extract_strided_slice %434 {offsets = [0, 0], sizes = [8, 128], strides = [1, 1]} : vector<8x512xf32> to vector<8x128xf32>
    %439 = arith.negf %438 : vector<8x128xf32>
    %440 = math.exp %439 : vector<8x128xf32>
    %cst_127 = arith.constant 1.000000e+00 : f32
    %441 = vector.broadcast %cst_127 : f32 to vector<8x128xf32>
    %442 = arith.addf %441, %440 : vector<8x128xf32>
    %443 = arith.divf %441, %442 : vector<8x128xf32>
    %444 = vector.extract_strided_slice %434 {offsets = [0, 128], sizes = [8, 128], strides = [1, 1]} : vector<8x512xf32> to vector<8x128xf32>
    %445 = arith.negf %444 : vector<8x128xf32>
    %446 = math.exp %445 : vector<8x128xf32>
    %cst_128 = arith.constant 1.000000e+00 : f32
    %447 = vector.broadcast %cst_128 : f32 to vector<8x128xf32>
    %448 = arith.addf %447, %446 : vector<8x128xf32>
    %449 = arith.divf %447, %448 : vector<8x128xf32>
    %450 = vector.extract_strided_slice %434 {offsets = [0, 256], sizes = [8, 128], strides = [1, 1]} : vector<8x512xf32> to vector<8x128xf32>
    %451 = math.tanh %450 : vector<8x128xf32>
    %452 = vector.extract_strided_slice %434 {offsets = [0, 384], sizes = [8, 128], strides = [1, 1]} : vector<8x512xf32> to vector<8x128xf32>
    %453 = arith.negf %452 : vector<8x128xf32>
    %454 = math.exp %453 : vector<8x128xf32>
    %cst_129 = arith.constant 1.000000e+00 : f32
    %455 = vector.broadcast %cst_129 : f32 to vector<8x128xf32>
    %456 = arith.addf %455, %454 : vector<8x128xf32>
    %457 = arith.divf %455, %456 : vector<8x128xf32>
    %458 = arith.mulf %449, %400 : vector<8x128xf32>
    %459 = arith.mulf %443, %451 : vector<8x128xf32>
    %460 = arith.addf %458, %459 : vector<8x128xf32>
    %461 = math.tanh %460 : vector<8x128xf32>
    %462 = arith.mulf %457, %461 : vector<8x128xf32>
    %463 = vector.extract_strided_slice %437 {offsets = [0, 0], sizes = [8, 128], strides = [1, 1]} : vector<8x512xf32> to vector<8x128xf32>
    %464 = arith.negf %463 : vector<8x128xf32>
    %465 = math.exp %464 : vector<8x128xf32>
    %cst_130 = arith.constant 1.000000e+00 : f32
    %466 = vector.broadcast %cst_130 : f32 to vector<8x128xf32>
    %467 = arith.addf %466, %465 : vector<8x128xf32>
    %468 = arith.divf %466, %467 : vector<8x128xf32>
    %469 = vector.extract_strided_slice %437 {offsets = [0, 128], sizes = [8, 128], strides = [1, 1]} : vector<8x512xf32> to vector<8x128xf32>
    %470 = arith.negf %469 : vector<8x128xf32>
    %471 = math.exp %470 : vector<8x128xf32>
    %cst_131 = arith.constant 1.000000e+00 : f32
    %472 = vector.broadcast %cst_131 : f32 to vector<8x128xf32>
    %473 = arith.addf %472, %471 : vector<8x128xf32>
    %474 = arith.divf %472, %473 : vector<8x128xf32>
    %475 = vector.extract_strided_slice %437 {offsets = [0, 256], sizes = [8, 128], strides = [1, 1]} : vector<8x512xf32> to vector<8x128xf32>
    %476 = math.tanh %475 : vector<8x128xf32>
    %477 = vector.extract_strided_slice %437 {offsets = [0, 384], sizes = [8, 128], strides = [1, 1]} : vector<8x512xf32> to vector<8x128xf32>
    %478 = arith.negf %477 : vector<8x128xf32>
    %479 = math.exp %478 : vector<8x128xf32>
    %cst_132 = arith.constant 1.000000e+00 : f32
    %480 = vector.broadcast %cst_132 : f32 to vector<8x128xf32>
    %481 = arith.addf %480, %479 : vector<8x128xf32>
    %482 = arith.divf %480, %481 : vector<8x128xf32>
    %483 = arith.mulf %474, %425 : vector<8x128xf32>
    %484 = arith.mulf %468, %476 : vector<8x128xf32>
    %485 = arith.addf %483, %484 : vector<8x128xf32>
    %486 = math.tanh %485 : vector<8x128xf32>
    %487 = arith.mulf %482, %486 : vector<8x128xf32>
    %c56_133 = arith.constant 56 : index
    %c0_134 = arith.constant 0 : index
    %488 = vector.load %arg17[%c56_133, %c0_134] : memref<64x256xf32, #tpu.memory_space<vmem>>, vector<8x128xf32>
    tpu.vector_store %arg17[%c56_133, %c0_134], %462 {strides = array<i32>} : memref<64x256xf32, #tpu.memory_space<vmem>>, vector<8x128xf32>,
    %c0_135 = arith.constant 0 : index
    %c128_136 = arith.constant 128 : index
    %489 = vector.load %arg17[%c0_135, %c128_136] : memref<64x256xf32, #tpu.memory_space<vmem>>, vector<8x128xf32>
    tpu.vector_store %arg17[%c0_135, %c128_136], %487 {strides = array<i32>} : memref<64x256xf32, #tpu.memory_space<vmem>>, vector<8x128xf32>,
    %c0_137 = arith.constant 0 : index
    %c0_138 = arith.constant 0 : index
    %490 = vector.load %arg17[%c0_137, %c0_138] : memref<64x256xf32, #tpu.memory_space<vmem>>, vector<64x256xf32>
    %491 = arith.truncf %490 : vector<64x256xf32> to vector<64x256xbf16>
    %c0_139 = arith.constant 0 : index
    %c0_140 = arith.constant 0 : index
    %492 = vector.load %arg7[%c0_139, %c0_140] : memref<256x512xbf16, #tpu.memory_space<vmem>>, vector<256x512xbf16>
    %cst_141 = arith.constant dense<0.000000e+00> : vector<64x512xf32>
    %493 = tpu.matmul %491, %492, %cst_141 {dimension_numbers = #tpu.dot_dimension_numbers<[1], [0], [0], [1], [0, 0, 1, 1], [], []>} : vector<64x256xbf16>, vector<256x512xbf16>, vector<64x512xf32> -> vector<64x512xf32>
    %c0_142 = arith.constant 0 : index
    %c0_143 = arith.constant 0 : index
    %494 = vector.load %arg10[%c0_142, %c0_143] : memref<1x512xf32, #tpu.memory_space<vmem>>, vector<1x512xf32>
    %495 = vector.broadcast %494 : vector<1x512xf32> to vector<64x512xf32>
    %496 = arith.addf %493, %495 : vector<64x512xf32>
    %c0_144 = arith.constant 0 : index
    %c0_145 = arith.constant 0 : index
    %497 = vector.load %arg18[%c0_144, %c0_145] : memref<64x512xf32, #tpu.memory_space<vmem>>, vector<64x512xf32>
    tpu.vector_store %arg18[%c0_144, %c0_145], %496 {strides = array<i32>} : memref<64x512xf32, #tpu.memory_space<vmem>>, vector<64x512xf32>,
    %c56_146 = arith.constant 56 : index
    %c0_147 = arith.constant 0 : index
    %498 = vector.load %arg17[%c56_146, %c0_147] : memref<64x256xf32, #tpu.memory_space<vmem>>, vector<8x256xf32>
    %499 = arith.truncf %498 : vector<8x256xf32> to vector<8x256xbf16>
    %c0_148 = arith.constant 0 : index
    %c0_149 = arith.constant 0 : index
    %500 = vector.load %arg8[%c0_148, %c0_149] : memref<256x512xbf16, #tpu.memory_space<vmem>>, vector<256x512xbf16>
    %cst_150 = arith.constant dense<0.000000e+00> : vector<8x512xf32>
    %501 = tpu.matmul %499, %500, %cst_150 {dimension_numbers = #tpu.dot_dimension_numbers<[1], [0], [0], [1], [0, 0, 1, 1], [], []>} : vector<8x256xbf16>, vector<256x512xbf16>, vector<8x512xf32> -> vector<8x512xf32>
    %c0_151 = arith.constant 0 : index
    %c0_152 = arith.constant 0 : index
    %502 = vector.load %arg11[%c0_151, %c0_152] : memref<1x512xf32, #tpu.memory_space<vmem>>, vector<1x512xf32>
    %503 = vector.broadcast %502 : vector<1x512xf32> to vector<8x512xf32>
    %504 = arith.addf %501, %503 : vector<8x512xf32>
    %505 = vector.extract_strided_slice %504 {offsets = [0, 0], sizes = [8, 128], strides = [1, 1]} : vector<8x512xf32> to vector<8x128xf32>
    %506 = arith.negf %505 : vector<8x128xf32>
    %507 = math.exp %506 : vector<8x128xf32>
    %cst_153 = arith.constant 1.000000e+00 : f32
    %508 = vector.broadcast %cst_153 : f32 to vector<8x128xf32>
    %509 = arith.addf %508, %507 : vector<8x128xf32>
    %510 = arith.divf %508, %509 : vector<8x128xf32>
    %511 = vector.extract_strided_slice %504 {offsets = [0, 128], sizes = [8, 128], strides = [1, 1]} : vector<8x512xf32> to vector<8x128xf32>
    %512 = arith.negf %511 : vector<8x128xf32>
    %513 = math.exp %512 : vector<8x128xf32>
    %cst_154 = arith.constant 1.000000e+00 : f32
    %514 = vector.broadcast %cst_154 : f32 to vector<8x128xf32>
    %515 = arith.addf %514, %513 : vector<8x128xf32>
    %516 = arith.divf %514, %515 : vector<8x128xf32>
    %517 = vector.extract_strided_slice %504 {offsets = [0, 256], sizes = [8, 128], strides = [1, 1]} : vector<8x512xf32> to vector<8x128xf32>
    %518 = math.tanh %517 : vector<8x128xf32>
    %519 = vector.extract_strided_slice %504 {offsets = [0, 384], sizes = [8, 128], strides = [1, 1]} : vector<8x512xf32> to vector<8x128xf32>
    %520 = arith.negf %519 : vector<8x128xf32>
    %521 = math.exp %520 : vector<8x128xf32>
    %cst_155 = arith.constant 1.000000e+00 : f32
    %522 = vector.broadcast %cst_155 : f32 to vector<8x128xf32>
    %523 = arith.addf %522, %521 : vector<8x128xf32>
    %524 = arith.divf %522, %523 : vector<8x128xf32>
    %525 = arith.mulf %516, %15 : vector<8x128xf32>
    %526 = arith.mulf %510, %518 : vector<8x128xf32>
    %527 = arith.addf %525, %526 : vector<8x128xf32>
    %528 = math.tanh %527 : vector<8x128xf32>
    %529 = arith.mulf %524, %528 : vector<8x128xf32>
    %c0_156 = arith.constant 0 : index
    %c0_157 = arith.constant 0 : index
    %530 = vector.load %arg9[%c0_156, %c0_157] : memref<128x512xbf16, #tpu.memory_space<vmem>>, vector<128x512xbf16>
    %c0_158 = arith.constant 0 : index
    %c0_159 = arith.constant 0 : index
    %531 = vector.load %arg18[%c0_158, %c0_159] : memref<64x512xf32, #tpu.memory_space<vmem>>, vector<8x512xf32>
    %532 = vector.extract_strided_slice %531 {offsets = [0, 0], sizes = [8, 128], strides = [1, 1]} : vector<8x512xf32> to vector<8x128xf32>
    %533 = arith.negf %532 : vector<8x128xf32>
    %534 = math.exp %533 : vector<8x128xf32>
    %cst_160 = arith.constant 1.000000e+00 : f32
    %535 = vector.broadcast %cst_160 : f32 to vector<8x128xf32>
    %536 = arith.addf %535, %534 : vector<8x128xf32>
    %537 = arith.divf %535, %536 : vector<8x128xf32>
    %538 = vector.extract_strided_slice %531 {offsets = [0, 128], sizes = [8, 128], strides = [1, 1]} : vector<8x512xf32> to vector<8x128xf32>
    %539 = arith.negf %538 : vector<8x128xf32>
    %540 = math.exp %539 : vector<8x128xf32>
    %cst_161 = arith.constant 1.000000e+00 : f32
    %541 = vector.broadcast %cst_161 : f32 to vector<8x128xf32>
    %542 = arith.addf %541, %540 : vector<8x128xf32>
    %543 = arith.divf %541, %542 : vector<8x128xf32>
    %544 = vector.extract_strided_slice %531 {offsets = [0, 256], sizes = [8, 128], strides = [1, 1]} : vector<8x512xf32> to vector<8x128xf32>
    %545 = math.tanh %544 : vector<8x128xf32>
    %546 = vector.extract_strided_slice %531 {offsets = [0, 384], sizes = [8, 128], strides = [1, 1]} : vector<8x512xf32> to vector<8x128xf32>
    %547 = arith.negf %546 : vector<8x128xf32>
    %548 = math.exp %547 : vector<8x128xf32>
    %cst_162 = arith.constant 1.000000e+00 : f32
    %549 = vector.broadcast %cst_162 : f32 to vector<8x128xf32>
    %550 = arith.addf %549, %548 : vector<8x128xf32>
    %551 = arith.divf %549, %550 : vector<8x128xf32>
    %552 = arith.mulf %543, %15 : vector<8x128xf32>
    %553 = arith.mulf %537, %545 : vector<8x128xf32>
    %554 = arith.addf %552, %553 : vector<8x128xf32>
    %555 = math.tanh %554 : vector<8x128xf32>
    %556 = arith.mulf %551, %555 : vector<8x128xf32>
    %c8_163 = arith.constant 8 : index
    %c0_164 = arith.constant 0 : index
    %557 = vector.load %arg18[%c8_163, %c0_164] : memref<64x512xf32, #tpu.memory_space<vmem>>, vector<8x512xf32>
    %558 = arith.truncf %556 : vector<8x128xf32> to vector<8x128xbf16>
    %cst_165 = arith.constant dense<0.000000e+00> : vector<8x512xf32>
    %559 = tpu.matmul %558, %530, %cst_165 {dimension_numbers = #tpu.dot_dimension_numbers<[1], [0], [0], [1], [0, 0, 1, 1], [], []>} : vector<8x128xbf16>, vector<128x512xbf16>, vector<8x512xf32> -> vector<8x512xf32>
    %560 = arith.addf %557, %559 : vector<8x512xf32>
    %561 = vector.extract_strided_slice %560 {offsets = [0, 0], sizes = [8, 128], strides = [1, 1]} : vector<8x512xf32> to vector<8x128xf32>
    %562 = arith.negf %561 : vector<8x128xf32>
    %563 = math.exp %562 : vector<8x128xf32>
    %cst_166 = arith.constant 1.000000e+00 : f32
    %564 = vector.broadcast %cst_166 : f32 to vector<8x128xf32>
    %565 = arith.addf %564, %563 : vector<8x128xf32>
    %566 = arith.divf %564, %565 : vector<8x128xf32>
    %567 = vector.extract_strided_slice %560 {offsets = [0, 128], sizes = [8, 128], strides = [1, 1]} : vector<8x512xf32> to vector<8x128xf32>
    %568 = arith.negf %567 : vector<8x128xf32>
    %569 = math.exp %568 : vector<8x128xf32>
    %cst_167 = arith.constant 1.000000e+00 : f32
    %570 = vector.broadcast %cst_167 : f32 to vector<8x128xf32>
    %571 = arith.addf %570, %569 : vector<8x128xf32>
    %572 = arith.divf %570, %571 : vector<8x128xf32>
    %573 = vector.extract_strided_slice %560 {offsets = [0, 256], sizes = [8, 128], strides = [1, 1]} : vector<8x512xf32> to vector<8x128xf32>
    %574 = math.tanh %573 : vector<8x128xf32>
    %575 = vector.extract_strided_slice %560 {offsets = [0, 384], sizes = [8, 128], strides = [1, 1]} : vector<8x512xf32> to vector<8x128xf32>
    %576 = arith.negf %575 : vector<8x128xf32>
    %577 = math.exp %576 : vector<8x128xf32>
    %cst_168 = arith.constant 1.000000e+00 : f32
    %578 = vector.broadcast %cst_168 : f32 to vector<8x128xf32>
    %579 = arith.addf %578, %577 : vector<8x128xf32>
    %580 = arith.divf %578, %579 : vector<8x128xf32>
    %581 = arith.mulf %572, %554 : vector<8x128xf32>
    %582 = arith.mulf %566, %574 : vector<8x128xf32>
    %583 = arith.addf %581, %582 : vector<8x128xf32>
    %584 = math.tanh %583 : vector<8x128xf32>
    %585 = arith.mulf %580, %584 : vector<8x128xf32>
    %c16_169 = arith.constant 16 : index
    %c0_170 = arith.constant 0 : index
    %586 = vector.load %arg18[%c16_169, %c0_170] : memref<64x512xf32, #tpu.memory_space<vmem>>, vector<8x512xf32>
    %587 = arith.truncf %585 : vector<8x128xf32> to vector<8x128xbf16>
    %cst_171 = arith.constant dense<0.000000e+00> : vector<8x512xf32>
    %588 = tpu.matmul %587, %530, %cst_171 {dimension_numbers = #tpu.dot_dimension_numbers<[1], [0], [0], [1], [0, 0, 1, 1], [], []>} : vector<8x128xbf16>, vector<128x512xbf16>, vector<8x512xf32> -> vector<8x512xf32>
    %589 = arith.addf %586, %588 : vector<8x512xf32>
    %590 = vector.extract_strided_slice %589 {offsets = [0, 0], sizes = [8, 128], strides = [1, 1]} : vector<8x512xf32> to vector<8x128xf32>
    %591 = arith.negf %590 : vector<8x128xf32>
    %592 = math.exp %591 : vector<8x128xf32>
    %cst_172 = arith.constant 1.000000e+00 : f32
    %593 = vector.broadcast %cst_172 : f32 to vector<8x128xf32>
    %594 = arith.addf %593, %592 : vector<8x128xf32>
    %595 = arith.divf %593, %594 : vector<8x128xf32>
    %596 = vector.extract_strided_slice %589 {offsets = [0, 128], sizes = [8, 128], strides = [1, 1]} : vector<8x512xf32> to vector<8x128xf32>
    %597 = arith.negf %596 : vector<8x128xf32>
    %598 = math.exp %597 : vector<8x128xf32>
    %cst_173 = arith.constant 1.000000e+00 : f32
    %599 = vector.broadcast %cst_173 : f32 to vector<8x128xf32>
    %600 = arith.addf %599, %598 : vector<8x128xf32>
    %601 = arith.divf %599, %600 : vector<8x128xf32>
    %602 = vector.extract_strided_slice %589 {offsets = [0, 256], sizes = [8, 128], strides = [1, 1]} : vector<8x512xf32> to vector<8x128xf32>
    %603 = math.tanh %602 : vector<8x128xf32>
    %604 = vector.extract_strided_slice %589 {offsets = [0, 384], sizes = [8, 128], strides = [1, 1]} : vector<8x512xf32> to vector<8x128xf32>
    %605 = arith.negf %604 : vector<8x128xf32>
    %606 = math.exp %605 : vector<8x128xf32>
    %cst_174 = arith.constant 1.000000e+00 : f32
    %607 = vector.broadcast %cst_174 : f32 to vector<8x128xf32>
    %608 = arith.addf %607, %606 : vector<8x128xf32>
    %609 = arith.divf %607, %608 : vector<8x128xf32>
    %610 = arith.mulf %601, %583 : vector<8x128xf32>
    %611 = arith.mulf %595, %603 : vector<8x128xf32>
    %612 = arith.addf %610, %611 : vector<8x128xf32>
    %613 = math.tanh %612 : vector<8x128xf32>
    %614 = arith.mulf %609, %613 : vector<8x128xf32>
    %c24_175 = arith.constant 24 : index
    %c0_176 = arith.constant 0 : index
    %615 = vector.load %arg18[%c24_175, %c0_176] : memref<64x512xf32, #tpu.memory_space<vmem>>, vector<8x512xf32>
    %616 = arith.truncf %614 : vector<8x128xf32> to vector<8x128xbf16>
    %cst_177 = arith.constant dense<0.000000e+00> : vector<8x512xf32>
    %617 = tpu.matmul %616, %530, %cst_177 {dimension_numbers = #tpu.dot_dimension_numbers<[1], [0], [0], [1], [0, 0, 1, 1], [], []>} : vector<8x128xbf16>, vector<128x512xbf16>, vector<8x512xf32> -> vector<8x512xf32>
    %618 = arith.addf %615, %617 : vector<8x512xf32>
    %619 = vector.extract_strided_slice %618 {offsets = [0, 0], sizes = [8, 128], strides = [1, 1]} : vector<8x512xf32> to vector<8x128xf32>
    %620 = arith.negf %619 : vector<8x128xf32>
    %621 = math.exp %620 : vector<8x128xf32>
    %cst_178 = arith.constant 1.000000e+00 : f32
    %622 = vector.broadcast %cst_178 : f32 to vector<8x128xf32>
    %623 = arith.addf %622, %621 : vector<8x128xf32>
    %624 = arith.divf %622, %623 : vector<8x128xf32>
    %625 = vector.extract_strided_slice %618 {offsets = [0, 128], sizes = [8, 128], strides = [1, 1]} : vector<8x512xf32> to vector<8x128xf32>
    %626 = arith.negf %625 : vector<8x128xf32>
    %627 = math.exp %626 : vector<8x128xf32>
    %cst_179 = arith.constant 1.000000e+00 : f32
    %628 = vector.broadcast %cst_179 : f32 to vector<8x128xf32>
    %629 = arith.addf %628, %627 : vector<8x128xf32>
    %630 = arith.divf %628, %629 : vector<8x128xf32>
    %631 = vector.extract_strided_slice %618 {offsets = [0, 256], sizes = [8, 128], strides = [1, 1]} : vector<8x512xf32> to vector<8x128xf32>
    %632 = math.tanh %631 : vector<8x128xf32>
    %633 = vector.extract_strided_slice %618 {offsets = [0, 384], sizes = [8, 128], strides = [1, 1]} : vector<8x512xf32> to vector<8x128xf32>
    %634 = arith.negf %633 : vector<8x128xf32>
    %635 = math.exp %634 : vector<8x128xf32>
    %cst_180 = arith.constant 1.000000e+00 : f32
    %636 = vector.broadcast %cst_180 : f32 to vector<8x128xf32>
    %637 = arith.addf %636, %635 : vector<8x128xf32>
    %638 = arith.divf %636, %637 : vector<8x128xf32>
    %639 = arith.mulf %630, %612 : vector<8x128xf32>
    %640 = arith.mulf %624, %632 : vector<8x128xf32>
    %641 = arith.addf %639, %640 : vector<8x128xf32>
    %642 = math.tanh %641 : vector<8x128xf32>
    %643 = arith.mulf %638, %642 : vector<8x128xf32>
    %c32_181 = arith.constant 32 : index
    %c0_182 = arith.constant 0 : index
    %644 = vector.load %arg18[%c32_181, %c0_182] : memref<64x512xf32, #tpu.memory_space<vmem>>, vector<8x512xf32>
    %645 = arith.truncf %643 : vector<8x128xf32> to vector<8x128xbf16>
    %cst_183 = arith.constant dense<0.000000e+00> : vector<8x512xf32>
    %646 = tpu.matmul %645, %530, %cst_183 {dimension_numbers = #tpu.dot_dimension_numbers<[1], [0], [0], [1], [0, 0, 1, 1], [], []>} : vector<8x128xbf16>, vector<128x512xbf16>, vector<8x512xf32> -> vector<8x512xf32>
    %647 = arith.addf %644, %646 : vector<8x512xf32>
    %648 = vector.extract_strided_slice %647 {offsets = [0, 0], sizes = [8, 128], strides = [1, 1]} : vector<8x512xf32> to vector<8x128xf32>
    %649 = arith.negf %648 : vector<8x128xf32>
    %650 = math.exp %649 : vector<8x128xf32>
    %cst_184 = arith.constant 1.000000e+00 : f32
    %651 = vector.broadcast %cst_184 : f32 to vector<8x128xf32>
    %652 = arith.addf %651, %650 : vector<8x128xf32>
    %653 = arith.divf %651, %652 : vector<8x128xf32>
    %654 = vector.extract_strided_slice %647 {offsets = [0, 128], sizes = [8, 128], strides = [1, 1]} : vector<8x512xf32> to vector<8x128xf32>
    %655 = arith.negf %654 : vector<8x128xf32>
    %656 = math.exp %655 : vector<8x128xf32>
    %cst_185 = arith.constant 1.000000e+00 : f32
    %657 = vector.broadcast %cst_185 : f32 to vector<8x128xf32>
    %658 = arith.addf %657, %656 : vector<8x128xf32>
    %659 = arith.divf %657, %658 : vector<8x128xf32>
    %660 = vector.extract_strided_slice %647 {offsets = [0, 256], sizes = [8, 128], strides = [1, 1]} : vector<8x512xf32> to vector<8x128xf32>
    %661 = math.tanh %660 : vector<8x128xf32>
    %662 = vector.extract_strided_slice %647 {offsets = [0, 384], sizes = [8, 128], strides = [1, 1]} : vector<8x512xf32> to vector<8x128xf32>
    %663 = arith.negf %662 : vector<8x128xf32>
    %664 = math.exp %663 : vector<8x128xf32>
    %cst_186 = arith.constant 1.000000e+00 : f32
    %665 = vector.broadcast %cst_186 : f32 to vector<8x128xf32>
    %666 = arith.addf %665, %664 : vector<8x128xf32>
    %667 = arith.divf %665, %666 : vector<8x128xf32>
    %668 = arith.mulf %659, %641 : vector<8x128xf32>
    %669 = arith.mulf %653, %661 : vector<8x128xf32>
    %670 = arith.addf %668, %669 : vector<8x128xf32>
    %671 = math.tanh %670 : vector<8x128xf32>
    %672 = arith.mulf %667, %671 : vector<8x128xf32>
    %c40_187 = arith.constant 40 : index
    %c0_188 = arith.constant 0 : index
    %673 = vector.load %arg18[%c40_187, %c0_188] : memref<64x512xf32, #tpu.memory_space<vmem>>, vector<8x512xf32>
    %674 = arith.truncf %672 : vector<8x128xf32> to vector<8x128xbf16>
    %cst_189 = arith.constant dense<0.000000e+00> : vector<8x512xf32>
    %675 = tpu.matmul %674, %530, %cst_189 {dimension_numbers = #tpu.dot_dimension_numbers<[1], [0], [0], [1], [0, 0, 1, 1], [], []>} : vector<8x128xbf16>, vector<128x512xbf16>, vector<8x512xf32> -> vector<8x512xf32>
    %676 = arith.addf %673, %675 : vector<8x512xf32>
    %677 = vector.extract_strided_slice %676 {offsets = [0, 0], sizes = [8, 128], strides = [1, 1]} : vector<8x512xf32> to vector<8x128xf32>
    %678 = arith.negf %677 : vector<8x128xf32>
    %679 = math.exp %678 : vector<8x128xf32>
    %cst_190 = arith.constant 1.000000e+00 : f32
    %680 = vector.broadcast %cst_190 : f32 to vector<8x128xf32>
    %681 = arith.addf %680, %679 : vector<8x128xf32>
    %682 = arith.divf %680, %681 : vector<8x128xf32>
    %683 = vector.extract_strided_slice %676 {offsets = [0, 128], sizes = [8, 128], strides = [1, 1]} : vector<8x512xf32> to vector<8x128xf32>
    %684 = arith.negf %683 : vector<8x128xf32>
    %685 = math.exp %684 : vector<8x128xf32>
    %cst_191 = arith.constant 1.000000e+00 : f32
    %686 = vector.broadcast %cst_191 : f32 to vector<8x128xf32>
    %687 = arith.addf %686, %685 : vector<8x128xf32>
    %688 = arith.divf %686, %687 : vector<8x128xf32>
    %689 = vector.extract_strided_slice %676 {offsets = [0, 256], sizes = [8, 128], strides = [1, 1]} : vector<8x512xf32> to vector<8x128xf32>
    %690 = math.tanh %689 : vector<8x128xf32>
    %691 = vector.extract_strided_slice %676 {offsets = [0, 384], sizes = [8, 128], strides = [1, 1]} : vector<8x512xf32> to vector<8x128xf32>
    %692 = arith.negf %691 : vector<8x128xf32>
    %693 = math.exp %692 : vector<8x128xf32>
    %cst_192 = arith.constant 1.000000e+00 : f32
    %694 = vector.broadcast %cst_192 : f32 to vector<8x128xf32>
    %695 = arith.addf %694, %693 : vector<8x128xf32>
    %696 = arith.divf %694, %695 : vector<8x128xf32>
    %697 = arith.mulf %688, %670 : vector<8x128xf32>
    %698 = arith.mulf %682, %690 : vector<8x128xf32>
    %699 = arith.addf %697, %698 : vector<8x128xf32>
    %700 = math.tanh %699 : vector<8x128xf32>
    %701 = arith.mulf %696, %700 : vector<8x128xf32>
    %c48_193 = arith.constant 48 : index
    %c0_194 = arith.constant 0 : index
    %702 = vector.load %arg18[%c48_193, %c0_194] : memref<64x512xf32, #tpu.memory_space<vmem>>, vector<8x512xf32>
    %703 = arith.truncf %701 : vector<8x128xf32> to vector<8x128xbf16>
    %cst_195 = arith.constant dense<0.000000e+00> : vector<8x512xf32>
    %704 = tpu.matmul %703, %530, %cst_195 {dimension_numbers = #tpu.dot_dimension_numbers<[1], [0], [0], [1], [0, 0, 1, 1], [], []>} : vector<8x128xbf16>, vector<128x512xbf16>, vector<8x512xf32> -> vector<8x512xf32>
    %705 = arith.addf %702, %704 : vector<8x512xf32>
    %706 = vector.extract_strided_slice %705 {offsets = [0, 0], sizes = [8, 128], strides = [1, 1]} : vector<8x512xf32> to vector<8x128xf32>
    %707 = arith.negf %706 : vector<8x128xf32>
    %708 = math.exp %707 : vector<8x128xf32>
    %cst_196 = arith.constant 1.000000e+00 : f32
    %709 = vector.broadcast %cst_196 : f32 to vector<8x128xf32>
    %710 = arith.addf %709, %708 : vector<8x128xf32>
    %711 = arith.divf %709, %710 : vector<8x128xf32>
    %712 = vector.extract_strided_slice %705 {offsets = [0, 128], sizes = [8, 128], strides = [1, 1]} : vector<8x512xf32> to vector<8x128xf32>
    %713 = arith.negf %712 : vector<8x128xf32>
    %714 = math.exp %713 : vector<8x128xf32>
    %cst_197 = arith.constant 1.000000e+00 : f32
    %715 = vector.broadcast %cst_197 : f32 to vector<8x128xf32>
    %716 = arith.addf %715, %714 : vector<8x128xf32>
    %717 = arith.divf %715, %716 : vector<8x128xf32>
    %718 = vector.extract_strided_slice %705 {offsets = [0, 256], sizes = [8, 128], strides = [1, 1]} : vector<8x512xf32> to vector<8x128xf32>
    %719 = math.tanh %718 : vector<8x128xf32>
    %720 = vector.extract_strided_slice %705 {offsets = [0, 384], sizes = [8, 128], strides = [1, 1]} : vector<8x512xf32> to vector<8x128xf32>
    %721 = arith.negf %720 : vector<8x128xf32>
    %722 = math.exp %721 : vector<8x128xf32>
    %cst_198 = arith.constant 1.000000e+00 : f32
    %723 = vector.broadcast %cst_198 : f32 to vector<8x128xf32>
    %724 = arith.addf %723, %722 : vector<8x128xf32>
    %725 = arith.divf %723, %724 : vector<8x128xf32>
    %726 = arith.mulf %717, %699 : vector<8x128xf32>
    %727 = arith.mulf %711, %719 : vector<8x128xf32>
    %728 = arith.addf %726, %727 : vector<8x128xf32>
    %729 = math.tanh %728 : vector<8x128xf32>
    %730 = arith.mulf %725, %729 : vector<8x128xf32>
    %c56_199 = arith.constant 56 : index
    %c0_200 = arith.constant 0 : index
    %731 = vector.load %arg18[%c56_199, %c0_200] : memref<64x512xf32, #tpu.memory_space<vmem>>, vector<8x512xf32>
    %732 = arith.truncf %730 : vector<8x128xf32> to vector<8x128xbf16>
    %cst_201 = arith.constant dense<0.000000e+00> : vector<8x512xf32>
    %733 = tpu.matmul %732, %530, %cst_201 {dimension_numbers = #tpu.dot_dimension_numbers<[1], [0], [0], [1], [0, 0, 1, 1], [], []>} : vector<8x128xbf16>, vector<128x512xbf16>, vector<8x512xf32> -> vector<8x512xf32>
    %734 = arith.addf %731, %733 : vector<8x512xf32>
    %735 = vector.extract_strided_slice %734 {offsets = [0, 0], sizes = [8, 128], strides = [1, 1]} : vector<8x512xf32> to vector<8x128xf32>
    %736 = arith.negf %735 : vector<8x128xf32>
    %737 = math.exp %736 : vector<8x128xf32>
    %cst_202 = arith.constant 1.000000e+00 : f32
    %738 = vector.broadcast %cst_202 : f32 to vector<8x128xf32>
    %739 = arith.addf %738, %737 : vector<8x128xf32>
    %740 = arith.divf %738, %739 : vector<8x128xf32>
    %741 = vector.extract_strided_slice %734 {offsets = [0, 128], sizes = [8, 128], strides = [1, 1]} : vector<8x512xf32> to vector<8x128xf32>
    %742 = arith.negf %741 : vector<8x128xf32>
    %743 = math.exp %742 : vector<8x128xf32>
    %cst_203 = arith.constant 1.000000e+00 : f32
    %744 = vector.broadcast %cst_203 : f32 to vector<8x128xf32>
    %745 = arith.addf %744, %743 : vector<8x128xf32>
    %746 = arith.divf %744, %745 : vector<8x128xf32>
    %747 = vector.extract_strided_slice %734 {offsets = [0, 256], sizes = [8, 128], strides = [1, 1]} : vector<8x512xf32> to vector<8x128xf32>
    %748 = math.tanh %747 : vector<8x128xf32>
    %749 = vector.extract_strided_slice %734 {offsets = [0, 384], sizes = [8, 128], strides = [1, 1]} : vector<8x512xf32> to vector<8x128xf32>
    %750 = arith.negf %749 : vector<8x128xf32>
    %751 = math.exp %750 : vector<8x128xf32>
    %cst_204 = arith.constant 1.000000e+00 : f32
    %752 = vector.broadcast %cst_204 : f32 to vector<8x128xf32>
    %753 = arith.addf %752, %751 : vector<8x128xf32>
    %754 = arith.divf %752, %753 : vector<8x128xf32>
    %755 = arith.mulf %746, %728 : vector<8x128xf32>
    %756 = arith.mulf %740, %748 : vector<8x128xf32>
    %757 = arith.addf %755, %756 : vector<8x128xf32>
    %758 = math.tanh %757 : vector<8x128xf32>
    %759 = arith.mulf %754, %758 : vector<8x128xf32>
    %760 = tpu.concatenate %759, %529 in 1 : vector<8x128xf32>, vector<8x128xf32> -> vector<8x256xf32>
    %c0_205 = arith.constant 0 : index
    %c0_206 = arith.constant 0 : index
    %761 = vector.load %arg12[%c0_205, %c0_206] : memref<256x2xf32, #tpu.memory_space<vmem>>, vector<256x2xf32>
    %cst_207 = arith.constant dense<0.000000e+00> : vector<8x2xf32>
    %762 = tpu.matmul %760, %761, %cst_207 {dimension_numbers = #tpu.dot_dimension_numbers<[1], [0], [0], [1], [0, 0, 1, 1], [], []>} : vector<8x256xf32>, vector<256x2xf32>, vector<8x2xf32> -> vector<8x2xf32>
    %c0_208 = arith.constant 0 : index
    %c0_209 = arith.constant 0 : index
    %763 = vector.load %arg13[%c0_208, %c0_209] : memref<1x2xf32, #tpu.memory_space<vmem>>, vector<1x2xf32>
    %764 = vector.broadcast %763 : vector<1x2xf32> to vector<8x2xf32>
    %765 = arith.addf %762, %764 : vector<8x2xf32>
    %c0_210 = arith.constant 0 : index
    %c0_211 = arith.constant 0 : index
    %766 = vector.load %arg14[%c0_210, %c0_211] : memref<8x2xf32, #tpu.memory_space<vmem>>, vector<8x2xf32>
    tpu.vector_store %arg14[%c0_210, %c0_211], %765 {strides = array<i32>} : memref<8x2xf32, #tpu.memory_space<vmem>>, vector<8x2xf32>,
    return
  }
}

</mosaic_0001>

<bundles_post_ra>
// kernel: ymodel_forward.1
= control target key start
LH: loop header
LB: loop body
LE: loop exit
PB: predicated region body
PF: predicated region fallthrough
CT: control target
= control target key end

     0   :  { %19 = vsyncpa [#allocation7], 0  ;;  %s8688_s0 = inlined_call_operand.vmem [shape: bf16[64,128], index: 0, kind: input, shape index: {}]   ;;  %s8689_s1 = inlined_call_operand.vmem [shape: bf16[128,512], index: 1, kind: input, shape index: {}]   ;;  %s8690_s2 = inlined_call_operand.hbm [shape: bf16[128,512], index: 2, kind: input, shape index: {}]   ;;  %s8691_s3 = inlined_call_operand.hbm [shape: bf16[128,512], index: 3, kind: input, shape index: {}]   ;;  %s8692_s4 = inlined_call_operand.hbm [shape: bf16[128,512], index: 4, kind: input, shape index: {}]   ;;  %s8693_s5 = inlined_call_operand.vmem [shape: f32[1,512], index: 5, kind: input, shape index: {}]   ;;  %s8694_s6 = inlined_call_operand.vmem [shape: f32[1,512], index: 6, kind: input, shape index: {}]   ;;  %s8695_s7 = inlined_call_operand.hbm [shape: bf16[256,512], index: 7, kind: input, shape index: {}]   ;;  %s8696_s8 = inlined_call_operand.hbm [shape: bf16[256,512], index: 8, kind: input, shape index: {}]   ;;  %s8697_s9 = inlined_call_operand.hbm [shape: bf16[128,512], index: 9, kind: input, shape index: {}]   ;;  %s8698_s10 = inlined_call_operand.vmem [shape: f32[1,512], index: 10, kind: input, shape index: {}]   ;;  %s8699_s11 = inlined_call_operand.vmem [shape: f32[1,512], index: 11, kind: input, shape index: {}]   ;;  %s8700_s12 = inlined_call_operand.vmem [shape: f32[256,2], index: 12, kind: input, shape index: {}]   ;;  %s8701_s13 = inlined_call_operand.vmem [shape: f32[1,2], index: 13, kind: input, shape index: {}]   ;;  %s8702_s14 = inlined_call_operand.vmem [shape: f32[8,2], index: 14, kind: output, shape index: {}]  }
   0x1   :  { %20 = vsyncpa [#allocation9], 0 }
   0x2   :  { %21 = vsyncpa [#allocation12], 0 }
   0x3   :  { %22 = vsyncpa [#allocation15], 0  ;;  %s6752_s29 = smov [#allocation8]   ;;  %s6753_s15 = smov [#allocation11]  }
   0x4   :  { %s44_s30 = sshll.u32 %s6752_s29, 4  ;;  %s72_s16 = sshll.u32 %s6753_s15, 4  ;;  %s45_s30 = int_to_ptr.vmem [resolvable:$true] %s44_s30  ;;  %s73_s16 = int_to_ptr.vmem [resolvable:$true] %s72_s16 }
   0x5   :  { %s6632_s17 = scalar_lea.vmem %s45_s30, 4096  ;;  %p6637_p1 = scmp.lt.s32.totalorder %s45_s30, %s45_s30 }
   0x6   :  { %p6633_p0 = scmp.ne.s32.totalorder %s45_s30, %s6632_s17  ;;  %p6638_p2 = scmp.lt.s32.totalorder %s6632_s17, %s6632_s17 }
   0x8   :  { %p6639_p3 = por %p6638_p2, %p6637_p1 }
   0xa   :  { %p6640_p4 = pnand %p6639_p3, %p6633_p0 }
   0xc   :  { %6643 = shalt.err (!%p6640_p4)
}
   0xd   :  { %s6754_s18 = smov 256   ;;  %s6755_s19 = smov 16  }
   0xe   :  { %50 = dma.hbm_to_vmem [thread:$0]  %s8691_s3, 4096, %s45_s30, [#allocation9], %s6754_s18, %s6754_s18, %s6755_s19  }
   0xf   :  { %s6652_s22 = scalar_lea.vmem %s73_s16, 8192  ;;  %p6657_p6 = scmp.lt.s32.totalorder %s73_s16, %s73_s16 }
  0x10   :  { %p6653_p5 = scmp.ne.s32.totalorder %s73_s16, %s6652_s22  ;;  %p6658_p7 = scmp.lt.s32.totalorder %s6652_s22, %s6652_s22 }
  0x12   :  { %p6659_p8 = por %p6658_p7, %p6657_p6 }
  0x14   :  { %p6660_p9 = pnand %p6659_p8, %p6653_p5 }
  0x16   :  { %6663 = shalt.err (!%p6660_p9)
}
  0x17   :  { %78 = dma.hbm_to_vmem [thread:$0]  %s8695_s7, 8192, %s73_s16, [#allocation12], %s6754_s18, %s6754_s18, %s6755_s19  }
  0x18   :  { %s6756_s25 = smov [#allocation6]   ;;  %s6757_s27 = smov [#allocation10]  }
  0x19   :  { %s32_s26 = sshll.u32 %s6756_s25, 4  ;;  %s56_s28 = sshll.u32 %s6757_s27, 4  ;;  %s33_s26 = int_to_ptr.vmem [resolvable:$true] %s32_s26  ;;  %s57_s28 = int_to_ptr.vmem [resolvable:$true] %s56_s28 }
  0x1a   :  { %s6672_s3 = scalar_lea.vmem %s33_s26, 4096  ;;  %p6677_p11 = scmp.lt.s32.totalorder %s33_s26, %s33_s26 }
  0x1b   :  { %p6673_p10 = scmp.ne.s32.totalorder %s33_s26, %s6672_s3  ;;  %p6678_p12 = scmp.lt.s32.totalorder %s6672_s3, %s6672_s3 }
  0x1d   :  { %p6679_p13 = por %p6678_p12, %p6677_p11 }
  0x1f   :  { %p6680_p0 = pnand %p6679_p13, %p6673_p10 }
  0x21   :  { %6683 = shalt.err (!%p6680_p0)
}
  0x22   :  { %38 = dma.hbm_to_vmem [thread:$0]  %s8690_s2, 4096, %s33_s26, [#allocation7], %s6754_s18, %s6754_s18, %s6755_s19  }
  0x23   :  { %s6692_s7 = scalar_lea.vmem %s57_s28, 4096  ;;  %p6697_p2 = scmp.lt.s32.totalorder %s57_s28, %s57_s28 }
  0x24   :  { %p6693_p1 = scmp.ne.s32.totalorder %s57_s28, %s6692_s7  ;;  %p6698_p3 = scmp.lt.s32.totalorder %s6692_s7, %s6692_s7 }
  0x26   :  { %p6699_p4 = por %p6698_p3, %p6697_p2 }
  0x28   :  { %p6700_p5 = pnand %p6699_p4, %p6693_p1 }
  0x2a   :  { %6703 = shalt.err (!%p6700_p5)
}
  0x2b   :  { %62 = dma.hbm_to_vmem [thread:$0]  %s8692_s4, 4096, %s57_s28, [#allocation9], %s6754_s18, %s6754_s18, %s6755_s19  }
  0x2c   :  { %s6758_s17 = smov [#allocation13]   ;;  %s6759_s21 = smov [#allocation14]  }
  0x2d   :  { %s84_s20 = sshll.u32 %s6758_s17, 4  ;;  %s96_s22 = sshll.u32 %s6759_s21, 4  ;;  %s85_s20 = int_to_ptr.vmem [resolvable:$true] %s84_s20  ;;  %s97_s22 = int_to_ptr.vmem [resolvable:$true] %s96_s22 }
  0x2e   :  { %s6712_s2 = scalar_lea.vmem %s85_s20, 8192  ;;  %p6717_p7 = scmp.lt.s32.totalorder %s85_s20, %s85_s20 }
  0x2f   :  { %p6713_p6 = scmp.ne.s32.totalorder %s85_s20, %s6712_s2  ;;  %p6718_p8 = scmp.lt.s32.totalorder %s6712_s2, %s6712_s2 }
  0x31   :  { %p6719_p9 = por %p6718_p8, %p6717_p7 }
  0x33   :  { %p6720_p10 = pnand %p6719_p9, %p6713_p6 }
  0x35   :  { %6723 = shalt.err (!%p6720_p10)
}
  0x36   :  { %90 = dma.hbm_to_vmem [thread:$0]  %s8696_s8, 8192, %s85_s20, [#allocation12], %s6754_s18, %s6754_s18, %s6755_s19  }
  0x37   :  { %s6732_s4 = scalar_lea.vmem %s97_s22, 4096  ;;  %p6737_p12 = scmp.lt.s32.totalorder %s97_s22, %s97_s22 }
  0x38   :  { %p6733_p11 = scmp.ne.s32.totalorder %s97_s22, %s6732_s4  ;;  %p6738_p13 = scmp.lt.s32.totalorder %s6732_s4, %s6732_s4 }
  0x3a   :  { %p6739_p0 = por %p6738_p13, %p6737_p12 }
  0x3c   :  { %p6740_p1 = pnand %p6739_p0, %p6733_p11 }
  0x3e   :  { %6743 = shalt.err (!%p6740_p1)
}
  0x3f   :  { %102 = dma.hbm_to_vmem [thread:$0]  %s8697_s9, 4096, %s97_s22, [#allocation15], %s6754_s18, %s6754_s18, %s6755_s19  }
  0x40   :  { %6744 = dma.done.wait [#allocation7], 4096  }
  0x41   :  { %6745 = vsyncadd [#allocation7], 4294963200 }
  0x42   :  { %6746 = dma.done.wait [#allocation9], 8192  }
  0x43   :  { %6747 = vsyncadd [#allocation9], 4294959104 }
  0x44   :  { %6748 = dma.done.wait [#allocation12], 16384  }
  0x45   :  { %6749 = vsyncadd [#allocation12], 4294950912 }
  0x46   :  { %6750 = dma.done.wait [#allocation15], 4096  }
  0x47   :  { %6751 = vsyncadd [#allocation15], 4294963200  ;;  %v8703_v0 = vmov 0   ;;  %v5692_v1 = vld [vmem:[%s8689_s1 + $0xe4] ss:$16 sps:$4 sm:$0xff]   ;;  %v6980_v41 = vld [vmem:[%s8688_s0 + $0x8] sm:$0xff]  }
  0x48   :  { %408 = vmatprep.mubr.bf16.mxu0 %v8703_v0  ;;  %481 = vmatprep.mubr.bf16.mxu1 %v8703_v0  ;;  %v5694_v2 = vld [vmem:[%s8689_s1 + $0xe0] ss:$16 sps:$4 sm:$0xff]   ;;  %v5695_v3 = vld [vmem:[%s8689_s1 + $0xc4] ss:$16 sps:$4 sm:$0xff]   ;;  %v5704_v6 = vld [vmem:[%s8689_s1 + $0xec] ss:$16 sps:$4 sm:$0xff]  }
  0x49   :  { %376 = vmatprep.subr.bf16.mxu0 %v5692_v1  ;;  %v5697_v4 = vld [vmem:[%s8689_s1 + $0xc0] ss:$16 sps:$4 sm:$0xff]   ;;  %v5698_v5 = vld [vmem:[%s8689_s1 + $0xa4] ss:$16 sps:$4 sm:$0xff]   ;;  %v5706_v7 = vld [vmem:[%s8689_s1 + $0xe8] ss:$16 sps:$4 sm:$0xff]   ;;  %449 = vmatprep.subr.bf16.mxu1 %v5704_v6 }
  0x4a   :  { %377 = vmatpush1.bf16.msra.mxu0 %v5694_v2  ;;  %v5700_v8 = vld [vmem:[%s8689_s1 + $0xa0] ss:$16 sps:$4 sm:$0xff]   ;;  %v5701_v9 = vld [vmem:[%s8689_s1 + $0x84] ss:$16 sps:$4 sm:$0xff]   ;;  %v5710_v10 = vld [vmem:[%s8689_s1 + $0xcc] ss:$16 sps:$4 sm:$0xff]   ;;  %450 = vmatpush1.bf16.msra.mxu1 %v5706_v7 }
  0x4b   :  { %378 = vmatprep.subr.bf16.mxu0 %v5695_v3  ;;  %v5712_v11 = vld [vmem:[%s8689_s1 + $0xc8] ss:$16 sps:$4 sm:$0xff]   ;;  %451 = vmatprep.subr.bf16.mxu1 %v5710_v10  ;;  %v5703_v12 = vld [vmem:[%s8689_s1 + $0x80] ss:$16 sps:$4 sm:$0xff]   ;;  %v5716_v13 = vld [vmem:[%s8689_s1 + $0xac] ss:$16 sps:$4 sm:$0xff]  }
  0x4c   :  { %v5707_v14 = vld [vmem:[%s8689_s1 + $0x64] ss:$16 sps:$4 sm:$0xff]   ;;  %v5718_v15 = vld [vmem:[%s8689_s1 + $0xa8] ss:$16 sps:$4 sm:$0xff]   ;;  %v5722_v16 = vld [vmem:[%s8689_s1 + $0x8c] ss:$16 sps:$4 sm:$0xff]  }
  0x4d   :  { %v5709_v17 = vld [vmem:[%s8689_s1 + $0x60] ss:$16 sps:$4 sm:$0xff]   ;;  %v5713_v18 = vld [vmem:[%s8689_s1 + $0x44] ss:$16 sps:$4 sm:$0xff]   ;;  %v5724_v19 = vld [vmem:[%s8689_s1 + $0x88] ss:$16 sps:$4 sm:$0xff]  }
  0x4e   :  { %379 = vmatpush1.bf16.msra.mxu0 %v5697_v4  ;;  %452 = vmatpush1.bf16.msra.mxu1 %v5712_v11  ;;  %v5728_v20 = vld [vmem:[%s8689_s1 + $0x6c] ss:$16 sps:$4 sm:$0xff]   ;;  %v5715_v21 = vld [vmem:[%s8689_s1 + $0x40] ss:$16 sps:$4 sm:$0xff]   ;;  %v5719_v22 = vld [vmem:[%s8689_s1 + $0x24] ss:$16 sps:$4 sm:$0xff]  }
  0x4f   :  { %380 = vmatprep.subr.bf16.mxu0 %v5698_v5  ;;  %453 = vmatprep.subr.bf16.mxu1 %v5716_v13  ;;  %v5730_v23 = vld [vmem:[%s8689_s1 + $0x68] ss:$16 sps:$4 sm:$0xff]   ;;  %v5735_v24 = vld [vmem:[%s8689_s1 + $0x4c] ss:$16 sps:$4 sm:$0xff]   ;;  %v5721_v25 = vld [vmem:[%s8689_s1 + $0x20] ss:$16 sps:$4 sm:$0xff]  }
  0x50   :  { %v5725_v26 = vld [vmem:[%s8689_s1 + $0x4] ss:$16 sps:$4 sm:$0xff]   ;;  %v5737_v27 = vld [vmem:[%s8689_s1 + $0x48] ss:$16 sps:$4 sm:$0xff]   ;;  %v5741_v28 = vld [vmem:[%s8689_s1 + $0x2c] ss:$16 sps:$4 sm:$0xff]  }
  0x51   :  { %v5727_v29 = vld [vmem:[%s8689_s1] ss:$16 sps:$4 sm:$0xff]   ;;  %v5734_v30 = vld [vmem:[#allocation6 + $0xe4] ss:$16 sps:$4 sm:$0xff]   ;;  %v5743_v32 = vld [vmem:[%s8689_s1 + $0x28] ss:$16 sps:$4 sm:$0xff]  }
  0x52   :  { %381 = vmatpush1.bf16.msra.mxu0 %v5700_v8  ;;  %454 = vmatpush1.bf16.msra.mxu1 %v5718_v15  ;;  %v6964_v31 = vld [vmem:[%s8688_s0] sm:$0xff]   ;;  %v5748_v33 = vld [vmem:[%s8689_s1 + $0xc] ss:$16 sps:$4 sm:$0xff]   ;;  %v5750_v36 = vld [vmem:[%s8689_s1 + $0x8] ss:$16 sps:$4 sm:$0xff]   ;;  %vm5270_vm0 = vcmask 15360  }
  0x53   :  { %382 = vmatprep.subr.bf16.mxu0 %v5701_v9  ;;  %455 = vmatprep.subr.bf16.mxu1 %v5722_v16  ;;  %v5732_v34 = vld [vmem:[#allocation6 + $0xe0] ss:$16 sps:$4 sm:$0xff]   ;;  %v5740_v35 = vld [vmem:[#allocation6 + $0xc4] ss:$16 sps:$4 sm:$0xff]   ;;  %v5756_v37 = vld [vmem:[#allocation6 + $0xec] ss:$16 sps:$4 sm:$0xff]  }
  0x54   :  { %v5738_v38 = vld [vmem:[#allocation6 + $0xc0] ss:$16 sps:$4 sm:$0xff]   ;;  %v5747_v39 = vld [vmem:[#allocation6 + $0xa4] ss:$16 sps:$4 sm:$0xff]   ;;  %v5754_v40 = vld [vmem:[#allocation6 + $0xe8] ss:$16 sps:$4 sm:$0xff]  }
  0x55   :  { %v5763_v42 = vld [vmem:[#allocation6 + $0xcc] ss:$16 sps:$4 sm:$0xff]   ;;  %v5745_v43 = vld [vmem:[#allocation6 + $0xa0] ss:$16 sps:$4 sm:$0xff]   ;;  %v5753_v44 = vld [vmem:[#allocation6 + $0x84] ss:$16 sps:$4 sm:$0xff]  }
  0x56   :  { %383 = vmatpush1.bf16.msra.mxu0 %v5703_v12  ;;  %456 = vmatpush1.bf16.msra.mxu1 %v5724_v19  ;;  %v5761_v45 = vld [vmem:[#allocation6 + $0xc8] ss:$16 sps:$4 sm:$0xff]   ;;  %v5769_v46 = vld [vmem:[#allocation6 + $0xac] ss:$16 sps:$4 sm:$0xff]   ;;  %v5751_v47 = vld [vmem:[#allocation6 + $0x80] ss:$16 sps:$4 sm:$0xff]  }
  0x57   :  { %384 = vmatprep.subr.bf16.mxu0 %v5707_v14  ;;  %457 = vmatprep.subr.bf16.mxu1 %v5728_v20  ;;  %v5757_v48 = vld [vmem:[%s8688_s0 + $0x10] sm:$0xff]   ;;  %v5767_v50 = vld [vmem:[#allocation6 + $0xa8] ss:$16 sps:$4 sm:$0xff]   ;;  %v5776_v53 = vld [vmem:[#allocation6 + $0x8c] ss:$16 sps:$4 sm:$0xff]  }
  0x58   :  { %v5760_v49 = vld [vmem:[#allocation6 + $0x64] ss:$16 sps:$4 sm:$0xff]   ;;  %v5758_v51 = vld [vmem:[#allocation6 + $0x60] ss:$16 sps:$4 sm:$0xff]   ;;  %v5774_v54 = vld [vmem:[#allocation6 + $0x88] ss:$16 sps:$4 sm:$0xff]  }
  0x59   :  { %v5766_v52 = vld [vmem:[#allocation6 + $0x44] ss:$16 sps:$4 sm:$0xff]   ;;  %v5782_v55 = vld [vmem:[#allocation6 + $0x6c] ss:$16 sps:$4 sm:$0xff]   ;;  %v5764_v56 = vld [vmem:[#allocation6 + $0x40] ss:$16 sps:$4 sm:$0xff]  }
  0x5a   :  { %385 = vmatpush1.bf16.msra.mxu0 %v5709_v17  ;;  %458 = vmatpush1.bf16.msra.mxu1 %v5730_v23  ;;  %v5773_v57 = vld [vmem:[#allocation6 + $0x24] ss:$16 sps:$4 sm:$0xff]   ;;  %v5780_v58 = vld [vmem:[#allocation6 + $0x68] ss:$16 sps:$4 sm:$0xff]   ;;  %v5785_v60 = vld [vmem:[#allocation6 + $0x4c] ss:$16 sps:$4 sm:$0xff]  }
  0x5b   :  { %386 = vmatprep.subr.bf16.mxu0 %v5713_v18  ;;  %459 = vmatprep.subr.bf16.mxu1 %v5735_v24  ;;  %v5770_v59 = vld [vmem:[%s8688_s0 + $0x18] sm:$0xff]   ;;  %v5771_v61 = vld [vmem:[#allocation6 + $0x20] ss:$16 sps:$4 sm:$0xff]   ;;  %v5779_v62 = vld [vmem:[#allocation6 + $0x4] ss:$16 sps:$4 sm:$0xff]  }
  0x5c   :  { %v5783_v63 = vld [vmem:[#allocation6 + $0x48] ss:$16 sps:$4 sm:$0xff]   ;;  %v5788_v1 = vld [vmem:[#allocation6 + $0x2c] ss:$16 sps:$4 sm:$0xff]   ;;  %v5777_v2 = vld [vmem:[#allocation6] ss:$16 sps:$4 sm:$0xff]  }
  0x5d   :  { %v5786_v3 = vld [vmem:[#allocation6 + $0x28] ss:$16 sps:$4 sm:$0xff]   ;;  %v5791_v4 = vld [vmem:[#allocation6 + $0xc] ss:$16 sps:$4 sm:$0xff]   ;;  %v7010_v6 = vld [vmem:[#allocation8 + $0xe4] ss:$16 sps:$4 sm:$0xff]  }
  0x5e   :  { %387 = vmatpush1.bf16.msra.mxu0 %v5715_v21  ;;  %460 = vmatpush1.bf16.msra.mxu1 %v5737_v27  ;;  %v5789_v5 = vld [vmem:[#allocation6 + $0x8] ss:$16 sps:$4 sm:$0xff]   ;;  %8878 = vst [vmem:[#allocation20_spill] sm:$0xff] %v7010_v6  ;;  %v7012_v7 = vld [vmem:[#allocation8 + $0xec] ss:$16 sps:$4 sm:$0xff]  }
  0x5f   :  { %388 = vmatprep.subr.bf16.mxu0 %v5719_v22  ;;  %461 = vmatprep.subr.bf16.mxu1 %v5741_v28  ;;  %v7014_v8 = vld [vmem:[#allocation8 + $0xe0] ss:$16 sps:$4 sm:$0xff]   ;;  %v7016_v9 = vld [vmem:[#allocation8 + $0xe8] ss:$16 sps:$4 sm:$0xff]   ;;  %v7022_v10 = vld [vmem:[#allocation8 + $0xc4] ss:$16 sps:$4 sm:$0xff]  }
  0x60   :  { %v7024_v11 = vld [vmem:[#allocation8 + $0xcc] ss:$16 sps:$4 sm:$0xff]   ;;  %v7026_v12 = vld [vmem:[#allocation8 + $0xc0] ss:$16 sps:$4 sm:$0xff]   ;;  %v7028_v13 = vld [vmem:[#allocation8 + $0xc8] ss:$16 sps:$4 sm:$0xff]  }
  0x61   :  { %v7034_v14 = vld [vmem:[#allocation8 + $0xa4] ss:$16 sps:$4 sm:$0xff]   ;;  %v7036_v15 = vld [vmem:[#allocation8 + $0xac] ss:$16 sps:$4 sm:$0xff]   ;;  %v7038_v16 = vld [vmem:[#allocation8 + $0xa0] ss:$16 sps:$4 sm:$0xff]  }
  0x62   :  { %389 = vmatpush1.bf16.msra.mxu0 %v5721_v25  ;;  %462 = vmatpush1.bf16.msra.mxu1 %v5743_v32  ;;  %v7040_v17 = vld [vmem:[#allocation8 + $0xa8] ss:$16 sps:$4 sm:$0xff]   ;;  %v7046_v18 = vld [vmem:[#allocation8 + $0x84] ss:$16 sps:$4 sm:$0xff]   ;;  %v7048_v19 = vld [vmem:[#allocation8 + $0x8c] ss:$16 sps:$4 sm:$0xff]  }
  0x63   :  { %390 = vmatprep.subr.bf16.mxu0 %v5725_v26  ;;  %463 = vmatprep.subr.bf16.mxu1 %v5748_v33  ;;  %v7050_v20 = vld [vmem:[#allocation8 + $0x80] ss:$16 sps:$4 sm:$0xff]   ;;  %v7052_v21 = vld [vmem:[#allocation8 + $0x88] ss:$16 sps:$4 sm:$0xff]   ;;  %v7058_v22 = vld [vmem:[#allocation8 + $0x64] ss:$16 sps:$4 sm:$0xff]  }
  0x64   :  { %v7060_v23 = vld [vmem:[#allocation8 + $0x6c] ss:$16 sps:$4 sm:$0xff]   ;;  %v7062_v24 = vld [vmem:[#allocation8 + $0x60] ss:$16 sps:$4 sm:$0xff]   ;;  %v7064_v25 = vld [vmem:[#allocation8 + $0x68] ss:$16 sps:$4 sm:$0xff]  }
  0x65   :  { %v7070_v26 = vld [vmem:[#allocation8 + $0x44] ss:$16 sps:$4 sm:$0xff]   ;;  %v7072_v27 = vld [vmem:[#allocation8 + $0x4c] ss:$16 sps:$4 sm:$0xff]   ;;  %v7074_v28 = vld [vmem:[#allocation8 + $0x40] ss:$16 sps:$4 sm:$0xff]  }
  0x66   :  { %391 = vmatpush1.bf16.msra.mxu0 %v5727_v29  ;;  %464 = vmatpush1.bf16.msra.mxu1 %v5750_v36  ;;  %v7076_v29 = vld [vmem:[#allocation8 + $0x48] ss:$16 sps:$4 sm:$0xff]   ;;  %v7086_v32 = vld [vmem:[#allocation8 + $0x20] ss:$16 sps:$4 sm:$0xff]  }
  0x67   :  { %768 = vmatprep.subr.bf16.mxu0 %v5734_v30  ;;  %841 = vmatprep.subr.bf16.mxu1 %v5756_v37  ;;  %v7082_v30 = vld [vmem:[#allocation8 + $0x24] ss:$16 sps:$4 sm:$0xff]   ;;  %v7088_v33 = vld [vmem:[#allocation8 + $0x28] ss:$16 sps:$4 sm:$0xff]   ;;  %v7098_v36 = vld [vmem:[#allocation8] ss:$16 sps:$4 sm:$0xff]  }
  0x68   :  { %8880 = vst [vmem:[#allocation22_spill] sm:$0xff] %v7098_v36  ;;  %v7100_v37 = vld [vmem:[#allocation8 + $0x8] ss:$16 sps:$4 sm:$0xff]  }
  0x69   :  { %409 = vmatmul.mubr.bf16.vlgmr.msra.gmra.mxu0 %v6964_v31  ;;  %482 = vmatmul.mubr.bf16.vlgmr.msra.gmra.mxu1 %v6964_v31  ;;  %8881 = vst [vmem:[#allocation23_spill] sm:$0xff] %v7100_v37 }
  0x6a   :  { %769 = vmatpush1.bf16.msra.mxu0 %v5732_v34  ;;  %418 = vmatprep.mubr.bf16.mxu0 %v8703_v0  ;;  %v7094_v34 = vld [vmem:[#allocation8 + $0x4] ss:$16 sps:$4 sm:$0xff]  }
  0x6b   :  { %770 = vmatprep.subr.bf16.mxu0 %v5740_v35  ;;  %842 = vmatpush1.bf16.msra.mxu1 %v5754_v40  ;;  %v7096_v35 = vld [vmem:[#allocation8 + $0xc] ss:$16 sps:$4 sm:$0xff]   ;;  %v172_v40 = vlaneseq }
  0x6c   :  { %491 = vmatprep.mubr.bf16.mxu1 %v8703_v0  ;;  %843 = vmatprep.subr.bf16.mxu1 %v5763_v42  ;;  %8879 = vst [vmem:[#allocation21_spill] sm:$0xff] %v7096_v35 }
  0x6e   :  { %771 = vmatpush1.bf16.msra.mxu0 %v5738_v38  ;;  %v7106_v38 = vld [vmem:[#allocation10 + $0xe4] ss:$16 sps:$4 sm:$0xff]  }
  0x6f   :  { %772 = vmatprep.subr.bf16.mxu0 %v5747_v39  ;;  %844 = vmatpush1.bf16.msra.mxu1 %v5761_v45  ;;  %8882 = vst [vmem:[#allocation24_spill] sm:$0xff] %v7106_v38  ;;  %v7108_v39 = vld [vmem:[#allocation10 + $0xec] ss:$16 sps:$4 sm:$0xff]  }
  0x70   :  { %845 = vmatprep.subr.bf16.mxu1 %v5769_v46  ;;  %8883 = vst [vmem:[#allocation25_spill] sm:$0xff] %v7108_v39 }
  0x71   :  { %419 = vmatmul.mubr.bf16.gmra.mxu0 %v6980_v41  ;;  %492 = vmatmul.mubr.bf16.gmra.mxu1 %v6980_v41 }
  0x72   :  { %773 = vmatpush1.bf16.msra.mxu0 %v5745_v43  ;;  %428 = vmatprep.mubr.bf16.mxu0 %v8703_v0  ;;  %v170_v43 = vld [vmem:[%s8693_s5] sm:$0xf] }
  0x73   :  { %774 = vmatprep.subr.bf16.mxu0 %v5753_v44  ;;  %846 = vmatpush1.bf16.msra.mxu1 %v5767_v50 }
  0x74   :  { %501 = vmatprep.mubr.bf16.mxu1 %v8703_v0  ;;  %847 = vmatprep.subr.bf16.mxu1 %v5776_v53 }
  0x76   :  { %775 = vmatpush1.bf16.msra.mxu0 %v5751_v47 }
  0x77   :  { %776 = vmatprep.subr.bf16.mxu0 %v5760_v49  ;;  %848 = vmatpush1.bf16.msra.mxu1 %v5774_v54 }
  0x78   :  { %849 = vmatprep.subr.bf16.mxu1 %v5782_v55 }
  0x79   :  { %429 = vmatmul.mubr.bf16.gmra.mxu0 %v5757_v48  ;;  %502 = vmatmul.mubr.bf16.gmra.mxu1 %v5757_v48 }
  0x7a   :  { %777 = vmatpush1.bf16.msra.mxu0 %v5758_v51  ;;  %438 = vmatprep.mubr.bf16.mxu0 %v8703_v0 }
  0x7b   :  { %778 = vmatprep.subr.bf16.mxu0 %v5766_v52  ;;  %850 = vmatpush1.bf16.msra.mxu1 %v5780_v58 }
  0x7c   :  { %511 = vmatprep.mubr.bf16.mxu1 %v8703_v0  ;;  %851 = vmatprep.subr.bf16.mxu1 %v5785_v60 }
  0x7e   :  { %779 = vmatpush1.bf16.msra.mxu0 %v5764_v56 }
  0x7f   :  { %780 = vmatprep.subr.bf16.mxu0 %v5773_v57  ;;  %852 = vmatpush1.bf16.msra.mxu1 %v5783_v63 }
  0x80   :  { %853 = vmatprep.subr.bf16.mxu1 %v5788_v1 }
  0x81   :  { %439 = vmatmul.mubr.bf16.gmra.mxu0 %v5770_v59  ;;  %512 = vmatmul.mubr.bf16.gmra.mxu1 %v5770_v59 }
  0x82   :  { %781 = vmatpush1.bf16.msra.mxu0 %v5771_v61  ;;  %800 = vmatprep.mubr.bf16.mxu0 %v8703_v0 }
  0x83   :  { %782 = vmatprep.subr.bf16.mxu0 %v5779_v62  ;;  %854 = vmatpush1.bf16.msra.mxu1 %v5786_v3 }
  0x84   :  { %873 = vmatprep.mubr.bf16.mxu1 %v8703_v0  ;;  %855 = vmatprep.subr.bf16.mxu1 %v5791_v4 }
  0x86   :  { %783 = vmatpush1.bf16.msra.mxu0 %v5777_v2 }
  0x87   :  { %856 = vmatpush1.bf16.msra.mxu1 %v5789_v5  ;;  %1237 = vmatprep.subr.bf16.mxu0 %v7010_v6 }
  0x88   :  { %1278 = vmatprep.subr.bf16.mxu1 %v7012_v7 }
  0x89   :  { %801 = vmatmul.mubr.bf16.vlgmr.msra.gmra.mxu0 %v6964_v31 }
  0x8a   :  { %810 = vmatprep.mubr.bf16.mxu0 %v8703_v0  ;;  %874 = vmatmul.mubr.bf16.vlgmr.msra.gmra.mxu1 %v6964_v31  ;;  %v7084_v31 = vld [vmem:[#allocation8 + $0x2c] ss:$16 sps:$4 sm:$0xff]  }
  0x8b   :  { %883 = vmatprep.mubr.bf16.mxu1 %v8703_v0  ;;  %1238 = vmatpush1.bf16.msra.mxu0 %v7014_v8 }
  0x8c   :  { %1279 = vmatpush1.bf16.msra.mxu1 %v7016_v9  ;;  %1239 = vmatprep.subr.bf16.mxu0 %v7022_v10 }
  0x8d   :  { %1280 = vmatprep.subr.bf16.mxu1 %v7024_v11 }
  0x8f   :  { %1240 = vmatpush1.bf16.msra.mxu0 %v7026_v12 }
  0x90   :  { %1281 = vmatpush1.bf16.msra.mxu1 %v7028_v13  ;;  %1241 = vmatprep.subr.bf16.mxu0 %v7034_v14 }
  0x91   :  { %811 = vmatmul.mubr.bf16.gmra.mxu0 %v6980_v41  ;;  %1282 = vmatprep.subr.bf16.mxu1 %v7036_v15 }
  0x92   :  { %820 = vmatprep.mubr.bf16.mxu0 %v8703_v0  ;;  %884 = vmatmul.mubr.bf16.gmra.mxu1 %v6980_v41  ;;  %v173_v41 = vshrl.u32 %v172_v40, 7 }
  0x93   :  { %893 = vmatprep.mubr.bf16.mxu1 %v8703_v0  ;;  %1242 = vmatpush1.bf16.msra.mxu0 %v7038_v16 }
  0x94   :  { %1283 = vmatpush1.bf16.msra.mxu1 %v7040_v17  ;;  %1243 = vmatprep.subr.bf16.mxu0 %v7046_v18  ;;  %v7112_v42 = vsub.s32 0, %v173_v41  ;;  %v7117_v44 = vsub.s32 1, %v173_v41  ;;  %v7127_v52 = vsub.s32 2, %v173_v41  ;;  %v7129_v54 = vsub.s32 3, %v173_v41 }
  0x95   :  { %1284 = vmatprep.subr.bf16.mxu1 %v7048_v19 }
  0x96   :  { %8884 = vst [vmem:[#allocation26_spill] sm:$0xff] %v7112_v42  ;;  %8885 = vst [vmem:[#allocation27_spill] sm:$0xff] %v7117_v44  ;;  %v7120_v45 = vrot.slane %v170_v43, %v7112_v42  ;;  %v7123_v46 = vrot.slane %v170_v43, %v7117_v44  ;;  %v7140_v61 = vrot.slane %v170_v43, %v7129_v54 }
  0x97   :  { %1244 = vmatpush1.bf16.msra.mxu0 %v7050_v20  ;;  %8887 = vst [vmem:[#allocation29_spill] sm:$0xff] %v7127_v52  ;;  %8888 = vst [vmem:[#allocation30_spill] sm:$0xff] %v7129_v54 }
  0x98   :  { %1285 = vmatpush1.bf16.msra.mxu1 %v7052_v21  ;;  %1245 = vmatprep.subr.bf16.mxu0 %v7058_v22  ;;  %8886 = vst [vmem:[#allocation28_spill] sm:$0xff] %v7123_v46  ;;  %8889 = vst [vmem:[#allocation31_spill] sm:$0xff] %v7140_v61 }
  0x99   :  { %821 = vmatmul.mubr.bf16.gmra.mxu0 %v5757_v48  ;;  %1286 = vmatprep.subr.bf16.mxu1 %v7060_v23 }
  0x9a   :  { %830 = vmatprep.mubr.bf16.mxu0 %v8703_v0  ;;  %894 = vmatmul.mubr.bf16.gmra.mxu1 %v5757_v48 }
  0x9b   :  { %903 = vmatprep.mubr.bf16.mxu1 %v8703_v0  ;;  %1246 = vmatpush1.bf16.msra.mxu0 %v7062_v24 }
  0x9c   :  { %1287 = vmatpush1.bf16.msra.mxu1 %v7064_v25  ;;  %1247 = vmatprep.subr.bf16.mxu0 %v7070_v26 }
  0x9d   :  { %1288 = vmatprep.subr.bf16.mxu1 %v7072_v27 }
  0x9f   :  { %1248 = vmatpush1.bf16.msra.mxu0 %v7074_v28 }
  0xa0   :  { %1289 = vmatpush1.bf16.msra.mxu1 %v7076_v29  ;;  %1249 = vmatprep.subr.bf16.mxu0 %v7082_v30 }
  0xa1   :  { %831 = vmatmul.mubr.bf16.gmra.mxu0 %v5770_v59  ;;  %1290 = vmatprep.subr.bf16.mxu1 %v7084_v31 }
  0xa2   :  { %1269 = vmatprep.mubr.bf16.mxu0 %v8703_v0  ;;  %904 = vmatmul.mubr.bf16.gmra.mxu1 %v5770_v59  ;;  %v7137_v59 = vrot.slane %v170_v43, %v7127_v52 }
  0xa3   :  { %1310 = vmatprep.mubr.bf16.mxu1 %v8703_v0  ;;  %1250 = vmatpush1.bf16.msra.mxu0 %v7086_v32 }
  0xa4   :  { %1291 = vmatpush1.bf16.msra.mxu1 %v7088_v33  ;;  %1251 = vmatprep.subr.bf16.mxu0 %v7094_v34 }
  0xa5   :  { %1292 = vmatprep.subr.bf16.mxu1 %v7096_v35 }
  0xa7   :  { %1252 = vmatpush1.bf16.msra.mxu0 %v7098_v36 }
  0xa8   :  { %1293 = vmatpush1.bf16.msra.mxu1 %v7100_v37  ;;  %1484 = vmatprep.subr.bf16.mxu0 %v7106_v38 }
  0xa9   :  { %1525 = vmatprep.subr.bf16.mxu1 %v7108_v39 }
 0x129   :  { %v410_v47 = vpop.f32.mrf.mxu0  ;;  %v483_v58 = vpop.f32.mrf.mxu1 }
 0x12a   :  { %v411_v48 = vadd.f32 %v410_v47, %v7120_v45 }
 0x12b   :  { %v412_v49 = vpop.f32.mrf.mxu0  ;;  %v485_v62 = vpop.f32.mrf.mxu1 }
 0x12c   :  { %v5348_v50 = vmul.f32 -1.442695, %v411_v48  ;;  %v413_v51 = vadd.f32 %v412_v49, %v7123_v46  ;;  %v486_v40 = vadd.f32 %v485_v62, %v7140_v61  ;;  %v484_v49 = vadd.f32 %v483_v58, %v7137_v59 }
 0x12d   :  { %v414_v53 = vpop.f32.mrf.mxu0  ;;  %v487_v2 = vpop.f32.mrf.mxu1 }
 0x12e   :  { %6128 = vpow2.f32 %v5348_v50  ;;  %v5349_v55 = vmul.f32 -1.442695, %v413_v51  ;;  %v7132_v56 = vadd.f32 %v414_v53, %v7120_v45  ;;  %v7149_v4 = vadd.f32 %v487_v2, %v7137_v59 }
 0x12f   :  { %v7134_v57 = vpop.f32.mrf.mxu0  ;;  %v7152_v41 = vpop.f32.mrf.mxu1  ;;  %v5350_v51 = vmul.f32 -1.442695, %v486_v40 }
 0x130   :  { %6130 = vpow2.f32 %v5349_v55 }
 0x131   :  { %v420_v60 = vpop.f32.mrf.mxu0  ;;  %v493_v48 = vpop.f32.mrf.mxu1  ;;  %6132 = vtanh.f32 %v484_v49 }
 0x132   :  { %v7143_v63 = vadd.f32 %v420_v60, %v7120_v45  ;;  %v7161_v50 = vadd.f32 %v493_v48, %v7137_v59  ;;  %6134 = vpow2.f32 %v5350_v51 }
 0x133   :  { %v422_v1 = vpop.f32.mrf.mxu0  ;;  %v495_v55 = vpop.f32.mrf.mxu1 }
 0x134   :  { %8890 = vst [vmem:[#allocation32_spill] sm:$0xff] %v7143_v63  ;;  %v7146_v3 = vadd.f32 %v422_v1, %v7123_v46  ;;  %8894 = vst [vmem:[#allocation36_spill] sm:$0xff] %v7161_v50  ;;  %v7167_v62 = vadd.f32 %v495_v55, %v7140_v61  ;;  %v7341_v63 = vld [vmem:[#allocation10 + $0xa8] ss:$16 sps:$4 sm:$0xff]  }
 0x135   :  { %v424_v5 = vpop.f32.mrf.mxu0  ;;  %8947 = vst [vmem:[#allocation88_spill] sm:$0xff] %v7341_v63 }
 0x136   :  { %8891 = vst [vmem:[#allocation33_spill] sm:$0xff] %v7146_v3  ;;  %v7155_v43 = vadd.f32 %v424_v5, %v7120_v45  ;;  %8896 = vst [vmem:[#allocation38_spill] sm:$0xff] %v7167_v62  ;;  %v497_v5 = vpop.f32.mrf.mxu1 }
 0x137   :  { %v7157_v47 = vpop.f32.mrf.mxu0  ;;  %v7173_v58 = vadd.f32 %v497_v5, %v7137_v59 }
 0x138   :  { %8892 = vst [vmem:[#allocation34_spill] sm:$0xff] %v7155_v43  ;;  %8893 = vst [vmem:[#allocation35_spill] sm:$0xff] %v7157_v47  ;;  %v7175_v47 = vpop.f32.mrf.mxu1 }
 0x139   :  { %v430_v53 = vpop.f32.mrf.mxu0  ;;  %8898 = vst [vmem:[#allocation40_spill] sm:$0xff] %v7173_v58  ;;  %8899 = vst [vmem:[#allocation41_spill] sm:$0xff] %v7175_v47 }
 0x13a   :  { %v7164_v60 = vadd.f32 %v430_v53, %v7120_v45 }
 0x13b   :  { %v6129_v1 = vpop.eup %6128  ;;  %v432_v2 = vpop.f32.mrf.mxu0 }
 0x13c   :  { %8895 = vst [vmem:[#allocation37_spill] sm:$0xff] %v7164_v60  ;;  %v1021_v0 = vadd.f32 1.0, %v6129_v1  ;;  %v7170_v43 = vadd.f32 %v432_v2, %v7123_v46  ;;  %v503_v1 = vpop.f32.mrf.mxu1 }
 0x13d   :  { %v6131_v40 = vpop.eup %6130  ;;  %v434_v48 = vpop.f32.mrf.mxu0  ;;  %v7183_v49 = vadd.f32 %v503_v1, %v7137_v59 }
 0x13e   :  { %8897 = vst [vmem:[#allocation39_spill] sm:$0xff] %v7170_v43  ;;  %6136 = vrcp.f32 %v1021_v0  ;;  %v1027_v53 = vadd.f32 1.0, %v6131_v40  ;;  %v7178_v55 = vadd.f32 %v434_v48, %v7120_v45  ;;  %v505_v5 = vpop.f32.mrf.mxu1  ;;  %v586_v40 = vld [vmem:[%s8694_s6] sm:$0xf] }
 0x13f   :  { %v7180_v60 = vpop.f32.mrf.mxu0  ;;  %8902 = vst [vmem:[#allocation44_spill] sm:$0xff] %v7183_v49  ;;  %v7189_v51 = vadd.f32 %v505_v5, %v7140_v61  ;;  %v7206_v5 = vrot.slane %v586_v40, %v7112_v42  ;;  %v7237_v62 = vrot.slane %v586_v40, %v7129_v54 }
 0x140   :  { %8900 = vst [vmem:[#allocation42_spill] sm:$0xff] %v7178_v55  ;;  %8901 = vst [vmem:[#allocation43_spill] sm:$0xff] %v7180_v60  ;;  %6138 = vrcp.f32 %v1027_v53  ;;  %v507_v48 = vpop.f32.mrf.mxu1 }
 0x141   :  { %v440_v2 = vpop.f32.mrf.mxu0  ;;  %8904 = vst [vmem:[#allocation46_spill] sm:$0xff] %v7189_v51  ;;  %v7198_v53 = vadd.f32 %v507_v48, %v7137_v59  ;;  %v7211_v51 = vrot.slane %v586_v40, %v7117_v44  ;;  %v6133_v48 = vpop.eup %6132  ;;  %8918 = vst [vmem:[#allocation60_spill] sm:$0xff] %v7237_v62 }
 0x142   :  { %v7186_v43 = vadd.f32 %v440_v2, %v7120_v45  ;;  %v7200_v60 = vpop.f32.mrf.mxu1  ;;  %v6135_v58 = vpop.eup %6134 }
 0x143   :  { %v442_v0 = vpop.f32.mrf.mxu0  ;;  %8906 = vst [vmem:[#allocation48_spill] sm:$0xff] %v7198_v53  ;;  %8907 = vst [vmem:[#allocation49_spill] sm:$0xff] %v7200_v60  ;;  %v1034_v47 = vadd.f32 1.0, %v6135_v58 }
 0x144   :  { %8903 = vst [vmem:[#allocation45_spill] sm:$0xff] %v7186_v43  ;;  %v7195_v55 = vadd.f32 %v442_v0, %v7123_v46  ;;  %v513_v49 = vpop.f32.mrf.mxu1  ;;  %8910 = vst [vmem:[#allocation52_spill] sm:$0xff] %v7211_v51 }
 0x145   :  { %v444_v1 = vpop.f32.mrf.mxu0  ;;  %v7214_v0 = vadd.f32 %v513_v49, %v7137_v59  ;;  %v7229_v49 = vrot.slane %v586_v40, %v7127_v52  ;;  %6140 = vrcp.f32 %v1034_v47 }
 0x146   :  { %8905 = vst [vmem:[#allocation47_spill] sm:$0xff] %v7195_v55  ;;  %v7203_v2 = vadd.f32 %v444_v1, %v7120_v45  ;;  %v515_v53 = vpop.f32.mrf.mxu1 }
 0x147   :  { %v7208_v43 = vpop.f32.mrf.mxu0  ;;  %8911 = vst [vmem:[#allocation53_spill] sm:$0xff] %v7214_v0  ;;  %v7220_v45 = vadd.f32 %v515_v53, %v7140_v61 }
 0x148   :  { %8908 = vst [vmem:[#allocation50_spill] sm:$0xff] %v7203_v2  ;;  %8909 = vst [vmem:[#allocation51_spill] sm:$0xff] %v7208_v43  ;;  %v517_v2 = vpop.f32.mrf.mxu1 }
 0x149   :  { %v802_v55 = vpop.f32.mrf.mxu0  ;;  %8913 = vst [vmem:[#allocation55_spill] sm:$0xff] %v7220_v45  ;;  %v7226_v44 = vadd.f32 %v517_v2, %v7137_v59 }
 0x14a   :  { %v7217_v60 = vadd.f32 %v802_v55, %v7206_v5  ;;  %v7231_v55 = vpop.f32.mrf.mxu1 }
 0x14b   :  { %v6137_v1 = vpop.eup %6136  ;;  %v804_v42 = vpop.f32.mrf.mxu0  ;;  %8915 = vst [vmem:[#allocation57_spill] sm:$0xff] %v7226_v44  ;;  %8916 = vst [vmem:[#allocation58_spill] sm:$0xff] %v7231_v55 }
 0x14c   :  { %8912 = vst [vmem:[#allocation54_spill] sm:$0xff] %v7217_v60  ;;  %v7223_v43 = vadd.f32 %v804_v42, %v7211_v51  ;;  %v1038_v53 = vmul.f32 %v6137_v1, %v6133_v48  ;;  %v875_v59 = vpop.f32.mrf.mxu1 }
 0x14d   :  { %v6139_v0 = vpop.eup %6138  ;;  %v806_v50 = vpop.f32.mrf.mxu0  ;;  %v7244_v52 = vadd.f32 %v875_v59, %v7229_v49 }
 0x14e   :  { %8914 = vst [vmem:[#allocation56_spill] sm:$0xff] %v7223_v43  ;;  %v1037_v60 = vmul.f32 0.0, %v6139_v0  ;;  %v7234_v45 = vadd.f32 %v806_v50, %v7206_v5  ;;  %v877_v43 = vpop.f32.mrf.mxu1 }
 0x14f   :  { %v7239_v42 = vpop.f32.mrf.mxu0  ;;  %8920 = vst [vmem:[#allocation62_spill] sm:$0xff] %v7244_v52  ;;  %v7251_v50 = vadd.f32 %v877_v43, %v7237_v62 }
 0x150   :  { %8917 = vst [vmem:[#allocation59_spill] sm:$0xff] %v7234_v45  ;;  %8919 = vst [vmem:[#allocation61_spill] sm:$0xff] %v7239_v42  ;;  %v7241_v2 = vadd.f32 %v1038_v53, %v1037_v60  ;;  %v879_v48 = vpop.f32.mrf.mxu1 }
 0x151   :  { %v812_v58 = vpop.f32.mrf.mxu0  ;;  %8922 = vst [vmem:[#allocation64_spill] sm:$0xff] %v7251_v50  ;;  %v7257_v60 = vadd.f32 %v879_v48, %v7229_v49 }
 0x152   :  { %6142 = vtanh.f32 %v7241_v2  ;;  %v7248_v0 = vadd.f32 %v812_v58, %v7206_v5  ;;  %v7259_v47 = vpop.f32.mrf.mxu1  ;;  %v6141_v45 = vpop.eup %6140 }
 0x153   :  { %v814_v40 = vpop.f32.mrf.mxu0  ;;  %8924 = vst [vmem:[#allocation66_spill] sm:$0xff] %v7257_v60  ;;  %8925 = vst [vmem:[#allocation67_spill] sm:$0xff] %v7259_v47 }
 0x154   :  { %8921 = vst [vmem:[#allocation63_spill] sm:$0xff] %v7248_v0  ;;  %v7254_v1 = vadd.f32 %v814_v40, %v7211_v51  ;;  %v885_v58 = vpop.f32.mrf.mxu1 }
 0x155   :  { %v816_v53 = vpop.f32.mrf.mxu0  ;;  %v7267_v43 = vadd.f32 %v885_v58, %v7229_v49 }
 0x156   :  { %8923 = vst [vmem:[#allocation65_spill] sm:$0xff] %v7254_v1  ;;  %v7262_v59 = vadd.f32 %v816_v53, %v7206_v5  ;;  %v887_v50 = vpop.f32.mrf.mxu1 }
 0x157   :  { %v7264_v54 = vpop.f32.mrf.mxu0  ;;  %8928 = vst [vmem:[#allocation70_spill] sm:$0xff] %v7267_v43  ;;  %v7273_v48 = vadd.f32 %v887_v50, %v7237_v62 }
 0x158   :  { %8926 = vst [vmem:[#allocation68_spill] sm:$0xff] %v7262_v59  ;;  %8927 = vst [vmem:[#allocation69_spill] sm:$0xff] %v7264_v54  ;;  %v889_v55 = vpop.f32.mrf.mxu1 }
 0x159   :  { %v822_v52 = vpop.f32.mrf.mxu0  ;;  %8930 = vst [vmem:[#allocation72_spill] sm:$0xff] %v7273_v48  ;;  %v7278_v53 = vadd.f32 %v889_v55, %v7229_v49 }
 0x15a   :  { %v7270_v40 = vadd.f32 %v822_v52, %v7206_v5  ;;  %v7280_v47 = vpop.f32.mrf.mxu1 }
 0x15b   :  { %v7275_v44 = vpop.f32.mrf.mxu0  ;;  %8932 = vst [vmem:[#allocation74_spill] sm:$0xff] %v7278_v53  ;;  %8933 = vst [vmem:[#allocation75_spill] sm:$0xff] %v7280_v47  ;;  %v7293_v53 = vld [vmem:[#allocation10 + $0xe0] ss:$16 sps:$4 sm:$0xff]   ;;  %v7295_v47 = vld [vmem:[#allocation10 + $0xe8] ss:$16 sps:$4 sm:$0xff]  }
 0x15c   :  { %8929 = vst [vmem:[#allocation71_spill] sm:$0xff] %v7270_v40  ;;  %8931 = vst [vmem:[#allocation73_spill] sm:$0xff] %v7275_v44  ;;  %v895_v52 = vpop.f32.mrf.mxu1 }
 0x15d   :  { %v826_v60 = vpop.f32.mrf.mxu0  ;;  %v7291_v48 = vadd.f32 %v895_v52, %v7229_v49 }
 0x15e   :  { %v7283_v58 = vadd.f32 %v826_v60, %v7206_v5  ;;  %v897_v0 = vpop.f32.mrf.mxu1 }
 0x15f   :  { %v6143_v42 = vpop.eup %6142  ;;  %v828_v43 = vpop.f32.mrf.mxu0  ;;  %8937 = vst [vmem:[#allocation79_spill] sm:$0xff] %v7291_v48 }
 0x160   :  { %8934 = vst [vmem:[#allocation76_spill] sm:$0xff] %v7283_v58  ;;  %v7286_v1 = vadd.f32 %v828_v43, %v7211_v51  ;;  %v7288_v50 = vmul.f32 %v6143_v42, %v6141_v45  ;;  %v7303_v43 = vadd.f32 %v897_v0, %v7237_v62  ;;  %v7305_v45 = vld [vmem:[#allocation10 + $0xc4] ss:$16 sps:$4 sm:$0xff]   ;;  %v7307_v42 = vld [vmem:[#allocation10 + $0xcc] ss:$16 sps:$4 sm:$0xff]   ;;  %v899_v54 = vpop.f32.mrf.mxu1  ;;  %v8944_v58 = vmov 0  }
 0x161   :  { %v832_v55 = vpop.f32.mrf.mxu0  ;;  %8939 = vst [vmem:[#allocation81_spill] sm:$0xff] %v7307_v42  ;;  %v7317_v0 = vld [vmem:[#allocation10 + $0xc0] ss:$16 sps:$4 sm:$0xff]  }
 0x162   :  { %8935 = vst [vmem:[#allocation77_spill] sm:$0xff] %v7286_v1  ;;  %8936 = vst [vmem:[#allocation78_spill] sm:$0xff] %v7288_v50  ;;  %v7298_v60 = vadd.f32 %v832_v55, %v7206_v5  ;;  %v1076_v59 = vpack.c.bf16 %v7288_v50, %v7288_v50  ;;  %v7313_v55 = vadd.f32 %v899_v54, %v7229_v49  ;;  %v901_v44 = vpop.f32.mrf.mxu1  ;;  %v7319_v50 = vld [vmem:[#allocation10 + $0xc8] ss:$16 sps:$4 sm:$0xff]   ;;  %v7327_v54 = vld [vmem:[#allocation10 + $0xa4] ss:$16 sps:$4 sm:$0xff]  }
 0x163   :  { %8938 = vst [vmem:[#allocation80_spill] sm:$0xff] %v7303_v43  ;;  %v834_v52 = vpop.f32.mrf.mxu0 }
 0x164   :  { %v7310_v48 = vadd.f32 %v834_v52, %v7211_v51  ;;  %1270 = vmatmul.mubr.bf16.vlgmr.msra.gmra.mxu0 %v1076_v59  ;;  %1311 = vmatmul.mubr.bf16.vlgmr.msra.gmra.mxu1 %v1076_v59  ;;  %8941 = vst [vmem:[#allocation83_spill] sm:$0xff] %v7313_v55  ;;  %v7323_v52 = vadd.f32 %v901_v44, %v7237_v62  ;;  %v7329_v59 = vld [vmem:[#allocation10 + $0xac] ss:$16 sps:$4 sm:$0xff]   ;;  %v905_v1 = vpop.f32.mrf.mxu1 }
 0x165   :  { %v836_v40 = vpop.f32.mrf.mxu0  ;;  %1485 = vmatpush1.bf16.msra.mxu0 %v7293_v53  ;;  %1526 = vmatpush1.bf16.msra.mxu1 %v7295_v47  ;;  %8943 = vst [vmem:[#allocation85_spill] sm:$0xff] %v7329_v59  ;;  %v7335_v44 = vadd.f32 %v905_v1, %v7229_v49  ;;  %v7348_v1 = vld [vmem:[#allocation10 + $0x84] ss:$16 sps:$4 sm:$0xff]  }
 0x166   :  { %8940 = vst [vmem:[#allocation82_spill] sm:$0xff] %v7310_v48  ;;  %v837_v43 = vadd.f32 %v836_v40, %v7206_v5  ;;  %8942 = vst [vmem:[#allocation84_spill] sm:$0xff] %v7323_v52  ;;  %1486 = vmatprep.subr.bf16.mxu0 %v7305_v45  ;;  %1527 = vmatprep.subr.bf16.mxu1 %v7307_v42  ;;  %v907_v40 = vpop.f32.mrf.mxu1  ;;  %v7339_v52 = vld [vmem:[#allocation10 + $0xa0] ss:$16 sps:$4 sm:$0xff]  }
 0x167   :  { %v838_v55 = vpop.f32.mrf.mxu0  ;;  %1516 = vmatprep.mubr.bf16.mxu0 %v8944_v58  ;;  %1557 = vmatprep.mubr.bf16.mxu1 %v8944_v58  ;;  %8945 = vst [vmem:[#allocation86_spill] sm:$0xff] %v7335_v44  ;;  %8946 = vst [vmem:[#allocation87_spill] sm:$0xff] %v7339_v52  ;;  %v7344_v42 = vadd.f32 %v907_v40, %v7237_v62  ;;  %v7360_v40 = vld [vmem:[#allocation10 + $0x64] ss:$16 sps:$4 sm:$0xff]   ;;  %v7362_v44 = vld [vmem:[#allocation10 + $0x6c] ss:$16 sps:$4 sm:$0xff]  }
 0x168   :  { %v5351_v3 = vmul.f32 -1.442695, %v837_v43  ;;  %v839_v5 = vadd.f32 %v838_v55, %v7211_v51  ;;  %8949 = vst [vmem:[#allocation90_spill] sm:$0xff] %v7348_v1  ;;  %v7350_v43 = vld [vmem:[#allocation10 + $0x8c] ss:$16 sps:$4 sm:$0xff]   ;;  %v909_v55 = vpop.f32.mrf.mxu1  ;;  %8953 = vst [vmem:[#allocation94_spill] sm:$0xff] %v7360_v40 }
 0x169   :  { %1487 = vmatpush1.bf16.msra.mxu0 %v7317_v0  ;;  %1528 = vmatpush1.bf16.msra.mxu1 %v7319_v50  ;;  %8948 = vst [vmem:[#allocation89_spill] sm:$0xff] %v7344_v42  ;;  %8950 = vst [vmem:[#allocation91_spill] sm:$0xff] %v7350_v43  ;;  %v7354_v51 = vld [vmem:[#allocation10 + $0x80] ss:$16 sps:$4 sm:$0xff]  }
 0x16a   :  { %6144 = vpow2.f32 %v5351_v3  ;;  %v5352_v48 = vmul.f32 -1.442695, %v839_v5  ;;  %1488 = vmatprep.subr.bf16.mxu0 %v7327_v54  ;;  %1529 = vmatprep.subr.bf16.mxu1 %v7329_v59  ;;  %8951 = vst [vmem:[#allocation92_spill] sm:$0xff] %v7354_v51  ;;  %v7356_v3 = vld [vmem:[#allocation10 + $0x88] ss:$16 sps:$4 sm:$0xff]   ;;  %v911_v5 = vpop.f32.mrf.mxu1  ;;  %8954 = vst [vmem:[#allocation95_spill] sm:$0xff] %v7362_v44 }
 0x16b   :  { %8952 = vst [vmem:[#allocation93_spill] sm:$0xff] %v7356_v3  ;;  %v912_v42 = vadd.f32 %v911_v5, %v7237_v62  ;;  %v7379_v5 = vld [vmem:[#allocation10 + $0x40] ss:$16 sps:$4 sm:$0xff]   ;;  %v7381_v62 = vld [vmem:[#allocation10 + $0x48] ss:$16 sps:$4 sm:$0xff]  }
 0x16c   :  { %6146 = vpow2.f32 %v5352_v48  ;;  %v7367_v48 = vld [vmem:[#allocation10 + $0x60] ss:$16 sps:$4 sm:$0xff]   ;;  %8959 = vst [vmem:[#allocation100_spill] sm:$0xff] %v7381_v62 }
 0x16d   :  { %1489 = vmatpush1.bf16.msra.mxu0 %v7339_v52  ;;  %1530 = vmatpush1.bf16.msra.mxu1 %v7341_v63  ;;  %8955 = vst [vmem:[#allocation96_spill] sm:$0xff] %v7367_v48  ;;  %v7369_v63 = vld [vmem:[#allocation10 + $0x68] ss:$16 sps:$4 sm:$0xff]   ;;  %v5353_v52 = vmul.f32 -1.442695, %v912_v42 }
 0x16e   :  { %1490 = vmatprep.subr.bf16.mxu0 %v7348_v1  ;;  %1531 = vmatprep.subr.bf16.mxu1 %v7350_v43  ;;  %8956 = vst [vmem:[#allocation97_spill] sm:$0xff] %v7369_v63  ;;  %v7373_v1 = vld [vmem:[#allocation10 + $0x44] ss:$16 sps:$4 sm:$0xff]   ;;  %v7375_v43 = vld [vmem:[#allocation10 + $0x4c] ss:$16 sps:$4 sm:$0xff]  }
 0x16f   :  { %8957 = vst [vmem:[#allocation98_spill] sm:$0xff] %v7373_v1  ;;  %8958 = vst [vmem:[#allocation99_spill] sm:$0xff] %v7375_v43  ;;  %6148 = vpow2.f32 %v5353_v52  ;;  %v7404_v52 = vld [vmem:[#allocation10] ss:$16 sps:$4 sm:$0xff]  }
 0x170   :  { %8966 = vst [vmem:[#allocation107_spill] sm:$0xff] %v7404_v52 }
 0x171   :  { %1491 = vmatpush1.bf16.msra.mxu0 %v7354_v51  ;;  %1532 = vmatpush1.bf16.msra.mxu1 %v7356_v3  ;;  %v910_v51 = vadd.f32 %v909_v55, %v7229_v49  ;;  %v7400_v49 = vld [vmem:[#allocation10 + $0xc] ss:$16 sps:$4 sm:$0xff]   ;;  %v7406_v55 = vld [vmem:[#allocation10 + $0x8] ss:$16 sps:$4 sm:$0xff]  }
 0x172   :  { %1492 = vmatprep.subr.bf16.mxu0 %v7360_v40  ;;  %1533 = vmatprep.subr.bf16.mxu1 %v7362_v44  ;;  %v7385_v40 = vld [vmem:[#allocation10 + $0x24] ss:$16 sps:$4 sm:$0xff]   ;;  %v7387_v44 = vld [vmem:[#allocation10 + $0x2c] ss:$16 sps:$4 sm:$0xff]   ;;  %8965 = vst [vmem:[#allocation106_spill] sm:$0xff] %v7400_v49  ;;  %8967 = vst [vmem:[#allocation108_spill] sm:$0xff] %v7406_v55 }
 0x173   :  { %8960 = vst [vmem:[#allocation101_spill] sm:$0xff] %v7385_v40  ;;  %8961 = vst [vmem:[#allocation102_spill] sm:$0xff] %v7387_v44 }
 0x175   :  { %1493 = vmatpush1.bf16.msra.mxu0 %v7367_v48  ;;  %1534 = vmatpush1.bf16.msra.mxu1 %v7369_v63  ;;  %v7392_v63 = vld [vmem:[#allocation10 + $0x20] ss:$16 sps:$4 sm:$0xff]   ;;  %v7394_v48 = vld [vmem:[#allocation10 + $0x28] ss:$16 sps:$4 sm:$0xff]  }
 0x176   :  { %1494 = vmatprep.subr.bf16.mxu0 %v7373_v1  ;;  %1535 = vmatprep.subr.bf16.mxu1 %v7375_v43  ;;  %8962 = vst [vmem:[#allocation103_spill] sm:$0xff] %v7392_v63  ;;  %8963 = vst [vmem:[#allocation104_spill] sm:$0xff] %v7394_v48  ;;  %v7398_v1 = vld [vmem:[#allocation10 + $0x4] ss:$16 sps:$4 sm:$0xff]  }
 0x177   :  { %v6145_v3 = vpop.eup %6144  ;;  %8964 = vst [vmem:[#allocation105_spill] sm:$0xff] %v7398_v1 }
 0x178   :  { %v1045_v42 = vadd.f32 1.0, %v6145_v3 }
 0x179   :  { %v6147_v59 = vpop.eup %6146  ;;  %1495 = vmatpush1.bf16.msra.mxu0 %v7379_v5  ;;  %1536 = vmatpush1.bf16.msra.mxu1 %v7381_v62 }
 0x17a   :  { %6150 = vrcp.f32 %v1045_v42  ;;  %v1051_v43 = vadd.f32 1.0, %v6147_v59  ;;  %1496 = vmatprep.subr.bf16.mxu0 %v7385_v40  ;;  %1537 = vmatprep.subr.bf16.mxu1 %v7387_v44 }
 0x17b   :  { %6152 = vtanh.f32 %v910_v51 }
 0x17c   :  { %6154 = vrcp.f32 %v1051_v43  ;;  %v6149_v51 = vpop.eup %6148 }
 0x17d   :  { %1497 = vmatpush1.bf16.msra.mxu0 %v7392_v63  ;;  %1538 = vmatpush1.bf16.msra.mxu1 %v7394_v48  ;;  %v1058_v42 = vadd.f32 1.0, %v6149_v51 }
 0x17e   :  { %1498 = vmatprep.subr.bf16.mxu0 %v7398_v1  ;;  %1539 = vmatprep.subr.bf16.mxu1 %v7400_v49 }
 0x17f   :  { %6156 = vrcp.f32 %v1058_v42 }
 0x181   :  { %1499 = vmatpush1.bf16.msra.mxu0 %v7404_v52  ;;  %1540 = vmatpush1.bf16.msra.mxu1 %v7406_v55 }
 0x182   :  { %1629 = vmatprep.subr.bf16.mxu0 %v7010_v6  ;;  %1670 = vmatprep.subr.bf16.mxu1 %v7012_v7 }
 0x187   :  { %v6151_v59 = vpop.eup %6150 }
 0x188   :  { %v6153_v43 = vpop.eup %6152 }
 0x189   :  { %v6155_v3 = vpop.eup %6154  ;;  %v1062_v63 = vmul.f32 %v6153_v43, %v6151_v59 }
 0x18a   :  { %v1061_v48 = vmul.f32 0.0, %v6155_v3 }
 0x18c   :  { %v7414_v44 = vadd.f32 %v1062_v63, %v1061_v48  ;;  %v6157_v49 = vpop.eup %6156 }
 0x18e   :  { %6158 = vtanh.f32 %v7414_v44 }
 0x19b   :  { %v6159_v52 = vpop.eup %6158 }
 0x19c   :  { %v7417_v1 = vmul.f32 %v6159_v52, %v6157_v49  ;;  %v417_v49 = vadd.f32 %v7134_v57, %v7123_v46 }
 0x19e   :  { %8968 = vst [vmem:[#allocation109_spill] sm:$0xff] %v7417_v1  ;;  %v7421_v6 = vpack.c.bf16 %v7417_v1, %v7417_v1 }
 0x1a0   :  { %8969 = vst [vmem:[#allocation110_spill] sm:$0xff] %v7421_v6  ;;  %1517 = vmatmul.mubr.bf16.vlgmr.msra.gmra.mxu0 %v7421_v6  ;;  %1558 = vmatmul.mubr.bf16.vlgmr.msra.gmra.mxu1 %v7421_v6 }
 0x1a1   :  { %1630 = vmatpush1.bf16.msra.mxu0 %v7014_v8  ;;  %1671 = vmatpush1.bf16.msra.mxu1 %v7016_v9 }
 0x1a2   :  { %1631 = vmatprep.subr.bf16.mxu0 %v7022_v10  ;;  %1672 = vmatprep.subr.bf16.mxu1 %v7024_v11 }
 0x1a3   :  { %1661 = vmatprep.mubr.bf16.mxu0 %v8944_v58  ;;  %1702 = vmatprep.mubr.bf16.mxu1 %v8944_v58 }
 0x1a5   :  { %1632 = vmatpush1.bf16.msra.mxu0 %v7026_v12  ;;  %1673 = vmatpush1.bf16.msra.mxu1 %v7028_v13 }
 0x1a6   :  { %1633 = vmatprep.subr.bf16.mxu0 %v7034_v14  ;;  %1674 = vmatprep.subr.bf16.mxu1 %v7036_v15 }
 0x1a9   :  { %1634 = vmatpush1.bf16.msra.mxu0 %v7038_v16  ;;  %1675 = vmatpush1.bf16.msra.mxu1 %v7040_v17 }
 0x1aa   :  { %1635 = vmatprep.subr.bf16.mxu0 %v7046_v18  ;;  %1676 = vmatprep.subr.bf16.mxu1 %v7048_v19 }
 0x1ad   :  { %1636 = vmatpush1.bf16.msra.mxu0 %v7050_v20  ;;  %1677 = vmatpush1.bf16.msra.mxu1 %v7052_v21 }
 0x1ae   :  { %1637 = vmatprep.subr.bf16.mxu0 %v7058_v22  ;;  %1678 = vmatprep.subr.bf16.mxu1 %v7060_v23 }
 0x1b1   :  { %1638 = vmatpush1.bf16.msra.mxu0 %v7062_v24  ;;  %1679 = vmatpush1.bf16.msra.mxu1 %v7064_v25 }
 0x1b2   :  { %1639 = vmatprep.subr.bf16.mxu0 %v7070_v26  ;;  %1680 = vmatprep.subr.bf16.mxu1 %v7072_v27 }
 0x1b5   :  { %1640 = vmatpush1.bf16.msra.mxu0 %v7074_v28  ;;  %1681 = vmatpush1.bf16.msra.mxu1 %v7076_v29 }
 0x1b6   :  { %1641 = vmatprep.subr.bf16.mxu0 %v7082_v30  ;;  %1682 = vmatprep.subr.bf16.mxu1 %v7084_v31 }
 0x1b9   :  { %1642 = vmatpush1.bf16.msra.mxu0 %v7086_v32  ;;  %1683 = vmatpush1.bf16.msra.mxu1 %v7088_v33 }
 0x1ba   :  { %1643 = vmatprep.subr.bf16.mxu0 %v7094_v34  ;;  %1684 = vmatprep.subr.bf16.mxu1 %v7096_v35 }
 0x1bd   :  { %1644 = vmatpush1.bf16.msra.mxu0 %v7098_v36  ;;  %1685 = vmatpush1.bf16.msra.mxu1 %v7100_v37 }
 0x1be   :  { %1716 = vmatprep.subr.bf16.mxu0 %v7106_v38  ;;  %1757 = vmatprep.subr.bf16.mxu1 %v7108_v39  ;;  %v490_v39 = vadd.f32 %v7152_v41, %v7140_v61  ;;  %v8990_v61 = vld [vmem:[#allocation104_spill] sm:$0xff] }
 0x224   :  { %v1271_v63 = vpop.f32.mrf.mxu0  ;;  %v1312_v48 = vpop.f32.mrf.mxu1 }
 0x225   :  { %v1319_v52 = vadd.f32 %v1271_v63, %v7132_v56  ;;  %v1321_v35 = vadd.f32 %v1312_v48, %v7149_v4 }
 0x226   :  { %v1273_v51 = vpop.f32.mrf.mxu0  ;;  %v1314_v59 = vpop.f32.mrf.mxu1 }
 0x227   :  { %v5418_v43 = vmul.f32 -1.442695, %v1319_v52  ;;  %v1320_v3 = vadd.f32 %v1273_v51, %v417_v49  ;;  %v1322_v38 = vadd.f32 %v1314_v59, %v490_v39 }
 0x228   :  { %v1275_v42 = vpop.f32.mrf.mxu0  ;;  %v1316_v6 = vpop.f32.mrf.mxu1 }
 0x229   :  { %6160 = vpow2.f32 %v5418_v43  ;;  %v5419_v1 = vmul.f32 -1.442695, %v1320_v3  ;;  %v5420_v57 = vmul.f32 -1.442695, %v1322_v38  ;;  %v8971_v43 = vld [vmem:[#allocation81_spill] sm:$0xff] }
 0x22a   :  { %v1276_v37 = vpop.f32.mrf.mxu0  ;;  %v1317_v36 = vpop.f32.mrf.mxu1 }
 0x22b   :  { %6162 = vpow2.f32 %v5419_v1 }
 0x22c   :  { %6164 = vtanh.f32 %v1321_v35 }
 0x22d   :  { %6166 = vpow2.f32 %v5420_v57 }
 0x236   :  { %v6161_v46 = vpop.eup %6160 }
 0x237   :  { %v1573_v56 = vadd.f32 1.0, %v6161_v46 }
 0x238   :  { %v6163_v63 = vpop.eup %6162 }
 0x239   :  { %6168 = vrcp.f32 %v1573_v56  ;;  %v1579_v49 = vadd.f32 1.0, %v6163_v63  ;;  %v6165_v6 = vpop.eup %6164  ;;  %v8972_v56 = vld [vmem:[#allocation82_spill] sm:$0xff] }
 0x23a   :  { %v6167_v52 = vpop.eup %6166 }
 0x23b   :  { %6170 = vrcp.f32 %v1579_v49  ;;  %v1586_v51 = vadd.f32 1.0, %v6167_v52  ;;  %v8973_v52 = vld [vmem:[#allocation85_spill] sm:$0xff] }
 0x23d   :  { %6172 = vrcp.f32 %v1586_v51  ;;  %v8975_v51 = vld [vmem:[#allocation88_spill] sm:$0xff] }
 0x246   :  { %v6169_v37 = vpop.eup %6168 }
 0x247   :  { %v1590_v36 = vmul.f32 %v6169_v37, %v6165_v6 }
 0x248   :  { %v6171_v1 = vpop.eup %6170 }
 0x249   :  { %v1589_v41 = vmul.f32 %v6171_v1, %v7241_v2  ;;  %v8974_v1 = vld [vmem:[#allocation87_spill] sm:$0xff] }
 0x24a   :  { %v6173_v38 = vpop.eup %6172 }
 0x24b   :  { %v7466_v39 = vadd.f32 %v1590_v36, %v1589_v41  ;;  %v8976_v41 = vld [vmem:[#allocation90_spill] sm:$0xff] }
 0x24d   :  { %6174 = vtanh.f32 %v7466_v39 }
 0x25a   :  { %v6175_v35 = vpop.eup %6174 }
 0x25b   :  { %v7469_v46 = vmul.f32 %v6175_v35, %v6173_v38  ;;  %v8977_v38 = vld [vmem:[#allocation91_spill] sm:$0xff]  ;;  %v8978_v35 = vld [vmem:[#allocation89_spill] sm:$0xff] }
 0x25d   :  { %8970 = vst [vmem:[#allocation111_spill] sm:$0xff] %v7469_v46  ;;  %v1628_v4 = vpack.c.bf16 %v7469_v46, %v7469_v46 }
 0x25f   :  { %1662 = vmatmul.mubr.bf16.vlgmr.msra.gmra.mxu0 %v1628_v4  ;;  %1703 = vmatmul.mubr.bf16.vlgmr.msra.gmra.mxu1 %v1628_v4 }
 0x260   :  { %v1518_v48 = vpop.f32.mrf.mxu0  ;;  %v1559_v59 = vpop.f32.mrf.mxu1  ;;  %1717 = vmatpush1.bf16.msra.mxu0 %v7293_v53  ;;  %1758 = vmatpush1.bf16.msra.mxu1 %v7295_v47 }
 0x261   :  { %v1566_v2 = vadd.f32 %v1518_v48, %v7298_v60  ;;  %1718 = vmatprep.subr.bf16.mxu0 %v7305_v45  ;;  %1759 = vmatprep.subr.bf16.mxu1 %v8971_v43  ;;  %v8979_v48 = vld [vmem:[#allocation92_spill] sm:$0xff] }
 0x262   :  { %v1520_v3 = vpop.f32.mrf.mxu0  ;;  %v1561_v42 = vpop.f32.mrf.mxu1  ;;  %1748 = vmatprep.mubr.bf16.mxu0 %v8944_v58  ;;  %1789 = vmatprep.mubr.bf16.mxu1 %v8944_v58 }
 0x263   :  { %v5421_v57 = vmul.f32 -1.442695, %v1566_v2  ;;  %v1567_v63 = vadd.f32 %v1520_v3, %v8972_v56  ;;  %v1569_v4 = vadd.f32 %v1561_v42, %v8978_v35  ;;  %v8980_v2 = vld [vmem:[#allocation93_spill] sm:$0xff]  ;;  %v8981_v3 = vld [vmem:[#allocation94_spill] sm:$0xff] }
 0x264   :  { %v1522_v49 = vpop.f32.mrf.mxu0  ;;  %v1563_v6 = vpop.f32.mrf.mxu1  ;;  %1719 = vmatpush1.bf16.msra.mxu0 %v7317_v0  ;;  %1760 = vmatpush1.bf16.msra.mxu1 %v7319_v50  ;;  %v8983_v56 = vld [vmem:[#allocation86_spill] sm:$0xff] }
 0x265   :  { %6176 = vpow2.f32 %v5421_v57  ;;  %v5422_v60 = vmul.f32 -1.442695, %v1567_v63  ;;  %1720 = vmatprep.subr.bf16.mxu0 %v7327_v54  ;;  %1761 = vmatprep.subr.bf16.mxu1 %v8973_v52  ;;  %v8982_v57 = vld [vmem:[#allocation95_spill] sm:$0xff]  ;;  %v1568_v63 = vadd.f32 %v1559_v59, %v8983_v56  ;;  %v5423_v49 = vmul.f32 -1.442695, %v1569_v4  ;;  %v8984_v6 = vld [vmem:[#allocation96_spill] sm:$0xff] }
 0x266   :  { %v1523_v37 = vpop.f32.mrf.mxu0  ;;  %v1564_v36 = vpop.f32.mrf.mxu1  ;;  %v8988_v4 = vld [vmem:[#allocation102_spill] sm:$0xff]  ;;  %v8989_v56 = vld [vmem:[#allocation103_spill] sm:$0xff] }
 0x267   :  { %6178 = vpow2.f32 %v5422_v60  ;;  %v8985_v60 = vld [vmem:[#allocation97_spill] sm:$0xff]  ;;  %v8986_v37 = vld [vmem:[#allocation98_spill] sm:$0xff]  ;;  %v8987_v36 = vld [vmem:[#allocation99_spill] sm:$0xff] }
 0x268   :  { %1721 = vmatpush1.bf16.msra.mxu0 %v8974_v1  ;;  %1762 = vmatpush1.bf16.msra.mxu1 %v8975_v51  ;;  %6180 = vtanh.f32 %v1568_v63  ;;  %v8992_v63 = vld [vmem:[#allocation106_spill] sm:$0xff] }
 0x269   :  { %1722 = vmatprep.subr.bf16.mxu0 %v8976_v41  ;;  %1763 = vmatprep.subr.bf16.mxu1 %v8977_v38  ;;  %6182 = vpow2.f32 %v5423_v49  ;;  %v8993_v49 = vld [vmem:[#allocation107_spill] sm:$0xff] }
 0x26c   :  { %1723 = vmatpush1.bf16.msra.mxu0 %v8979_v48  ;;  %1764 = vmatpush1.bf16.msra.mxu1 %v8980_v2 }
 0x26d   :  { %1724 = vmatprep.subr.bf16.mxu0 %v8981_v3  ;;  %1765 = vmatprep.subr.bf16.mxu1 %v8982_v57 }
 0x270   :  { %1725 = vmatpush1.bf16.msra.mxu0 %v8984_v6  ;;  %1766 = vmatpush1.bf16.msra.mxu1 %v8985_v60 }
 0x271   :  { %1726 = vmatprep.subr.bf16.mxu0 %v8986_v37  ;;  %1767 = vmatprep.subr.bf16.mxu1 %v8987_v36  ;;  %v8991_v36 = vld [vmem:[#allocation105_spill] sm:$0xff] }
 0x272   :  { %v6177_v42 = vpop.eup %6176 }
 0x273   :  { %v1597_v35 = vadd.f32 1.0, %v6177_v42  ;;  %v8994_v42 = vld [vmem:[#allocation20_spill] sm:$0xff] }
 0x274   :  { %v6179_v46 = vpop.eup %6178  ;;  %1727 = vmatpush1.bf16.msra.mxu0 %v7379_v5  ;;  %1768 = vmatpush1.bf16.msra.mxu1 %v7381_v62 }
 0x275   :  { %6184 = vrcp.f32 %v1597_v35  ;;  %v1603_v59 = vadd.f32 1.0, %v6179_v46  ;;  %1728 = vmatprep.subr.bf16.mxu0 %v7385_v40  ;;  %1769 = vmatprep.subr.bf16.mxu1 %v8988_v4  ;;  %v6181_v46 = vpop.eup %6180 }
 0x276   :  { %v6183_v35 = vpop.eup %6182 }
 0x277   :  { %6186 = vrcp.f32 %v1603_v59 }
 0x278   :  { %1729 = vmatpush1.bf16.msra.mxu0 %v8989_v56  ;;  %1770 = vmatpush1.bf16.msra.mxu1 %v8990_v61  ;;  %v1610_v56 = vadd.f32 1.0, %v6183_v35 }
 0x279   :  { %1730 = vmatprep.subr.bf16.mxu0 %v8991_v36  ;;  %1771 = vmatprep.subr.bf16.mxu1 %v8992_v63 }
 0x27a   :  { %6188 = vrcp.f32 %v1610_v56 }
 0x27c   :  { %1731 = vmatpush1.bf16.msra.mxu0 %v8993_v49  ;;  %1772 = vmatpush1.bf16.msra.mxu1 %v7406_v55 }
 0x27d   :  { %1861 = vmatprep.subr.bf16.mxu0 %v8994_v42  ;;  %1902 = vmatprep.subr.bf16.mxu1 %v7012_v7 }
 0x282   :  { %v6185_v4 = vpop.eup %6184 }
 0x283   :  { %v1614_v59 = vmul.f32 %v6185_v4, %v6181_v46 }
 0x284   :  { %v6187_v40 = vpop.eup %6186 }
 0x285   :  { %v1613_v61 = vmul.f32 %v6187_v40, %v7414_v44 }
 0x287   :  { %v7512_v62 = vadd.f32 %v1614_v59, %v1613_v61  ;;  %v6189_v49 = vpop.eup %6188 }
 0x289   :  { %6190 = vtanh.f32 %v7512_v62 }
 0x296   :  { %v6191_v63 = vpop.eup %6190 }
 0x297   :  { %v7515_v55 = vmul.f32 %v6191_v63, %v6189_v49 }
 0x299   :  { %8995 = vst [vmem:[#allocation81_spill] sm:$0xff] %v7515_v55  ;;  %v1715_v7 = vpack.c.bf16 %v7515_v55, %v7515_v55  ;;  %v7695_v55 = vld [vmem:[#allocation8 + $0x4] ss:$16 sps:$4 sm:$0xff]  }
 0x29b   :  { %1749 = vmatmul.mubr.bf16.vlgmr.msra.gmra.mxu0 %v1715_v7  ;;  %1790 = vmatmul.mubr.bf16.vlgmr.msra.gmra.mxu1 %v1715_v7 }
 0x29c   :  { %1862 = vmatpush1.bf16.msra.mxu0 %v7014_v8  ;;  %1903 = vmatpush1.bf16.msra.mxu1 %v7016_v9  ;;  %v8996_v8 = vld [vmem:[#allocation21_spill] sm:$0xff]  ;;  %v8997_v9 = vld [vmem:[#allocation22_spill] sm:$0xff] }
 0x29d   :  { %1863 = vmatprep.subr.bf16.mxu0 %v7022_v10  ;;  %1904 = vmatprep.subr.bf16.mxu1 %v7024_v11  ;;  %v8998_v10 = vld [vmem:[#allocation23_spill] sm:$0xff]  ;;  %v8999_v11 = vld [vmem:[#allocation24_spill] sm:$0xff] }
 0x29e   :  { %1893 = vmatprep.mubr.bf16.mxu0 %v8944_v58  ;;  %1934 = vmatprep.mubr.bf16.mxu1 %v8944_v58 }
 0x2a0   :  { %1864 = vmatpush1.bf16.msra.mxu0 %v7026_v12  ;;  %1905 = vmatpush1.bf16.msra.mxu1 %v7028_v13  ;;  %v9000_v12 = vld [vmem:[#allocation25_spill] sm:$0xff] }
 0x2a1   :  { %1865 = vmatprep.subr.bf16.mxu0 %v7034_v14  ;;  %1906 = vmatprep.subr.bf16.mxu1 %v7036_v15  ;;  %v9001_v15 = vld [vmem:[#allocation32_spill] sm:$0xff] }
 0x2a2   :  { %9040 = vst [vmem:[#allocation32_spill] sm:$0xff] %v7695_v55 }
 0x2a4   :  { %1866 = vmatpush1.bf16.msra.mxu0 %v7038_v16  ;;  %1907 = vmatpush1.bf16.msra.mxu1 %v7040_v17 }
 0x2a5   :  { %1867 = vmatprep.subr.bf16.mxu0 %v7046_v18  ;;  %1908 = vmatprep.subr.bf16.mxu1 %v7048_v19 }
 0x2a8   :  { %1868 = vmatpush1.bf16.msra.mxu0 %v7050_v20  ;;  %1909 = vmatpush1.bf16.msra.mxu1 %v7052_v21  ;;  %v9002_v20 = vld [vmem:[#allocation33_spill] sm:$0xff] }
 0x2a9   :  { %1869 = vmatprep.subr.bf16.mxu0 %v7058_v22  ;;  %1910 = vmatprep.subr.bf16.mxu1 %v7060_v23 }
 0x2ac   :  { %1870 = vmatpush1.bf16.msra.mxu0 %v7062_v24  ;;  %1911 = vmatpush1.bf16.msra.mxu1 %v7064_v25 }
 0x2ad   :  { %1871 = vmatprep.subr.bf16.mxu0 %v7070_v26  ;;  %1912 = vmatprep.subr.bf16.mxu1 %v7072_v27  ;;  %v9003_v27 = vld [vmem:[#allocation38_spill] sm:$0xff] }
 0x2b0   :  { %1872 = vmatpush1.bf16.msra.mxu0 %v7074_v28  ;;  %1913 = vmatpush1.bf16.msra.mxu1 %v7076_v29  ;;  %v9004_v29 = vld [vmem:[#allocation36_spill] sm:$0xff] }
 0x2b1   :  { %1873 = vmatprep.subr.bf16.mxu0 %v7082_v30  ;;  %1914 = vmatprep.subr.bf16.mxu1 %v7084_v31 }
 0x2b4   :  { %1874 = vmatpush1.bf16.msra.mxu0 %v7086_v32  ;;  %1915 = vmatpush1.bf16.msra.mxu1 %v7088_v33 }
 0x2b5   :  { %1875 = vmatprep.subr.bf16.mxu0 %v7094_v34  ;;  %1916 = vmatprep.subr.bf16.mxu1 %v8996_v8 }
 0x2b8   :  { %1876 = vmatpush1.bf16.msra.mxu0 %v8997_v9  ;;  %1917 = vmatpush1.bf16.msra.mxu1 %v8998_v10 }
 0x2b9   :  { %1948 = vmatprep.subr.bf16.mxu0 %v8999_v11  ;;  %1989 = vmatprep.subr.bf16.mxu1 %v9000_v12 }
 0x31f   :  { %v1663_v13 = vpop.f32.mrf.mxu0  ;;  %v1704_v14 = vpop.f32.mrf.mxu1 }
 0x320   :  { %v1711_v16 = vadd.f32 %v1663_v13, %v9001_v15  ;;  %v1713_v30 = vadd.f32 %v1704_v14, %v9004_v29  ;;  %v9007_v15 = vld [vmem:[#allocation77_spill] sm:$0xff] }
 0x321   :  { %v1665_v17 = vpop.f32.mrf.mxu0  ;;  %v1706_v18 = vpop.f32.mrf.mxu1 }
 0x322   :  { %v5424_v19 = vmul.f32 -1.442695, %v1711_v16  ;;  %v1712_v21 = vadd.f32 %v1665_v17, %v9002_v20  ;;  %v1714_v28 = vadd.f32 %v1706_v18, %v9003_v27  ;;  %v9010_v27 = vld [vmem:[#allocation99_spill] sm:$0xff] }
 0x323   :  { %v1667_v22 = vpop.f32.mrf.mxu0  ;;  %v1708_v23 = vpop.f32.mrf.mxu1 }
 0x324   :  { %6192 = vpow2.f32 %v5424_v19  ;;  %v5425_v24 = vmul.f32 -1.442695, %v1712_v21  ;;  %v5426_v31 = vmul.f32 -1.442695, %v1714_v28  ;;  %v9008_v22 = vld [vmem:[#allocation84_spill] sm:$0xff] }
 0x325   :  { %v1668_v25 = vpop.f32.mrf.mxu0  ;;  %v1709_v26 = vpop.f32.mrf.mxu1 }
 0x326   :  { %6194 = vpow2.f32 %v5425_v24  ;;  %v9009_v24 = vld [vmem:[#allocation83_spill] sm:$0xff] }
 0x327   :  { %6196 = vtanh.f32 %v1713_v30 }
 0x328   :  { %6198 = vpow2.f32 %v5426_v31  ;;  %v9011_v31 = vld [vmem:[#allocation100_spill] sm:$0xff] }
 0x331   :  { %v6193_v32 = vpop.eup %6192 }
 0x332   :  { %v1805_v33 = vadd.f32 1.0, %v6193_v32 }
 0x333   :  { %v6195_v34 = vpop.eup %6194 }
 0x334   :  { %6200 = vrcp.f32 %v1805_v33  ;;  %v1811_v61 = vadd.f32 1.0, %v6195_v34  ;;  %v6197_v44 = vpop.eup %6196  ;;  %v9012_v33 = vld [vmem:[#allocation101_spill] sm:$0xff]  ;;  %v9013_v34 = vld [vmem:[#allocation102_spill] sm:$0xff] }
 0x335   :  { %v6199_v40 = vpop.eup %6198 }
 0x336   :  { %6202 = vrcp.f32 %v1811_v61  ;;  %v1818_v49 = vadd.f32 1.0, %v6199_v40  ;;  %v9014_v61 = vld [vmem:[#allocation103_spill] sm:$0xff]  ;;  %v9016_v40 = vld [vmem:[#allocation106_spill] sm:$0xff] }
 0x338   :  { %6204 = vrcp.f32 %v1818_v49  ;;  %v7604_v49 = vld [vmem:[#allocation8 + $0xec] ss:$16 sps:$4 sm:$0xff]  }
 0x339   :  { %9019 = vst [vmem:[#allocation85_spill] sm:$0xff] %v7604_v49 }
 0x341   :  { %v6201_v4 = vpop.eup %6200 }
 0x342   :  { %v1822_v56 = vmul.f32 %v6201_v4, %v6197_v44  ;;  %v9015_v44 = vld [vmem:[#allocation104_spill] sm:$0xff]  ;;  %v9017_v4 = vld [vmem:[#allocation107_spill] sm:$0xff] }
 0x343   :  { %v6203_v63 = vpop.eup %6202 }
 0x344   :  { %v1821_v42 = vmul.f32 %v6203_v63, %v7466_v39  ;;  %v9006_v39 = vld [vmem:[#allocation76_spill] sm:$0xff] }
 0x345   :  { %v6205_v35 = vpop.eup %6204  ;;  %v7601_v63 = vld [vmem:[#allocation8 + $0xe4] ss:$16 sps:$4 sm:$0xff]  }
 0x346   :  { %v7558_v46 = vadd.f32 %v1822_v56, %v1821_v42  ;;  %v9018_v56 = vld [vmem:[#allocation108_spill] sm:$0xff] }
 0x348   :  { %6206 = vtanh.f32 %v7558_v46 }
 0x355   :  { %v6207_v59 = vpop.eup %6206 }
 0x356   :  { %v7561_v7 = vmul.f32 %v6207_v59, %v6205_v35 }
 0x358   :  { %9005 = vst [vmem:[#allocation82_spill] sm:$0xff] %v7561_v7  ;;  %v1860_v8 = vpack.c.bf16 %v7561_v7, %v7561_v7  ;;  %v7701_v7 = vld [vmem:[#allocation8] ss:$16 sps:$4 sm:$0xff]  }
 0x359   :  { %9042 = vst [vmem:[#allocation38_spill] sm:$0xff] %v7701_v7 }
 0x35a   :  { %1894 = vmatmul.mubr.bf16.vlgmr.msra.gmra.mxu0 %v1860_v8  ;;  %1935 = vmatmul.mubr.bf16.vlgmr.msra.gmra.mxu1 %v1860_v8 }
 0x35b   :  { %v1750_v9 = vpop.f32.mrf.mxu0  ;;  %v1791_v10 = vpop.f32.mrf.mxu1  ;;  %1949 = vmatpush1.bf16.msra.mxu0 %v7293_v53  ;;  %1990 = vmatpush1.bf16.msra.mxu1 %v7295_v47 }
 0x35c   :  { %v1798_v11 = vadd.f32 %v1750_v9, %v9006_v39  ;;  %1950 = vmatprep.subr.bf16.mxu0 %v7305_v45  ;;  %1991 = vmatprep.subr.bf16.mxu1 %v8971_v43  ;;  %v1800_v25 = vadd.f32 %v1791_v10, %v9009_v24  ;;  %v7644_v24 = vld [vmem:[#allocation8 + $0xa8] ss:$16 sps:$4 sm:$0xff]  }
 0x35d   :  { %v1752_v12 = vpop.f32.mrf.mxu0  ;;  %v1793_v13 = vpop.f32.mrf.mxu1  ;;  %1980 = vmatprep.mubr.bf16.mxu0 %v8944_v58  ;;  %2021 = vmatprep.mubr.bf16.mxu1 %v8944_v58  ;;  %9023 = vst [vmem:[#allocation91_spill] sm:$0xff] %v7644_v24 }
 0x35e   :  { %v5427_v14 = vmul.f32 -1.442695, %v1798_v11  ;;  %v1799_v16 = vadd.f32 %v1752_v12, %v9007_v15  ;;  %v1801_v23 = vadd.f32 %v1793_v13, %v9008_v22  ;;  %v7638_v22 = vld [vmem:[#allocation8 + $0xac] ss:$16 sps:$4 sm:$0xff]  }
 0x35f   :  { %v1754_v17 = vpop.f32.mrf.mxu0  ;;  %v1795_v18 = vpop.f32.mrf.mxu1  ;;  %1951 = vmatpush1.bf16.msra.mxu0 %v7317_v0  ;;  %1992 = vmatpush1.bf16.msra.mxu1 %v7319_v50  ;;  %9021 = vst [vmem:[#allocation88_spill] sm:$0xff] %v7638_v22 }
 0x360   :  { %6208 = vpow2.f32 %v5427_v14  ;;  %v5428_v19 = vmul.f32 -1.442695, %v1799_v16  ;;  %1952 = vmatprep.subr.bf16.mxu0 %v7327_v54  ;;  %1993 = vmatprep.subr.bf16.mxu1 %v8973_v52  ;;  %v5429_v26 = vmul.f32 -1.442695, %v1801_v23  ;;  %v7615_v16 = vld [vmem:[#allocation8 + $0xe0] ss:$16 sps:$4 sm:$0xff]  }
 0x361   :  { %v1755_v20 = vpop.f32.mrf.mxu0  ;;  %v1796_v21 = vpop.f32.mrf.mxu1  ;;  %v7618_v17 = vld [vmem:[#allocation8 + $0xe8] ss:$16 sps:$4 sm:$0xff]   ;;  %v7624_v18 = vld [vmem:[#allocation8 + $0xcc] ss:$16 sps:$4 sm:$0xff]   ;;  %v7641_v23 = vld [vmem:[#allocation8 + $0xa0] ss:$16 sps:$4 sm:$0xff]  }
 0x362   :  { %6210 = vpow2.f32 %v5428_v19  ;;  %v7629_v19 = vld [vmem:[#allocation8 + $0xc0] ss:$16 sps:$4 sm:$0xff]   ;;  %v7632_v20 = vld [vmem:[#allocation8 + $0xc8] ss:$16 sps:$4 sm:$0xff]   ;;  %v7635_v21 = vld [vmem:[#allocation8 + $0xa4] ss:$16 sps:$4 sm:$0xff]  }
 0x363   :  { %1953 = vmatpush1.bf16.msra.mxu0 %v8974_v1  ;;  %1994 = vmatpush1.bf16.msra.mxu1 %v8975_v51  ;;  %6212 = vtanh.f32 %v1800_v25  ;;  %9022 = vst [vmem:[#allocation90_spill] sm:$0xff] %v7641_v23  ;;  %v7647_v25 = vld [vmem:[#allocation8 + $0x84] ss:$16 sps:$4 sm:$0xff]  }
 0x364   :  { %1954 = vmatprep.subr.bf16.mxu0 %v8976_v41  ;;  %1995 = vmatprep.subr.bf16.mxu1 %v8977_v38  ;;  %6214 = vpow2.f32 %v5429_v26  ;;  %9024 = vst [vmem:[#allocation89_spill] sm:$0xff] %v7647_v25  ;;  %v7650_v26 = vld [vmem:[#allocation8 + $0x8c] ss:$16 sps:$4 sm:$0xff]  }
 0x365   :  { %9025 = vst [vmem:[#allocation92_spill] sm:$0xff] %v7650_v26 }
 0x367   :  { %1955 = vmatpush1.bf16.msra.mxu0 %v8979_v48  ;;  %1996 = vmatpush1.bf16.msra.mxu1 %v8980_v2 }
 0x368   :  { %1956 = vmatprep.subr.bf16.mxu0 %v8981_v3  ;;  %1997 = vmatprep.subr.bf16.mxu1 %v8982_v57 }
 0x36b   :  { %1957 = vmatpush1.bf16.msra.mxu0 %v8984_v6  ;;  %1998 = vmatpush1.bf16.msra.mxu1 %v8985_v60 }
 0x36c   :  { %1958 = vmatprep.subr.bf16.mxu0 %v8986_v37  ;;  %1999 = vmatprep.subr.bf16.mxu1 %v9010_v27 }
 0x36d   :  { %v6209_v28 = vpop.eup %6208 }
 0x36e   :  { %v1829_v29 = vadd.f32 1.0, %v6209_v28  ;;  %v7653_v28 = vld [vmem:[#allocation8 + $0x80] ss:$16 sps:$4 sm:$0xff]  }
 0x36f   :  { %v6211_v30 = vpop.eup %6210  ;;  %1959 = vmatpush1.bf16.msra.mxu0 %v7379_v5  ;;  %2000 = vmatpush1.bf16.msra.mxu1 %v9011_v31  ;;  %9026 = vst [vmem:[#allocation93_spill] sm:$0xff] %v7653_v28 }
 0x370   :  { %6216 = vrcp.f32 %v1829_v29  ;;  %v1835_v32 = vadd.f32 1.0, %v6211_v30  ;;  %1960 = vmatprep.subr.bf16.mxu0 %v9012_v33  ;;  %2001 = vmatprep.subr.bf16.mxu1 %v9013_v34  ;;  %v6213_v42 = vpop.eup %6212  ;;  %v7656_v29 = vld [vmem:[#allocation8 + $0x88] ss:$16 sps:$4 sm:$0xff]   ;;  %v7659_v30 = vld [vmem:[#allocation8 + $0x64] ss:$16 sps:$4 sm:$0xff]  }
 0x371   :  { %v6215_v35 = vpop.eup %6214  ;;  %9027 = vst [vmem:[#allocation94_spill] sm:$0xff] %v7656_v29  ;;  %9028 = vst [vmem:[#allocation95_spill] sm:$0xff] %v7659_v30 }
 0x372   :  { %6218 = vrcp.f32 %v1835_v32  ;;  %v1842_v10 = vadd.f32 1.0, %v6215_v35  ;;  %v7662_v32 = vld [vmem:[#allocation8 + $0x6c] ss:$16 sps:$4 sm:$0xff]   ;;  %v7668_v35 = vld [vmem:[#allocation8 + $0x68] ss:$16 sps:$4 sm:$0xff]  }
 0x373   :  { %1961 = vmatpush1.bf16.msra.mxu0 %v9014_v61  ;;  %2002 = vmatpush1.bf16.msra.mxu1 %v9015_v44  ;;  %9029 = vst [vmem:[#allocation86_spill] sm:$0xff] %v7662_v32  ;;  %9031 = vst [vmem:[#allocation97_spill] sm:$0xff] %v7668_v35 }
 0x374   :  { %1962 = vmatprep.subr.bf16.mxu0 %v8991_v36  ;;  %2003 = vmatprep.subr.bf16.mxu1 %v9016_v40  ;;  %6220 = vrcp.f32 %v1842_v10  ;;  %v7680_v10 = vld [vmem:[#allocation8 + $0x48] ss:$16 sps:$4 sm:$0xff]  }
 0x375   :  { %9035 = vst [vmem:[#allocation21_spill] sm:$0xff] %v7680_v10 }
 0x377   :  { %1963 = vmatpush1.bf16.msra.mxu0 %v9017_v4  ;;  %2004 = vmatpush1.bf16.msra.mxu1 %v9018_v56 }
 0x378   :  { %2093 = vmatprep.subr.bf16.mxu0 %v7601_v63  ;;  %2134 = vmatprep.subr.bf16.mxu1 %v7604_v49 }
 0x37d   :  { %v6217_v59 = vpop.eup %6216 }
 0x37e   :  { %v1846_v8 = vmul.f32 %v6217_v59, %v6213_v42  ;;  %v7665_v42 = vld [vmem:[#allocation8 + $0x60] ss:$16 sps:$4 sm:$0xff]   ;;  %v7671_v59 = vld [vmem:[#allocation8 + $0x44] ss:$16 sps:$4 sm:$0xff]  }
 0x37f   :  { %v6219_v9 = vpop.eup %6218  ;;  %9030 = vst [vmem:[#allocation96_spill] sm:$0xff] %v7665_v42  ;;  %9032 = vst [vmem:[#allocation98_spill] sm:$0xff] %v7671_v59 }
 0x380   :  { %v1845_v39 = vmul.f32 %v6219_v9, %v7512_v62  ;;  %v7621_v62 = vld [vmem:[#allocation8 + $0xc4] ss:$16 sps:$4 sm:$0xff]   ;;  %v7677_v9 = vld [vmem:[#allocation8 + $0x40] ss:$16 sps:$4 sm:$0xff]  }
 0x381   :  { %v6221_v12 = vpop.eup %6220  ;;  %9034 = vst [vmem:[#allocation20_spill] sm:$0xff] %v7677_v9 }
 0x382   :  { %v7608_v11 = vadd.f32 %v1846_v8, %v1845_v39  ;;  %v7674_v8 = vld [vmem:[#allocation8 + $0x4c] ss:$16 sps:$4 sm:$0xff]   ;;  %v7683_v39 = vld [vmem:[#allocation8 + $0x24] ss:$16 sps:$4 sm:$0xff]  }
 0x383   :  { %9033 = vst [vmem:[#allocation105_spill] sm:$0xff] %v7674_v8  ;;  %9036 = vst [vmem:[#allocation22_spill] sm:$0xff] %v7683_v39 }
 0x384   :  { %6222 = vtanh.f32 %v7608_v11 }
 0x391   :  { %v6223_v13 = vpop.eup %6222 }
 0x392   :  { %v7611_v14 = vmul.f32 %v6223_v13, %v6221_v12  ;;  %v7686_v12 = vld [vmem:[#allocation8 + $0x2c] ss:$16 sps:$4 sm:$0xff]   ;;  %v7689_v13 = vld [vmem:[#allocation8 + $0x20] ss:$16 sps:$4 sm:$0xff]  }
 0x393   :  { %9037 = vst [vmem:[#allocation23_spill] sm:$0xff] %v7686_v12  ;;  %9038 = vst [vmem:[#allocation24_spill] sm:$0xff] %v7689_v13 }
 0x394   :  { %9020 = vst [vmem:[#allocation87_spill] sm:$0xff] %v7611_v14  ;;  %v1947_v15 = vpack.c.bf16 %v7611_v14, %v7611_v14  ;;  %v7698_v14 = vld [vmem:[#allocation8 + $0xc] ss:$16 sps:$4 sm:$0xff]  }
 0x395   :  { %9041 = vst [vmem:[#allocation33_spill] sm:$0xff] %v7698_v14 }
 0x396   :  { %1981 = vmatmul.mubr.bf16.vlgmr.msra.gmra.mxu0 %v1947_v15  ;;  %2022 = vmatmul.mubr.bf16.vlgmr.msra.gmra.mxu1 %v1947_v15  ;;  %v7692_v15 = vld [vmem:[#allocation8 + $0x28] ss:$16 sps:$4 sm:$0xff]  }
 0x397   :  { %2094 = vmatpush1.bf16.msra.mxu0 %v7615_v16  ;;  %2135 = vmatpush1.bf16.msra.mxu1 %v7618_v17  ;;  %9039 = vst [vmem:[#allocation25_spill] sm:$0xff] %v7692_v15 }
 0x398   :  { %2095 = vmatprep.subr.bf16.mxu0 %v7621_v62  ;;  %2136 = vmatprep.subr.bf16.mxu1 %v7624_v18 }
 0x399   :  { %2125 = vmatprep.mubr.bf16.mxu0 %v8944_v58  ;;  %2166 = vmatprep.mubr.bf16.mxu1 %v8944_v58 }
 0x39b   :  { %2096 = vmatpush1.bf16.msra.mxu0 %v7629_v19  ;;  %2137 = vmatpush1.bf16.msra.mxu1 %v7632_v20 }
 0x39c   :  { %2097 = vmatprep.subr.bf16.mxu0 %v7635_v21  ;;  %2138 = vmatprep.subr.bf16.mxu1 %v7638_v22 }
 0x39f   :  { %2098 = vmatpush1.bf16.msra.mxu0 %v7641_v23  ;;  %2139 = vmatpush1.bf16.msra.mxu1 %v7644_v24  ;;  %v9051_v23 = vld [vmem:[#allocation40_spill] sm:$0xff] }
 0x3a0   :  { %2099 = vmatprep.subr.bf16.mxu0 %v7647_v25  ;;  %2140 = vmatprep.subr.bf16.mxu1 %v7650_v26  ;;  %v9049_v26 = vld [vmem:[#allocation31_spill] sm:$0xff] }
 0x3a3   :  { %2100 = vmatpush1.bf16.msra.mxu0 %v7653_v28  ;;  %2141 = vmatpush1.bf16.msra.mxu1 %v7656_v29 }
 0x3a4   :  { %2101 = vmatprep.subr.bf16.mxu0 %v7659_v30  ;;  %2142 = vmatprep.subr.bf16.mxu1 %v7662_v32 }
 0x3a7   :  { %2102 = vmatpush1.bf16.msra.mxu0 %v7665_v42  ;;  %2143 = vmatpush1.bf16.msra.mxu1 %v7668_v35 }
 0x3a8   :  { %2103 = vmatprep.subr.bf16.mxu0 %v7671_v59  ;;  %2144 = vmatprep.subr.bf16.mxu1 %v7674_v8  ;;  %v9048_v8 = vld [vmem:[#allocation34_spill] sm:$0xff] }
 0x3ab   :  { %2104 = vmatpush1.bf16.msra.mxu0 %v7677_v9  ;;  %2145 = vmatpush1.bf16.msra.mxu1 %v7680_v10  ;;  %v9046_v10 = vld [vmem:[#allocation28_spill] sm:$0xff] }
 0x3ac   :  { %2105 = vmatprep.subr.bf16.mxu0 %v7683_v39  ;;  %2146 = vmatprep.subr.bf16.mxu1 %v7686_v12  ;;  %v7704_v12 = vld [vmem:[#allocation8 + $0x8] ss:$16 sps:$4 sm:$0xff]  }
 0x3ad   :  { %9043 = vst [vmem:[#allocation36_spill] sm:$0xff] %v7704_v12 }
 0x3af   :  { %2106 = vmatpush1.bf16.msra.mxu0 %v7689_v13  ;;  %2147 = vmatpush1.bf16.msra.mxu1 %v7692_v15  ;;  %v7707_v13 = vld [vmem:[#allocation10 + $0xe4] ss:$16 sps:$4 sm:$0xff]   ;;  %v7710_v15 = vld [vmem:[#allocation10 + $0xec] ss:$16 sps:$4 sm:$0xff]  }
 0x3b0   :  { %2107 = vmatprep.subr.bf16.mxu0 %v7695_v55  ;;  %2148 = vmatprep.subr.bf16.mxu1 %v7698_v14  ;;  %9044 = vst [vmem:[#allocation76_spill] sm:$0xff] %v7707_v13  ;;  %9045 = vst [vmem:[#allocation77_spill] sm:$0xff] %v7710_v15  ;;  %v9047_v14 = vld [vmem:[#allocation35_spill] sm:$0xff] }
 0x3b1   :  { %v427_v9 = vadd.f32 %v9047_v14, %v9046_v10 }
 0x3b3   :  { %2108 = vmatpush1.bf16.msra.mxu0 %v7701_v7  ;;  %2149 = vmatpush1.bf16.msra.mxu1 %v7704_v12 }
 0x3b4   :  { %2180 = vmatprep.subr.bf16.mxu0 %v7707_v13  ;;  %2221 = vmatprep.subr.bf16.mxu1 %v7710_v15  ;;  %v9050_v15 = vld [vmem:[#allocation41_spill] sm:$0xff] }
 0x3b5   :  { %v500_v25 = vadd.f32 %v9050_v15, %v9049_v26  ;;  %v9055_v15 = vld [vmem:[#allocation71_spill] sm:$0xff] }
 0x41a   :  { %v1895_v55 = vpop.f32.mrf.mxu0  ;;  %v1936_v39 = vpop.f32.mrf.mxu1 }
 0x41b   :  { %v1943_v59 = vadd.f32 %v1895_v55, %v9048_v8  ;;  %v1945_v22 = vadd.f32 %v1936_v39, %v9051_v23 }
 0x41c   :  { %v1897_v7 = vpop.f32.mrf.mxu0  ;;  %v1938_v35 = vpop.f32.mrf.mxu1 }
 0x41d   :  { %v5430_v42 = vmul.f32 -1.442695, %v1943_v59  ;;  %v1944_v32 = vadd.f32 %v1897_v7, %v427_v9  ;;  %v1946_v24 = vadd.f32 %v1938_v35, %v500_v25 }
 0x41e   :  { %v1899_v12 = vpop.f32.mrf.mxu0  ;;  %v1940_v30 = vpop.f32.mrf.mxu1 }
 0x41f   :  { %6224 = vpow2.f32 %v5430_v42  ;;  %v5431_v29 = vmul.f32 -1.442695, %v1944_v32  ;;  %v5432_v14 = vmul.f32 -1.442695, %v1946_v24  ;;  %v9054_v12 = vld [vmem:[#allocation73_spill] sm:$0xff] }
 0x420   :  { %v1900_v13 = vpop.f32.mrf.mxu0  ;;  %v1941_v28 = vpop.f32.mrf.mxu1 }
 0x421   :  { %6226 = vpow2.f32 %v5431_v29 }
 0x422   :  { %6228 = vtanh.f32 %v1945_v22 }
 0x423   :  { %6230 = vpow2.f32 %v5432_v14 }
 0x42c   :  { %v6225_v10 = vpop.eup %6224 }
 0x42d   :  { %v2037_v55 = vadd.f32 1.0, %v6225_v10 }
 0x42e   :  { %v6227_v8 = vpop.eup %6226 }
 0x42f   :  { %6232 = vrcp.f32 %v2037_v55  ;;  %v2043_v7 = vadd.f32 1.0, %v6227_v8  ;;  %v6229_v30 = vpop.eup %6228 }
 0x430   :  { %v6231_v32 = vpop.eup %6230 }
 0x431   :  { %6234 = vrcp.f32 %v2043_v7  ;;  %v2050_v59 = vadd.f32 1.0, %v6231_v32 }
 0x433   :  { %6236 = vrcp.f32 %v2050_v59  ;;  %v9068_v59 = vld [vmem:[#allocation96_spill] sm:$0xff] }
 0x43c   :  { %v6233_v42 = vpop.eup %6232 }
 0x43d   :  { %v2054_v28 = vmul.f32 %v6233_v42, %v6229_v30 }
 0x43e   :  { %v6235_v29 = vpop.eup %6234 }
 0x43f   :  { %v2053_v9 = vmul.f32 %v6235_v29, %v7558_v46  ;;  %v9053_v46 = vld [vmem:[#allocation52_spill] sm:$0xff]  ;;  %v9067_v29 = vld [vmem:[#allocation86_spill] sm:$0xff] }
 0x440   :  { %v6237_v23 = vpop.eup %6236  ;;  %v825_v13 = vadd.f32 %v9054_v12, %v9053_v46  ;;  %v9075_v12 = vld [vmem:[#allocation23_spill] sm:$0xff] }
 0x441   :  { %v7720_v25 = vadd.f32 %v2054_v28, %v2053_v9  ;;  %v9066_v28 = vld [vmem:[#allocation95_spill] sm:$0xff]  ;;  %v9069_v9 = vld [vmem:[#allocation97_spill] sm:$0xff] }
 0x443   :  { %6238 = vtanh.f32 %v7720_v25 }
 0x450   :  { %v6239_v22 = vpop.eup %6238 }
 0x451   :  { %v7723_v24 = vmul.f32 %v6239_v22, %v6237_v23  ;;  %v9070_v23 = vld [vmem:[#allocation98_spill] sm:$0xff]  ;;  %v9071_v22 = vld [vmem:[#allocation105_spill] sm:$0xff] }
 0x453   :  { %9052 = vst [vmem:[#allocation84_spill] sm:$0xff] %v7723_v24  ;;  %v2092_v35 = vpack.c.bf16 %v7723_v24, %v7723_v24  ;;  %v7882_v24 = vld [vmem:[#allocation10 + $0x44] ss:$16 sps:$4 sm:$0xff]  }
 0x454   :  { %9097 = vst [vmem:[#allocation103_spill] sm:$0xff] %v7882_v24 }
 0x455   :  { %2126 = vmatmul.mubr.bf16.vlgmr.msra.gmra.mxu0 %v2092_v35  ;;  %2167 = vmatmul.mubr.bf16.vlgmr.msra.gmra.mxu1 %v2092_v35  ;;  %v9072_v35 = vld [vmem:[#allocation20_spill] sm:$0xff] }
 0x456   :  { %v1982_v10 = vpop.f32.mrf.mxu0  ;;  %v2023_v39 = vpop.f32.mrf.mxu1  ;;  %2181 = vmatpush1.bf16.msra.mxu0 %v7293_v53  ;;  %2222 = vmatpush1.bf16.msra.mxu1 %v7295_v47 }
 0x457   :  { %v2030_v14 = vadd.f32 %v1982_v10, %v9055_v15  ;;  %2182 = vmatprep.subr.bf16.mxu0 %v7305_v45  ;;  %2223 = vmatprep.subr.bf16.mxu1 %v8971_v43  ;;  %v9073_v10 = vld [vmem:[#allocation21_spill] sm:$0xff] }
 0x458   :  { %v1984_v55 = vpop.f32.mrf.mxu0  ;;  %v2025_v8 = vpop.f32.mrf.mxu1  ;;  %2212 = vmatprep.mubr.bf16.mxu0 %v8944_v58  ;;  %2253 = vmatprep.mubr.bf16.mxu1 %v8944_v58  ;;  %v9077_v15 = vld [vmem:[#allocation25_spill] sm:$0xff] }
 0x459   :  { %v5433_v7 = vmul.f32 -1.442695, %v2030_v14  ;;  %v2031_v30 = vadd.f32 %v1984_v55, %v825_v13  ;;  %v9076_v13 = vld [vmem:[#allocation24_spill] sm:$0xff]  ;;  %v9079_v55 = vld [vmem:[#allocation33_spill] sm:$0xff] }
 0x45a   :  { %v1986_v53 = vpop.f32.mrf.mxu0  ;;  %v2027_v32 = vpop.f32.mrf.mxu1  ;;  %2183 = vmatpush1.bf16.msra.mxu0 %v7317_v0  ;;  %2224 = vmatpush1.bf16.msra.mxu1 %v7319_v50  ;;  %v9056_v0 = vld [vmem:[#allocation80_spill] sm:$0xff]  ;;  %v9057_v50 = vld [vmem:[#allocation79_spill] sm:$0xff] }
 0x45b   :  { %6240 = vpow2.f32 %v5433_v7  ;;  %v5434_v47 = vmul.f32 -1.442695, %v2031_v30  ;;  %2184 = vmatprep.subr.bf16.mxu0 %v7327_v54  ;;  %2225 = vmatprep.subr.bf16.mxu1 %v8973_v52  ;;  %v2033_v42 = vadd.f32 %v2025_v8, %v9056_v0  ;;  %v2032_v54 = vadd.f32 %v2023_v39, %v9057_v50  ;;  %v9074_v39 = vld [vmem:[#allocation22_spill] sm:$0xff]  ;;  %v9078_v14 = vld [vmem:[#allocation32_spill] sm:$0xff]  ;;  %v9083_v53 = vld [vmem:[#allocation77_spill] sm:$0xff] }
 0x45c   :  { %v1987_v45 = vpop.f32.mrf.mxu0  ;;  %v2028_v43 = vpop.f32.mrf.mxu1  ;;  %v9080_v8 = vld [vmem:[#allocation38_spill] sm:$0xff]  ;;  %v9081_v7 = vld [vmem:[#allocation36_spill] sm:$0xff] }
 0x45d   :  { %6242 = vpow2.f32 %v5434_v47  ;;  %v5435_v52 = vmul.f32 -1.442695, %v2033_v42  ;;  %v9082_v30 = vld [vmem:[#allocation76_spill] sm:$0xff]  ;;  %v9084_v45 = vld [vmem:[#allocation37_spill] sm:$0xff] }
 0x45e   :  { %2185 = vmatpush1.bf16.msra.mxu0 %v8974_v1  ;;  %2226 = vmatpush1.bf16.msra.mxu1 %v8975_v51  ;;  %6244 = vtanh.f32 %v2032_v54  ;;  %v9085_v54 = vld [vmem:[#allocation39_spill] sm:$0xff] }
 0x45f   :  { %2186 = vmatprep.subr.bf16.mxu0 %v8976_v41  ;;  %2227 = vmatprep.subr.bf16.mxu1 %v8977_v38  ;;  %6246 = vpow2.f32 %v5435_v52 }
 0x462   :  { %2187 = vmatpush1.bf16.msra.mxu0 %v8979_v48  ;;  %2228 = vmatpush1.bf16.msra.mxu1 %v8980_v2 }
 0x463   :  { %2188 = vmatprep.subr.bf16.mxu0 %v8981_v3  ;;  %2229 = vmatprep.subr.bf16.mxu1 %v8982_v57 }
 0x466   :  { %2189 = vmatpush1.bf16.msra.mxu0 %v8984_v6  ;;  %2230 = vmatpush1.bf16.msra.mxu1 %v8985_v60 }
 0x467   :  { %2190 = vmatprep.subr.bf16.mxu0 %v8986_v37  ;;  %2231 = vmatprep.subr.bf16.mxu1 %v9010_v27 }
 0x468   :  { %v6241_v1 = vpop.eup %6240 }
 0x469   :  { %v2061_v51 = vadd.f32 1.0, %v6241_v1 }
 0x46a   :  { %v6243_v41 = vpop.eup %6242  ;;  %2191 = vmatpush1.bf16.msra.mxu0 %v7379_v5  ;;  %2232 = vmatpush1.bf16.msra.mxu1 %v9011_v31 }
 0x46b   :  { %6248 = vrcp.f32 %v2061_v51  ;;  %v2067_v38 = vadd.f32 1.0, %v6243_v41  ;;  %2192 = vmatprep.subr.bf16.mxu0 %v9012_v33  ;;  %2233 = vmatprep.subr.bf16.mxu1 %v9013_v34  ;;  %v6245_v5 = vpop.eup %6244  ;;  %v9059_v34 = vld [vmem:[#allocation88_spill] sm:$0xff] }
 0x46c   :  { %v6247_v48 = vpop.eup %6246 }
 0x46d   :  { %6250 = vrcp.f32 %v2067_v38  ;;  %v2074_v6 = vadd.f32 1.0, %v6247_v48  ;;  %v9086_v48 = vld [vmem:[#allocation46_spill] sm:$0xff] }
 0x46e   :  { %2193 = vmatpush1.bf16.msra.mxu0 %v9014_v61  ;;  %2234 = vmatpush1.bf16.msra.mxu1 %v9015_v44  ;;  %v9060_v61 = vld [vmem:[#allocation90_spill] sm:$0xff]  ;;  %v9061_v44 = vld [vmem:[#allocation91_spill] sm:$0xff] }
 0x46f   :  { %2194 = vmatprep.subr.bf16.mxu0 %v8991_v36  ;;  %2235 = vmatprep.subr.bf16.mxu1 %v9016_v40  ;;  %6252 = vrcp.f32 %v2074_v6  ;;  %v9062_v40 = vld [vmem:[#allocation89_spill] sm:$0xff] }
 0x472   :  { %2195 = vmatpush1.bf16.msra.mxu0 %v9017_v4  ;;  %2236 = vmatpush1.bf16.msra.mxu1 %v9018_v56  ;;  %v9063_v4 = vld [vmem:[#allocation92_spill] sm:$0xff]  ;;  %v9064_v56 = vld [vmem:[#allocation93_spill] sm:$0xff] }
 0x473   :  { %2325 = vmatprep.subr.bf16.mxu0 %v7601_v63  ;;  %2366 = vmatprep.subr.bf16.mxu1 %v7604_v49 }
 0x478   :  { %v6249_v2 = vpop.eup %6248 }
 0x479   :  { %v2078_v3 = vmul.f32 %v6249_v2, %v6245_v5 }
 0x47a   :  { %v6251_v57 = vpop.eup %6250 }
 0x47b   :  { %v2077_v60 = vmul.f32 %v6251_v57, %v7608_v11  ;;  %v9065_v11 = vld [vmem:[#allocation94_spill] sm:$0xff] }
 0x47c   :  { %v6253_v36 = vpop.eup %6252 }
 0x47d   :  { %v7767_v37 = vadd.f32 %v2078_v3, %v2077_v60  ;;  %v9087_v3 = vld [vmem:[#allocation44_spill] sm:$0xff] }
 0x47f   :  { %6254 = vtanh.f32 %v7767_v37 }
 0x48c   :  { %v6255_v27 = vpop.eup %6254 }
 0x48d   :  { %v7770_v31 = vmul.f32 %v6255_v27, %v6253_v36 }
 0x48f   :  { %9058 = vst [vmem:[#allocation83_spill] sm:$0xff] %v7770_v31  ;;  %v2179_v33 = vpack.c.bf16 %v7770_v31, %v7770_v31 }
 0x491   :  { %2213 = vmatmul.mubr.bf16.vlgmr.msra.gmra.mxu0 %v2179_v33  ;;  %2254 = vmatmul.mubr.bf16.vlgmr.msra.gmra.mxu1 %v2179_v33 }
 0x492   :  { %2326 = vmatpush1.bf16.msra.mxu0 %v7615_v16  ;;  %2367 = vmatpush1.bf16.msra.mxu1 %v7618_v17 }
 0x493   :  { %2327 = vmatprep.subr.bf16.mxu0 %v7621_v62  ;;  %2368 = vmatprep.subr.bf16.mxu1 %v7624_v18 }
 0x494   :  { %2357 = vmatprep.mubr.bf16.mxu0 %v8944_v58  ;;  %2398 = vmatprep.mubr.bf16.mxu1 %v8944_v58 }
 0x496   :  { %2328 = vmatpush1.bf16.msra.mxu0 %v7629_v19  ;;  %2369 = vmatpush1.bf16.msra.mxu1 %v7632_v20 }
 0x497   :  { %2329 = vmatprep.subr.bf16.mxu0 %v7635_v21  ;;  %2370 = vmatprep.subr.bf16.mxu1 %v9059_v34 }
 0x49a   :  { %2330 = vmatpush1.bf16.msra.mxu0 %v9060_v61  ;;  %2371 = vmatpush1.bf16.msra.mxu1 %v9061_v44 }
 0x49b   :  { %2331 = vmatprep.subr.bf16.mxu0 %v9062_v40  ;;  %2372 = vmatprep.subr.bf16.mxu1 %v9063_v4 }
 0x49e   :  { %2332 = vmatpush1.bf16.msra.mxu0 %v9064_v56  ;;  %2373 = vmatpush1.bf16.msra.mxu1 %v9065_v11 }
 0x49f   :  { %2333 = vmatprep.subr.bf16.mxu0 %v9066_v28  ;;  %2374 = vmatprep.subr.bf16.mxu1 %v9067_v29 }
 0x4a2   :  { %2334 = vmatpush1.bf16.msra.mxu0 %v9068_v59  ;;  %2375 = vmatpush1.bf16.msra.mxu1 %v9069_v9 }
 0x4a3   :  { %2335 = vmatprep.subr.bf16.mxu0 %v9070_v23  ;;  %2376 = vmatprep.subr.bf16.mxu1 %v9071_v22 }
 0x4a6   :  { %2336 = vmatpush1.bf16.msra.mxu0 %v9072_v35  ;;  %2377 = vmatpush1.bf16.msra.mxu1 %v9073_v10 }
 0x4a7   :  { %2337 = vmatprep.subr.bf16.mxu0 %v9074_v39  ;;  %2378 = vmatprep.subr.bf16.mxu1 %v9075_v12 }
 0x4aa   :  { %2338 = vmatpush1.bf16.msra.mxu0 %v9076_v13  ;;  %2379 = vmatpush1.bf16.msra.mxu1 %v9077_v15 }
 0x4ab   :  { %2339 = vmatprep.subr.bf16.mxu0 %v9078_v14  ;;  %2380 = vmatprep.subr.bf16.mxu1 %v9079_v55 }
 0x4ae   :  { %2340 = vmatpush1.bf16.msra.mxu0 %v9080_v8  ;;  %2381 = vmatpush1.bf16.msra.mxu1 %v9081_v7 }
 0x4af   :  { %2412 = vmatprep.subr.bf16.mxu0 %v9082_v30  ;;  %2453 = vmatprep.subr.bf16.mxu1 %v9083_v53 }
 0x515   :  { %v2127_v32 = vpop.f32.mrf.mxu0  ;;  %v2168_v47 = vpop.f32.mrf.mxu1 }
 0x516   :  { %v2175_v43 = vadd.f32 %v2127_v32, %v9084_v45  ;;  %v2177_v57 = vadd.f32 %v2168_v47, %v9087_v3 }
 0x517   :  { %v2129_v0 = vpop.f32.mrf.mxu0  ;;  %v2170_v42 = vpop.f32.mrf.mxu1 }
 0x518   :  { %v5436_v50 = vmul.f32 -1.442695, %v2175_v43  ;;  %v2176_v52 = vadd.f32 %v2129_v0, %v9085_v54  ;;  %v2178_v2 = vadd.f32 %v2170_v42, %v9086_v48  ;;  %v7820_v48 = vld [vmem:[#allocation10 + $0xe0] ss:$16 sps:$4 sm:$0xff]  }
 0x519   :  { %v2131_v1 = vpop.f32.mrf.mxu0  ;;  %v2172_v51 = vpop.f32.mrf.mxu1 }
 0x51a   :  { %6256 = vpow2.f32 %v5436_v50  ;;  %v5437_v41 = vmul.f32 -1.442695, %v2176_v52  ;;  %v5438_v6 = vmul.f32 -1.442695, %v2178_v2  ;;  %v9089_v2 = vld [vmem:[#allocation69_spill] sm:$0xff] }
 0x51b   :  { %v2132_v38 = vpop.f32.mrf.mxu0  ;;  %v2173_v5 = vpop.f32.mrf.mxu1  ;;  %v819_v3 = vadd.f32 %v9089_v2, %v9053_v46  ;;  %v7849_v2 = vld [vmem:[#allocation10 + $0xa0] ss:$16 sps:$4 sm:$0xff]  }
 0x51c   :  { %6258 = vpow2.f32 %v5437_v41 }
 0x51d   :  { %6260 = vtanh.f32 %v2177_v57  ;;  %v9090_v57 = vld [vmem:[#allocation68_spill] sm:$0xff] }
 0x51e   :  { %6262 = vpow2.f32 %v5438_v6 }
 0x527   :  { %v6257_v60 = vpop.eup %6256 }
 0x528   :  { %v2269_v36 = vadd.f32 1.0, %v6257_v60  ;;  %v7829_v60 = vld [vmem:[#allocation10 + $0xc4] ss:$16 sps:$4 sm:$0xff]  }
 0x529   :  { %v6259_v27 = vpop.eup %6258 }
 0x52a   :  { %6264 = vrcp.f32 %v2269_v36  ;;  %v2275_v33 = vadd.f32 1.0, %v6259_v27  ;;  %v6261_v32 = vpop.eup %6260  ;;  %v7832_v36 = vld [vmem:[#allocation10 + $0xcc] ss:$16 sps:$4 sm:$0xff]  }
 0x52b   :  { %v6263_v45 = vpop.eup %6262 }
 0x52c   :  { %6266 = vrcp.f32 %v2275_v33  ;;  %v2282_v54 = vadd.f32 1.0, %v6263_v45 }
 0x52e   :  { %6268 = vrcp.f32 %v2282_v54  ;;  %v7840_v54 = vld [vmem:[#allocation10 + $0xc8] ss:$16 sps:$4 sm:$0xff]  }
 0x537   :  { %v6265_v43 = vpop.eup %6264 }
 0x538   :  { %v2286_v0 = vmul.f32 %v6265_v43, %v6261_v32 }
 0x539   :  { %v6267_v50 = vpop.eup %6266 }
 0x53a   :  { %v2285_v52 = vmul.f32 %v6267_v50, %v7720_v25  ;;  %v7823_v25 = vld [vmem:[#allocation10 + $0xe8] ss:$16 sps:$4 sm:$0xff]   ;;  %v7837_v50 = vld [vmem:[#allocation10 + $0xc0] ss:$16 sps:$4 sm:$0xff]  }
 0x53b   :  { %v6269_v47 = vpop.eup %6268 }
 0x53c   :  { %v7813_v42 = vadd.f32 %v2286_v0, %v2285_v52 }
 0x53e   :  { %6270 = vtanh.f32 %v7813_v42 }
 0x54b   :  { %v6271_v1 = vpop.eup %6270 }
 0x54c   :  { %v7816_v51 = vmul.f32 %v6271_v1, %v6269_v47  ;;  %v7843_v47 = vld [vmem:[#allocation10 + $0xa4] ss:$16 sps:$4 sm:$0xff]   ;;  %v7846_v1 = vld [vmem:[#allocation10 + $0xac] ss:$16 sps:$4 sm:$0xff]  }
 0x54e   :  { %9088 = vst [vmem:[#allocation99_spill] sm:$0xff] %v7816_v51  ;;  %v2324_v41 = vpack.c.bf16 %v7816_v51, %v7816_v51  ;;  %v9094_v51 = vld [vmem:[#allocation74_spill] sm:$0xff] }
 0x550   :  { %2358 = vmatmul.mubr.bf16.vlgmr.msra.gmra.mxu0 %v2324_v41  ;;  %2399 = vmatmul.mubr.bf16.vlgmr.msra.gmra.mxu1 %v2324_v41 }
 0x551   :  { %v2214_v38 = vpop.f32.mrf.mxu0  ;;  %v2255_v5 = vpop.f32.mrf.mxu1  ;;  %2413 = vmatpush1.bf16.msra.mxu0 %v7820_v48  ;;  %2454 = vmatpush1.bf16.msra.mxu1 %v7823_v25 }
 0x552   :  { %v2262_v6 = vadd.f32 %v2214_v38, %v9090_v57  ;;  %2414 = vmatprep.subr.bf16.mxu0 %v7829_v60  ;;  %2455 = vmatprep.subr.bf16.mxu1 %v7832_v36  ;;  %v7855_v57 = vld [vmem:[#allocation10 + $0x84] ss:$16 sps:$4 sm:$0xff]   ;;  %v2264_v31 = vadd.f32 %v2255_v5, %v9094_v51  ;;  %v7888_v5 = vld [vmem:[#allocation10 + $0x40] ss:$16 sps:$4 sm:$0xff]  }
 0x553   :  { %v2216_v27 = vpop.f32.mrf.mxu0  ;;  %v2257_v33 = vpop.f32.mrf.mxu1  ;;  %2444 = vmatprep.mubr.bf16.mxu0 %v8944_v58  ;;  %2485 = vmatprep.mubr.bf16.mxu1 %v8944_v58  ;;  %9099 = vst [vmem:[#allocation106_spill] sm:$0xff] %v7888_v5 }
 0x554   :  { %v5439_v32 = vmul.f32 -1.442695, %v2262_v6  ;;  %v2263_v45 = vadd.f32 %v2216_v27, %v819_v3  ;;  %v7852_v3 = vld [vmem:[#allocation10 + $0xa8] ss:$16 sps:$4 sm:$0xff]   ;;  %v7858_v6 = vld [vmem:[#allocation10 + $0x8c] ss:$16 sps:$4 sm:$0xff]  }
 0x555   :  { %v2218_v43 = vpop.f32.mrf.mxu0  ;;  %v2259_v0 = vpop.f32.mrf.mxu1  ;;  %2415 = vmatpush1.bf16.msra.mxu0 %v7837_v50  ;;  %2456 = vmatpush1.bf16.msra.mxu1 %v7840_v54  ;;  %v9091_v27 = vld [vmem:[#allocation60_spill] sm:$0xff] }
 0x556   :  { %6272 = vpow2.f32 %v5439_v32  ;;  %v5440_v52 = vmul.f32 -1.442695, %v2263_v45  ;;  %2416 = vmatprep.subr.bf16.mxu0 %v7843_v47  ;;  %2457 = vmatprep.subr.bf16.mxu1 %v7846_v1  ;;  %v9092_v32 = vld [vmem:[#allocation75_spill] sm:$0xff]  ;;  %v7863_v0 = vld [vmem:[#allocation10 + $0x80] ss:$16 sps:$4 sm:$0xff]  }
 0x557   :  { %v2219_v41 = vpop.f32.mrf.mxu0  ;;  %v2260_v38 = vpop.f32.mrf.mxu1  ;;  %v892_v45 = vadd.f32 %v9092_v32, %v9091_v27  ;;  %v7885_v27 = vld [vmem:[#allocation10 + $0x4c] ss:$16 sps:$4 sm:$0xff]  }
 0x558   :  { %6274 = vpow2.f32 %v5440_v52  ;;  %v7866_v52 = vld [vmem:[#allocation10 + $0x88] ss:$16 sps:$4 sm:$0xff]   ;;  %v7869_v41 = vld [vmem:[#allocation10 + $0x64] ss:$16 sps:$4 sm:$0xff]   ;;  %v7872_v38 = vld [vmem:[#allocation10 + $0x6c] ss:$16 sps:$4 sm:$0xff]  }
 0x559   :  { %2417 = vmatpush1.bf16.msra.mxu0 %v7849_v2  ;;  %2458 = vmatpush1.bf16.msra.mxu1 %v7852_v3  ;;  %v2265_v43 = vadd.f32 %v2257_v33, %v892_v45  ;;  %9093 = vst [vmem:[#allocation100_spill] sm:$0xff] %v7872_v38  ;;  %v7876_v33 = vld [vmem:[#allocation10 + $0x60] ss:$16 sps:$4 sm:$0xff]   ;;  %v7879_v45 = vld [vmem:[#allocation10 + $0x68] ss:$16 sps:$4 sm:$0xff]   ;;  %9098 = vst [vmem:[#allocation104_spill] sm:$0xff] %v7885_v27  ;;  %6276 = vtanh.f32 %v2264_v31 }
 0x55a   :  { %2418 = vmatprep.subr.bf16.mxu0 %v7855_v57  ;;  %2459 = vmatprep.subr.bf16.mxu1 %v7858_v6  ;;  %9095 = vst [vmem:[#allocation101_spill] sm:$0xff] %v7876_v33  ;;  %9096 = vst [vmem:[#allocation102_spill] sm:$0xff] %v7879_v45  ;;  %v7903_v31 = vld [vmem:[#allocation10 + $0x28] ss:$16 sps:$4 sm:$0xff]  }
 0x55b   :  { %v5441_v32 = vmul.f32 -1.442695, %v2265_v43  ;;  %v7891_v43 = vld [vmem:[#allocation10 + $0x48] ss:$16 sps:$4 sm:$0xff]   ;;  %9104 = vst [vmem:[#allocation41_spill] sm:$0xff] %v7903_v31 }
 0x55c   :  { %9100 = vst [vmem:[#allocation107_spill] sm:$0xff] %v7891_v43 }
 0x55d   :  { %2419 = vmatpush1.bf16.msra.mxu0 %v7863_v0  ;;  %2460 = vmatpush1.bf16.msra.mxu1 %v7866_v52  ;;  %6278 = vpow2.f32 %v5441_v32  ;;  %v7906_v32 = vld [vmem:[#allocation10 + $0x4] ss:$16 sps:$4 sm:$0xff]  }
 0x55e   :  { %2420 = vmatprep.subr.bf16.mxu0 %v7869_v41  ;;  %2461 = vmatprep.subr.bf16.mxu1 %v7872_v38  ;;  %9105 = vst [vmem:[#allocation40_spill] sm:$0xff] %v7906_v32 }
 0x561   :  { %2421 = vmatpush1.bf16.msra.mxu0 %v7876_v33  ;;  %2462 = vmatpush1.bf16.msra.mxu1 %v7879_v45 }
 0x562   :  { %2422 = vmatprep.subr.bf16.mxu0 %v7882_v24  ;;  %2463 = vmatprep.subr.bf16.mxu1 %v7885_v27  ;;  %v7894_v24 = vld [vmem:[#allocation10 + $0x24] ss:$16 sps:$4 sm:$0xff]   ;;  %v7897_v27 = vld [vmem:[#allocation10 + $0x2c] ss:$16 sps:$4 sm:$0xff]  }
 0x563   :  { %v6273_v46 = vpop.eup %6272  ;;  %9101 = vst [vmem:[#allocation108_spill] sm:$0xff] %v7894_v24  ;;  %9102 = vst [vmem:[#allocation35_spill] sm:$0xff] %v7897_v27 }
 0x564   :  { %v2293_v38 = vadd.f32 1.0, %v6273_v46  ;;  %v7900_v46 = vld [vmem:[#allocation10 + $0x20] ss:$16 sps:$4 sm:$0xff]  }
 0x565   :  { %v6275_v51 = vpop.eup %6274  ;;  %2423 = vmatpush1.bf16.msra.mxu0 %v7888_v5  ;;  %2464 = vmatpush1.bf16.msra.mxu1 %v7891_v43  ;;  %9103 = vst [vmem:[#allocation34_spill] sm:$0xff] %v7900_v46 }
 0x566   :  { %6280 = vrcp.f32 %v2293_v38  ;;  %v2299_v45 = vadd.f32 1.0, %v6275_v51  ;;  %2424 = vmatprep.subr.bf16.mxu0 %v7894_v24  ;;  %2465 = vmatprep.subr.bf16.mxu1 %v7897_v27  ;;  %v7909_v38 = vld [vmem:[#allocation10 + $0xc] ss:$16 sps:$4 sm:$0xff]   ;;  %v7912_v51 = vld [vmem:[#allocation10] ss:$16 sps:$4 sm:$0xff]  }
 0x567   :  { %9106 = vst [vmem:[#allocation73_spill] sm:$0xff] %v7909_v38  ;;  %9107 = vst [vmem:[#allocation71_spill] sm:$0xff] %v7912_v51 }
 0x568   :  { %6282 = vrcp.f32 %v2299_v45  ;;  %v7915_v45 = vld [vmem:[#allocation10 + $0x8] ss:$16 sps:$4 sm:$0xff]  }
 0x569   :  { %2425 = vmatpush1.bf16.msra.mxu0 %v7900_v46  ;;  %2466 = vmatpush1.bf16.msra.mxu1 %v7903_v31  ;;  %9108 = vst [vmem:[#allocation80_spill] sm:$0xff] %v7915_v45  ;;  %v6277_v31 = vpop.eup %6276 }
 0x56a   :  { %2426 = vmatprep.subr.bf16.mxu0 %v7906_v32  ;;  %2467 = vmatprep.subr.bf16.mxu1 %v7909_v38  ;;  %v6279_v46 = vpop.eup %6278 }
 0x56b   :  { %v2306_v43 = vadd.f32 1.0, %v6279_v46 }
 0x56d   :  { %2427 = vmatpush1.bf16.msra.mxu0 %v7912_v51  ;;  %2468 = vmatpush1.bf16.msra.mxu1 %v7915_v45  ;;  %6284 = vrcp.f32 %v2306_v43  ;;  %v9112_v43 = vld [vmem:[#allocation42_spill] sm:$0xff] }
 0x56e   :  { %2557 = vmatprep.subr.bf16.mxu0 %v7601_v63  ;;  %2598 = vmatprep.subr.bf16.mxu1 %v7604_v49 }
 0x573   :  { %v6281_v27 = vpop.eup %6280 }
 0x574   :  { %v2310_v32 = vmul.f32 %v6281_v27, %v6277_v31  ;;  %v9111_v27 = vld [vmem:[#allocation43_spill] sm:$0xff] }
 0x575   :  { %v6283_v24 = vpop.eup %6282 }
 0x576   :  { %v2309_v38 = vmul.f32 %v6283_v24, %v7767_v37  ;;  %v9110_v37 = vld [vmem:[#allocation28_spill] sm:$0xff] }
 0x578   :  { %v7921_v5 = vadd.f32 %v2310_v32, %v2309_v38 }
 0x57a   :  { %6286 = vtanh.f32 %v7921_v5  ;;  %v6285_v51 = vpop.eup %6284 }
 0x587   :  { %v6287_v33 = vpop.eup %6286 }
 0x588   :  { %v7924_v45 = vmul.f32 %v6287_v33, %v6285_v51  ;;  %v437_v33 = vadd.f32 %v9111_v27, %v9110_v37 }
 0x58a   :  { %9109 = vst [vmem:[#allocation79_spill] sm:$0xff] %v7924_v45  ;;  %v2411_v49 = vpack.c.bf16 %v7924_v45, %v7924_v45 }
 0x58c   :  { %2445 = vmatmul.mubr.bf16.vlgmr.msra.gmra.mxu0 %v2411_v49  ;;  %2486 = vmatmul.mubr.bf16.vlgmr.msra.gmra.mxu1 %v2411_v49 }
 0x58d   :  { %2558 = vmatpush1.bf16.msra.mxu0 %v7615_v16  ;;  %2599 = vmatpush1.bf16.msra.mxu1 %v7618_v17 }
 0x58e   :  { %2559 = vmatprep.subr.bf16.mxu0 %v7621_v62  ;;  %2600 = vmatprep.subr.bf16.mxu1 %v7624_v18 }
 0x58f   :  { %2589 = vmatprep.mubr.bf16.mxu0 %v8944_v58  ;;  %2630 = vmatprep.mubr.bf16.mxu1 %v8944_v58 }
 0x591   :  { %2560 = vmatpush1.bf16.msra.mxu0 %v7629_v19  ;;  %2601 = vmatpush1.bf16.msra.mxu1 %v7632_v20 }
 0x592   :  { %2561 = vmatprep.subr.bf16.mxu0 %v7635_v21  ;;  %2602 = vmatprep.subr.bf16.mxu1 %v9059_v34 }
 0x595   :  { %2562 = vmatpush1.bf16.msra.mxu0 %v9060_v61  ;;  %2603 = vmatpush1.bf16.msra.mxu1 %v9061_v44 }
 0x596   :  { %2563 = vmatprep.subr.bf16.mxu0 %v9062_v40  ;;  %2604 = vmatprep.subr.bf16.mxu1 %v9063_v4 }
 0x599   :  { %2564 = vmatpush1.bf16.msra.mxu0 %v9064_v56  ;;  %2605 = vmatpush1.bf16.msra.mxu1 %v9065_v11 }
 0x59a   :  { %2565 = vmatprep.subr.bf16.mxu0 %v9066_v28  ;;  %2606 = vmatprep.subr.bf16.mxu1 %v9067_v29 }
 0x59d   :  { %2566 = vmatpush1.bf16.msra.mxu0 %v9068_v59  ;;  %2607 = vmatpush1.bf16.msra.mxu1 %v9069_v9 }
 0x59e   :  { %2567 = vmatprep.subr.bf16.mxu0 %v9070_v23  ;;  %2608 = vmatprep.subr.bf16.mxu1 %v9071_v22 }
 0x5a1   :  { %2568 = vmatpush1.bf16.msra.mxu0 %v9072_v35  ;;  %2609 = vmatpush1.bf16.msra.mxu1 %v9073_v10 }
 0x5a2   :  { %2569 = vmatprep.subr.bf16.mxu0 %v9074_v39  ;;  %2610 = vmatprep.subr.bf16.mxu1 %v9075_v12 }
 0x5a5   :  { %2570 = vmatpush1.bf16.msra.mxu0 %v9076_v13  ;;  %2611 = vmatpush1.bf16.msra.mxu1 %v9077_v15  ;;  %v9114_v13 = vld [vmem:[#allocation48_spill] sm:$0xff] }
 0x5a6   :  { %2571 = vmatprep.subr.bf16.mxu0 %v9078_v14  ;;  %2612 = vmatprep.subr.bf16.mxu1 %v9079_v55 }
 0x5a9   :  { %2572 = vmatpush1.bf16.msra.mxu0 %v9080_v8  ;;  %2613 = vmatpush1.bf16.msra.mxu1 %v9081_v7 }
 0x5aa   :  { %2644 = vmatprep.subr.bf16.mxu0 %v9082_v30  ;;  %2685 = vmatprep.subr.bf16.mxu1 %v9083_v53  ;;  %v9113_v53 = vld [vmem:[#allocation49_spill] sm:$0xff] }
 0x5ab   :  { %v510_v30 = vadd.f32 %v9113_v53, %v9049_v26 }
 0x610   :  { %v2359_v49 = vpop.f32.mrf.mxu0  ;;  %v2400_v24 = vpop.f32.mrf.mxu1 }
 0x611   :  { %v2407_v46 = vadd.f32 %v2359_v49, %v9112_v43  ;;  %v2409_v12 = vadd.f32 %v2400_v24, %v9114_v13 }
 0x612   :  { %v2361_v31 = vpop.f32.mrf.mxu0  ;;  %v2402_v32 = vpop.f32.mrf.mxu1 }
 0x613   :  { %v5442_v38 = vmul.f32 -1.442695, %v2407_v46  ;;  %v2408_v51 = vadd.f32 %v2361_v31, %v437_v33  ;;  %v2410_v15 = vadd.f32 %v2402_v32, %v510_v30 }
 0x614   :  { %v2363_v45 = vpop.f32.mrf.mxu0  ;;  %v2404_v55 = vpop.f32.mrf.mxu1 }
 0x615   :  { %6288 = vpow2.f32 %v5442_v38  ;;  %v5443_v8 = vmul.f32 -1.442695, %v2408_v51  ;;  %v5444_v27 = vmul.f32 -1.442695, %v2410_v15 }
 0x616   :  { %v2364_v7 = vpop.f32.mrf.mxu0  ;;  %v2405_v14 = vpop.f32.mrf.mxu1 }
 0x617   :  { %6290 = vpow2.f32 %v5443_v8 }
 0x618   :  { %6292 = vtanh.f32 %v2409_v12 }
 0x619   :  { %6294 = vpow2.f32 %v5444_v27 }
 0x622   :  { %v6289_v37 = vpop.eup %6288 }
 0x623   :  { %v2501_v49 = vadd.f32 1.0, %v6289_v37 }
 0x624   :  { %v6291_v43 = vpop.eup %6290 }
 0x625   :  { %6296 = vrcp.f32 %v2501_v49  ;;  %v2507_v45 = vadd.f32 1.0, %v6291_v43  ;;  %v6293_v55 = vpop.eup %6292  ;;  %v9117_v49 = vld [vmem:[#allocation65_spill] sm:$0xff] }
 0x626   :  { %v6295_v33 = vpop.eup %6294 }
 0x627   :  { %6298 = vrcp.f32 %v2507_v45  ;;  %v2514_v46 = vadd.f32 1.0, %v6295_v33 }
 0x629   :  { %6300 = vrcp.f32 %v2514_v46 }
 0x632   :  { %v6297_v7 = vpop.eup %6296 }
 0x633   :  { %v2518_v14 = vmul.f32 %v6297_v7, %v6293_v55 }
 0x634   :  { %v6299_v8 = vpop.eup %6298 }
 0x635   :  { %v2517_v53 = vmul.f32 %v6299_v8, %v7813_v42  ;;  %v9116_v42 = vld [vmem:[#allocation63_spill] sm:$0xff]  ;;  %v9118_v8 = vld [vmem:[#allocation72_spill] sm:$0xff] }
 0x636   :  { %v6301_v13 = vpop.eup %6300 }
 0x637   :  { %v7969_v30 = vadd.f32 %v2518_v14, %v2517_v53  ;;  %v9119_v53 = vld [vmem:[#allocation100_spill] sm:$0xff] }
 0x639   :  { %6302 = vtanh.f32 %v7969_v30 }
 0x646   :  { %v6303_v12 = vpop.eup %6302 }
 0x647   :  { %v7972_v15 = vmul.f32 %v6303_v12, %v6301_v13  ;;  %v9120_v13 = vld [vmem:[#allocation70_spill] sm:$0xff] }
 0x649   :  { %9115 = vst [vmem:[#allocation88_spill] sm:$0xff] %v7972_v15  ;;  %v2556_v24 = vpack.c.bf16 %v7972_v15, %v7972_v15 }
 0x64b   :  { %2590 = vmatmul.mubr.bf16.vlgmr.msra.gmra.mxu0 %v2556_v24  ;;  %2631 = vmatmul.mubr.bf16.vlgmr.msra.gmra.mxu1 %v2556_v24 }
 0x64c   :  { %v2446_v37 = vpop.f32.mrf.mxu0  ;;  %v2487_v31 = vpop.f32.mrf.mxu1  ;;  %2645 = vmatpush1.bf16.msra.mxu0 %v7820_v48  ;;  %2686 = vmatpush1.bf16.msra.mxu1 %v7823_v25 }
 0x64d   :  { %v2494_v32 = vadd.f32 %v2446_v37, %v9116_v42  ;;  %2646 = vmatprep.subr.bf16.mxu0 %v7829_v60  ;;  %2687 = vmatprep.subr.bf16.mxu1 %v7832_v36  ;;  %v2496_v12 = vadd.f32 %v2487_v31, %v9120_v13  ;;  %v9121_v37 = vld [vmem:[#allocation101_spill] sm:$0xff]  ;;  %v9122_v42 = vld [vmem:[#allocation102_spill] sm:$0xff]  ;;  %v9133_v13 = vld [vmem:[#allocation71_spill] sm:$0xff] }
 0x64e   :  { %v2448_v38 = vpop.f32.mrf.mxu0  ;;  %v2489_v51 = vpop.f32.mrf.mxu1  ;;  %2676 = vmatprep.mubr.bf16.mxu0 %v8944_v58  ;;  %2717 = vmatprep.mubr.bf16.mxu1 %v8944_v58 }
 0x64f   :  { %v5445_v27 = vmul.f32 -1.442695, %v2494_v32  ;;  %v2495_v43 = vadd.f32 %v2448_v38, %v9117_v49  ;;  %v2497_v46 = vadd.f32 %v2489_v51, %v9118_v8  ;;  %v9123_v32 = vld [vmem:[#allocation103_spill] sm:$0xff]  ;;  %v9124_v38 = vld [vmem:[#allocation104_spill] sm:$0xff] }
 0x650   :  { %v2450_v45 = vpop.f32.mrf.mxu0  ;;  %v2491_v55 = vpop.f32.mrf.mxu1  ;;  %2647 = vmatpush1.bf16.msra.mxu0 %v7837_v50  ;;  %2688 = vmatpush1.bf16.msra.mxu1 %v7840_v54  ;;  %v9131_v8 = vld [vmem:[#allocation40_spill] sm:$0xff] }
 0x651   :  { %6304 = vpow2.f32 %v5445_v27  ;;  %v5446_v33 = vmul.f32 -1.442695, %v2495_v43  ;;  %2648 = vmatprep.subr.bf16.mxu0 %v7843_v47  ;;  %2689 = vmatprep.subr.bf16.mxu1 %v7846_v1  ;;  %v5447_v24 = vmul.f32 -1.442695, %v2497_v46  ;;  %v9125_v43 = vld [vmem:[#allocation106_spill] sm:$0xff]  ;;  %v9126_v45 = vld [vmem:[#allocation107_spill] sm:$0xff] }
 0x652   :  { %v2451_v7 = vpop.f32.mrf.mxu0  ;;  %v2492_v14 = vpop.f32.mrf.mxu1  ;;  %v9127_v55 = vld [vmem:[#allocation108_spill] sm:$0xff]  ;;  %v9132_v46 = vld [vmem:[#allocation73_spill] sm:$0xff] }
 0x653   :  { %6306 = vpow2.f32 %v5446_v33  ;;  %v9128_v33 = vld [vmem:[#allocation35_spill] sm:$0xff]  ;;  %v9129_v7 = vld [vmem:[#allocation34_spill] sm:$0xff]  ;;  %v9130_v14 = vld [vmem:[#allocation41_spill] sm:$0xff] }
 0x654   :  { %2649 = vmatpush1.bf16.msra.mxu0 %v7849_v2  ;;  %2690 = vmatpush1.bf16.msra.mxu1 %v7852_v3  ;;  %6308 = vtanh.f32 %v2496_v12  ;;  %v9134_v12 = vld [vmem:[#allocation80_spill] sm:$0xff] }
 0x655   :  { %2650 = vmatprep.subr.bf16.mxu0 %v7855_v57  ;;  %2691 = vmatprep.subr.bf16.mxu1 %v7858_v6  ;;  %6310 = vpow2.f32 %v5447_v24  ;;  %v9135_v24 = vld [vmem:[#allocation85_spill] sm:$0xff] }
 0x658   :  { %2651 = vmatpush1.bf16.msra.mxu0 %v7863_v0  ;;  %2692 = vmatpush1.bf16.msra.mxu1 %v7866_v52 }
 0x659   :  { %2652 = vmatprep.subr.bf16.mxu0 %v7869_v41  ;;  %2693 = vmatprep.subr.bf16.mxu1 %v9119_v53 }
 0x65c   :  { %2653 = vmatpush1.bf16.msra.mxu0 %v9121_v37  ;;  %2694 = vmatpush1.bf16.msra.mxu1 %v9122_v42 }
 0x65d   :  { %2654 = vmatprep.subr.bf16.mxu0 %v9123_v32  ;;  %2695 = vmatprep.subr.bf16.mxu1 %v9124_v38 }
 0x65e   :  { %v6305_v51 = vpop.eup %6304 }
 0x65f   :  { %v2525_v27 = vadd.f32 1.0, %v6305_v51 }
 0x660   :  { %v6307_v49 = vpop.eup %6306  ;;  %2655 = vmatpush1.bf16.msra.mxu0 %v9125_v43  ;;  %2696 = vmatpush1.bf16.msra.mxu1 %v9126_v45 }
 0x661   :  { %6312 = vrcp.f32 %v2525_v27  ;;  %v2531_v31 = vadd.f32 1.0, %v6307_v49  ;;  %2656 = vmatprep.subr.bf16.mxu0 %v9127_v55  ;;  %2697 = vmatprep.subr.bf16.mxu1 %v9128_v33  ;;  %v6309_v51 = vpop.eup %6308 }
 0x662   :  { %v6311_v27 = vpop.eup %6310 }
 0x663   :  { %6314 = vrcp.f32 %v2531_v31  ;;  %v2538_v26 = vadd.f32 1.0, %v6311_v27 }
 0x664   :  { %2657 = vmatpush1.bf16.msra.mxu0 %v9129_v7  ;;  %2698 = vmatpush1.bf16.msra.mxu1 %v9130_v14 }
 0x665   :  { %2658 = vmatprep.subr.bf16.mxu0 %v9131_v8  ;;  %2699 = vmatprep.subr.bf16.mxu1 %v9132_v46  ;;  %6316 = vrcp.f32 %v2538_v26  ;;  %v9143_v26 = vld [vmem:[#allocation76_spill] sm:$0xff] }
 0x668   :  { %2659 = vmatpush1.bf16.msra.mxu0 %v9133_v13  ;;  %2700 = vmatpush1.bf16.msra.mxu1 %v9134_v12 }
 0x669   :  { %2789 = vmatprep.subr.bf16.mxu0 %v7601_v63  ;;  %2830 = vmatprep.subr.bf16.mxu1 %v9135_v24 }
 0x66e   :  { %v6313_v49 = vpop.eup %6312 }
 0x66f   :  { %v2542_v31 = vmul.f32 %v6313_v49, %v6309_v51 }
 0x670   :  { %v6315_v15 = vpop.eup %6314 }
 0x671   :  { %v2541_v14 = vmul.f32 %v6315_v15, %v7921_v5  ;;  %v9148_v15 = vld [vmem:[#allocation53_spill] sm:$0xff] }
 0x672   :  { %v6317_v13 = vpop.eup %6316 }
 0x673   :  { %v8015_v7 = vadd.f32 %v2542_v31, %v2541_v14 }
 0x675   :  { %6318 = vtanh.f32 %v8015_v7 }
 0x682   :  { %v6319_v46 = vpop.eup %6318 }
 0x683   :  { %v8018_v12 = vmul.f32 %v6319_v46, %v6317_v13 }
 0x685   :  { %v2643_v63 = vpack.c.bf16 %v8018_v12, %v8018_v12 }
 0x687   :  { %2677 = vmatmul.mubr.bf16.vlgmr.msra.gmra.mxu0 %v2643_v63  ;;  %2718 = vmatmul.mubr.bf16.vlgmr.msra.gmra.mxu1 %v2643_v63 }
 0x688   :  { %2790 = vmatpush1.bf16.msra.mxu0 %v7615_v16  ;;  %2831 = vmatpush1.bf16.msra.mxu1 %v7618_v17  ;;  %v9136_v16 = vld [vmem:[#allocation23_spill] sm:$0xff]  ;;  %v9137_v17 = vld [vmem:[#allocation24_spill] sm:$0xff] }
 0x689   :  { %2791 = vmatprep.subr.bf16.mxu0 %v7621_v62  ;;  %2832 = vmatprep.subr.bf16.mxu1 %v7624_v18  ;;  %v9138_v62 = vld [vmem:[#allocation25_spill] sm:$0xff]  ;;  %v9139_v18 = vld [vmem:[#allocation32_spill] sm:$0xff] }
 0x68a   :  { %2821 = vmatprep.mubr.bf16.mxu0 %v8944_v58  ;;  %2862 = vmatprep.mubr.bf16.mxu1 %v8944_v58 }
 0x68c   :  { %2792 = vmatpush1.bf16.msra.mxu0 %v7629_v19  ;;  %2833 = vmatpush1.bf16.msra.mxu1 %v7632_v20  ;;  %v9140_v19 = vld [vmem:[#allocation33_spill] sm:$0xff]  ;;  %v9141_v20 = vld [vmem:[#allocation38_spill] sm:$0xff] }
 0x68d   :  { %2793 = vmatprep.subr.bf16.mxu0 %v7635_v21  ;;  %2834 = vmatprep.subr.bf16.mxu1 %v9059_v34  ;;  %v9142_v21 = vld [vmem:[#allocation36_spill] sm:$0xff]  ;;  %v9144_v34 = vld [vmem:[#allocation77_spill] sm:$0xff] }
 0x690   :  { %2794 = vmatpush1.bf16.msra.mxu0 %v9060_v61  ;;  %2835 = vmatpush1.bf16.msra.mxu1 %v9061_v44 }
 0x691   :  { %2795 = vmatprep.subr.bf16.mxu0 %v9062_v40  ;;  %2836 = vmatprep.subr.bf16.mxu1 %v9063_v4  ;;  %v9145_v40 = vld [vmem:[#allocation45_spill] sm:$0xff] }
 0x694   :  { %2796 = vmatpush1.bf16.msra.mxu0 %v9064_v56  ;;  %2837 = vmatpush1.bf16.msra.mxu1 %v9065_v11 }
 0x695   :  { %2797 = vmatprep.subr.bf16.mxu0 %v9066_v28  ;;  %2838 = vmatprep.subr.bf16.mxu1 %v9067_v29  ;;  %v9146_v29 = vld [vmem:[#allocation47_spill] sm:$0xff] }
 0x698   :  { %2798 = vmatpush1.bf16.msra.mxu0 %v9068_v59  ;;  %2839 = vmatpush1.bf16.msra.mxu1 %v9069_v9 }
 0x699   :  { %2799 = vmatprep.subr.bf16.mxu0 %v9070_v23  ;;  %2840 = vmatprep.subr.bf16.mxu1 %v9071_v22 }
 0x69c   :  { %2800 = vmatpush1.bf16.msra.mxu0 %v9072_v35  ;;  %2841 = vmatpush1.bf16.msra.mxu1 %v9073_v10 }
 0x69d   :  { %2801 = vmatprep.subr.bf16.mxu0 %v9074_v39  ;;  %2842 = vmatprep.subr.bf16.mxu1 %v9136_v16  ;;  %v9147_v39 = vld [vmem:[#allocation55_spill] sm:$0xff] }
 0x6a0   :  { %2802 = vmatpush1.bf16.msra.mxu0 %v9137_v17  ;;  %2843 = vmatpush1.bf16.msra.mxu1 %v9138_v62 }
 0x6a1   :  { %2803 = vmatprep.subr.bf16.mxu0 %v9139_v18  ;;  %2844 = vmatprep.subr.bf16.mxu1 %v9140_v19 }
 0x6a4   :  { %2804 = vmatpush1.bf16.msra.mxu0 %v9141_v20  ;;  %2845 = vmatpush1.bf16.msra.mxu1 %v9142_v21 }
 0x6a5   :  { %2876 = vmatprep.subr.bf16.mxu0 %v9143_v26  ;;  %2917 = vmatprep.subr.bf16.mxu1 %v9144_v34 }
 0x70b   :  { %v2591_v61 = vpop.f32.mrf.mxu0  ;;  %v2632_v44 = vpop.f32.mrf.mxu1 }
 0x70c   :  { %v2639_v4 = vadd.f32 %v2591_v61, %v9145_v40  ;;  %v2641_v14 = vadd.f32 %v2632_v44, %v9148_v15  ;;  %v9150_v40 = vld [vmem:[#allocation61_spill] sm:$0xff] }
 0x70d   :  { %v2593_v56 = vpop.f32.mrf.mxu0  ;;  %v2634_v11 = vpop.f32.mrf.mxu1 }
 0x70e   :  { %v5448_v28 = vmul.f32 -1.442695, %v2639_v4  ;;  %v2640_v59 = vadd.f32 %v2593_v56, %v9146_v29  ;;  %v2642_v5 = vadd.f32 %v2634_v11, %v9147_v39  ;;  %v9151_v56 = vld [vmem:[#allocation59_spill] sm:$0xff] }
 0x70f   :  { %v2595_v9 = vpop.f32.mrf.mxu0  ;;  %v2636_v23 = vpop.f32.mrf.mxu1 }
 0x710   :  { %6320 = vpow2.f32 %v5448_v28  ;;  %v5449_v22 = vmul.f32 -1.442695, %v2640_v59  ;;  %v5450_v46 = vmul.f32 -1.442695, %v2642_v5 }
 0x711   :  { %v2596_v35 = vpop.f32.mrf.mxu0  ;;  %v2637_v10 = vpop.f32.mrf.mxu1 }
 0x712   :  { %6322 = vpow2.f32 %v5449_v22  ;;  %v9153_v22 = vld [vmem:[#allocation67_spill] sm:$0xff] }
 0x713   :  { %6324 = vtanh.f32 %v2641_v14 }
 0x714   :  { %6326 = vpow2.f32 %v5450_v46  ;;  %v5888_v46 = vld [vmem:[#allocation11 + $0xe0] ss:$16 sps:$4 sm:$0xff]  }
 0x71d   :  { %v6321_v13 = vpop.eup %6320 }
 0x71e   :  { %v2733_v24 = vadd.f32 1.0, %v6321_v13  ;;  %v5890_v13 = vld [vmem:[#allocation11 + $0xe4] ss:$16 sps:$4 sm:$0xff]  }
 0x71f   :  { %v6323_v51 = vpop.eup %6322 }
 0x720   :  { %6328 = vrcp.f32 %v2733_v24  ;;  %v2739_v27 = vadd.f32 1.0, %v6323_v51  ;;  %v6325_v49 = vpop.eup %6324  ;;  %v5891_v24 = vld [vmem:[#allocation11 + $0xe8] ss:$16 sps:$4 sm:$0xff]   ;;  %v5893_v51 = vld [vmem:[#allocation11 + $0xec] ss:$16 sps:$4 sm:$0xff]  }
 0x721   :  { %v6327_v31 = vpop.eup %6326 }
 0x722   :  { %6330 = vrcp.f32 %v2739_v27  ;;  %v2746_v62 = vadd.f32 1.0, %v6327_v31  ;;  %v5896_v27 = vld [vmem:[#allocation11 + $0xc4] ss:$16 sps:$4 sm:$0xff]   ;;  %v5897_v31 = vld [vmem:[#allocation11 + $0xc8] ss:$16 sps:$4 sm:$0xff]  }
 0x724   :  { %6332 = vrcp.f32 %v2746_v62  ;;  %v5903_v62 = vld [vmem:[#allocation11 + $0xa8] ss:$16 sps:$4 sm:$0xff]  }
 0x72d   :  { %v6329_v63 = vpop.eup %6328 }
 0x72e   :  { %v2750_v16 = vmul.f32 %v6329_v63, %v6325_v49  ;;  %v5894_v49 = vld [vmem:[#allocation11 + $0xc0] ss:$16 sps:$4 sm:$0xff]   ;;  %v5902_v63 = vld [vmem:[#allocation11 + $0xa4] ss:$16 sps:$4 sm:$0xff]  }
 0x72f   :  { %v6331_v17 = vpop.eup %6330 }
 0x730   :  { %v2749_v18 = vmul.f32 %v6331_v17, %v7969_v30  ;;  %v9149_v30 = vld [vmem:[#allocation52_spill] sm:$0xff] }
 0x731   :  { %v6333_v20 = vpop.eup %6332  ;;  %v809_v4 = vadd.f32 %v9150_v40, %v9149_v30  ;;  %v5900_v17 = vld [vmem:[#allocation11 + $0xa0] ss:$16 sps:$4 sm:$0xff]   ;;  %v5915_v40 = vld [vmem:[#allocation11 + $0x68] ss:$16 sps:$4 sm:$0xff]  }
 0x732   :  { %v8061_v19 = vadd.f32 %v2750_v16, %v2749_v18  ;;  %v5905_v16 = vld [vmem:[#allocation11 + $0xac] ss:$16 sps:$4 sm:$0xff]   ;;  %v5908_v18 = vld [vmem:[#allocation11 + $0x84] ss:$16 sps:$4 sm:$0xff]   ;;  %v5912_v30 = vld [vmem:[#allocation11 + $0x60] ss:$16 sps:$4 sm:$0xff]  }
 0x734   :  { %6334 = vtanh.f32 %v8061_v19 }
 0x741   :  { %v6335_v21 = vpop.eup %6334 }
 0x742   :  { %v8064_v26 = vmul.f32 %v6335_v21, %v6333_v20  ;;  %v5911_v20 = vld [vmem:[#allocation11 + $0x8c] ss:$16 sps:$4 sm:$0xff]   ;;  %v5906_v21 = vld [vmem:[#allocation11 + $0x80] ss:$16 sps:$4 sm:$0xff]  }
 0x744   :  { %v2788_v34 = vpack.c.bf16 %v8064_v26, %v8064_v26 }
 0x746   :  { %2822 = vmatmul.mubr.bf16.vlgmr.msra.gmra.mxu0 %v2788_v34  ;;  %2863 = vmatmul.mubr.bf16.vlgmr.msra.gmra.mxu1 %v2788_v34  ;;  %v5909_v34 = vld [vmem:[#allocation11 + $0x88] ss:$16 sps:$4 sm:$0xff]  }
 0x747   :  { %v2678_v61 = vpop.f32.mrf.mxu0  ;;  %v2719_v44 = vpop.f32.mrf.mxu1  ;;  %2877 = vmatpush1.bf16.msra.mxu0 %v7820_v48  ;;  %2918 = vmatpush1.bf16.msra.mxu1 %v7823_v25 }
 0x748   :  { %v2726_v11 = vadd.f32 %v2678_v61, %v9151_v56  ;;  %2878 = vmatprep.subr.bf16.mxu0 %v7829_v60  ;;  %2919 = vmatprep.subr.bf16.mxu1 %v7832_v36  ;;  %v5914_v61 = vld [vmem:[#allocation11 + $0x64] ss:$16 sps:$4 sm:$0xff]   ;;  %v5923_v56 = vld [vmem:[#allocation11 + $0x4c] ss:$16 sps:$4 sm:$0xff]  }
 0x749   :  { %v2680_v28 = vpop.f32.mrf.mxu0  ;;  %v2721_v29 = vpop.f32.mrf.mxu1  ;;  %2908 = vmatprep.mubr.bf16.mxu0 %v8944_v58  ;;  %2949 = vmatprep.mubr.bf16.mxu1 %v8944_v58 }
 0x74a   :  { %v5451_v59 = vmul.f32 -1.442695, %v2726_v11  ;;  %v2727_v9 = vadd.f32 %v2680_v28, %v809_v4  ;;  %v5920_v4 = vld [vmem:[#allocation11 + $0x44] ss:$16 sps:$4 sm:$0xff]   ;;  %v5918_v11 = vld [vmem:[#allocation11 + $0x40] ss:$16 sps:$4 sm:$0xff]  }
 0x74b   :  { %v2682_v48 = vpop.f32.mrf.mxu0  ;;  %v2723_v23 = vpop.f32.mrf.mxu1  ;;  %2879 = vmatpush1.bf16.msra.mxu0 %v7837_v50  ;;  %2920 = vmatpush1.bf16.msra.mxu1 %v7840_v54  ;;  %v9152_v50 = vld [vmem:[#allocation60_spill] sm:$0xff]  ;;  %v5921_v28 = vld [vmem:[#allocation11 + $0x48] ss:$16 sps:$4 sm:$0xff]  }
 0x74c   :  { %6336 = vpow2.f32 %v5451_v59  ;;  %v5452_v25 = vmul.f32 -1.442695, %v2727_v9  ;;  %2880 = vmatprep.subr.bf16.mxu0 %v7843_v47  ;;  %2921 = vmatprep.subr.bf16.mxu1 %v7846_v1  ;;  %v882_v54 = vadd.f32 %v9153_v22, %v9152_v50  ;;  %v9154_v47 = vld [vmem:[#allocation66_spill] sm:$0xff]  ;;  %v5929_v59 = vld [vmem:[#allocation11 + $0x2c] ss:$16 sps:$4 sm:$0xff]  }
 0x74d   :  { %v2683_v60 = vpop.f32.mrf.mxu0  ;;  %v2724_v36 = vpop.f32.mrf.mxu1  ;;  %v2728_v1 = vadd.f32 %v2719_v44, %v9154_v47  ;;  %v5917_v44 = vld [vmem:[#allocation11 + $0x6c] ss:$16 sps:$4 sm:$0xff]   ;;  %v5924_v9 = vld [vmem:[#allocation11 + $0x20] ss:$16 sps:$4 sm:$0xff]   ;;  %v5927_v48 = vld [vmem:[#allocation11 + $0x28] ss:$16 sps:$4 sm:$0xff]  }
 0x74e   :  { %6338 = vpow2.f32 %v5452_v25  ;;  %v2729_v35 = vadd.f32 %v2721_v29, %v882_v54  ;;  %v5926_v29 = vld [vmem:[#allocation11 + $0x24] ss:$16 sps:$4 sm:$0xff]   ;;  %v5935_v25 = vld [vmem:[#allocation11 + $0xc] ss:$16 sps:$4 sm:$0xff]   ;;  %v5930_v60 = vld [vmem:[#allocation11] ss:$16 sps:$4 sm:$0xff]  }
 0x74f   :  { %2881 = vmatpush1.bf16.msra.mxu0 %v7849_v2  ;;  %2922 = vmatpush1.bf16.msra.mxu1 %v7852_v3  ;;  %6340 = vtanh.f32 %v2728_v1  ;;  %v5932_v23 = vld [vmem:[#allocation11 + $0x4] ss:$16 sps:$4 sm:$0xff]   ;;  %v5933_v36 = vld [vmem:[#allocation11 + $0x8] ss:$16 sps:$4 sm:$0xff]   ;;  %v5941_v22 = vld [vmem:[#allocation11 + $0x1ec] ss:$16 sps:$4 sm:$0xff]  }
 0x750   :  { %2882 = vmatprep.subr.bf16.mxu0 %v7855_v57  ;;  %2923 = vmatprep.subr.bf16.mxu1 %v7858_v6  ;;  %v5453_v2 = vmul.f32 -1.442695, %v2729_v35  ;;  %v5938_v50 = vld [vmem:[#allocation11 + $0x1e4] ss:$16 sps:$4 sm:$0xff]   ;;  %v5936_v54 = vld [vmem:[#allocation11 + $0x1e0] ss:$16 sps:$4 sm:$0xff]  }
 0x751   :  { %v5939_v35 = vld [vmem:[#allocation11 + $0x1e8] ss:$16 sps:$4 sm:$0xff]   ;;  %v5944_v47 = vld [vmem:[#allocation11 + $0x1c4] ss:$16 sps:$4 sm:$0xff]   ;;  %v5947_v1 = vld [vmem:[#allocation11 + $0x1cc] ss:$16 sps:$4 sm:$0xff]  }
 0x752   :  { %6342 = vpow2.f32 %v5453_v2  ;;  %v5942_v2 = vld [vmem:[#allocation11 + $0x1c0] ss:$16 sps:$4 sm:$0xff]  }
 0x753   :  { %2883 = vmatpush1.bf16.msra.mxu0 %v7863_v0  ;;  %2924 = vmatpush1.bf16.msra.mxu1 %v7866_v52  ;;  %v9155_v52 = vld [vmem:[#allocation34_spill] sm:$0xff] }
 0x754   :  { %2884 = vmatprep.subr.bf16.mxu0 %v7869_v41  ;;  %2925 = vmatprep.subr.bf16.mxu1 %v9119_v53  ;;  %v9156_v41 = vld [vmem:[#allocation41_spill] sm:$0xff] }
 0x755   :  { %v9157_v53 = vld [vmem:[#allocation73_spill] sm:$0xff] }
 0x757   :  { %2885 = vmatpush1.bf16.msra.mxu0 %v9121_v37  ;;  %2926 = vmatpush1.bf16.msra.mxu1 %v9122_v42  ;;  %v9158_v37 = vld [vmem:[#allocation71_spill] sm:$0xff]  ;;  %v9159_v42 = vld [vmem:[#allocation80_spill] sm:$0xff] }
 0x758   :  { %2886 = vmatprep.subr.bf16.mxu0 %v9123_v32  ;;  %2927 = vmatprep.subr.bf16.mxu1 %v9124_v38 }
 0x759   :  { %v6337_v3 = vpop.eup %6336 }
 0x75a   :  { %v2757_v57 = vadd.f32 1.0, %v6337_v3  ;;  %v5945_v3 = vld [vmem:[#allocation11 + $0x1c8] ss:$16 sps:$4 sm:$0xff]  }
 0x75b   :  { %v6339_v6 = vpop.eup %6338  ;;  %2887 = vmatpush1.bf16.msra.mxu0 %v9125_v43  ;;  %2928 = vmatpush1.bf16.msra.mxu1 %v9126_v45 }
 0x75c   :  { %6344 = vrcp.f32 %v2757_v57  ;;  %v2763_v0 = vadd.f32 1.0, %v6339_v6  ;;  %2888 = vmatprep.subr.bf16.mxu0 %v9127_v55  ;;  %2929 = vmatprep.subr.bf16.mxu1 %v9128_v33  ;;  %v6341_v32 = vpop.eup %6340  ;;  %v5950_v57 = vld [vmem:[#allocation11 + $0x1a4] ss:$16 sps:$4 sm:$0xff]   ;;  %v5953_v6 = vld [vmem:[#allocation11 + $0x1ac] ss:$16 sps:$4 sm:$0xff]  }
 0x75e   :  { %6346 = vrcp.f32 %v2763_v0  ;;  %v5948_v0 = vld [vmem:[#allocation11 + $0x1a0] ss:$16 sps:$4 sm:$0xff]  }
 0x75f   :  { %2889 = vmatpush1.bf16.msra.mxu0 %v9155_v52  ;;  %2930 = vmatpush1.bf16.msra.mxu1 %v9156_v41  ;;  %v6343_v38 = vpop.eup %6342  ;;  %v5951_v52 = vld [vmem:[#allocation11 + $0x1a8] ss:$16 sps:$4 sm:$0xff]   ;;  %v5954_v41 = vld [vmem:[#allocation11 + $0x180] ss:$16 sps:$4 sm:$0xff]  }
 0x760   :  { %2890 = vmatprep.subr.bf16.mxu0 %v9131_v8  ;;  %2931 = vmatprep.subr.bf16.mxu1 %v9157_v53  ;;  %v2770_v10 = vadd.f32 1.0, %v6343_v38  ;;  %v5956_v53 = vld [vmem:[#allocation11 + $0x184] ss:$16 sps:$4 sm:$0xff]   ;;  %v5965_v38 = vld [vmem:[#allocation11 + $0x16c] ss:$16 sps:$4 sm:$0xff]  }
 0x762   :  { %6348 = vrcp.f32 %v2770_v10  ;;  %v5971_v10 = vld [vmem:[#allocation11 + $0x14c] ss:$16 sps:$4 sm:$0xff]  }
 0x763   :  { %2891 = vmatpush1.bf16.msra.mxu0 %v9158_v37  ;;  %2932 = vmatpush1.bf16.msra.mxu1 %v9159_v42  ;;  %v5957_v37 = vld [vmem:[#allocation11 + $0x188] ss:$16 sps:$4 sm:$0xff]   ;;  %v5959_v42 = vld [vmem:[#allocation11 + $0x18c] ss:$16 sps:$4 sm:$0xff]  }
 0x764   :  { %3442 = vmatprep.subr.bf16.mxu0 %v5890_v13  ;;  %3515 = vmatprep.subr.bf16.mxu1 %v5893_v51  ;;  %v5975_v13 = vld [vmem:[#allocation11 + $0x128] ss:$16 sps:$4 sm:$0xff]   ;;  %v5983_v51 = vld [vmem:[#allocation11 + $0x10c] ss:$16 sps:$4 sm:$0xff]  }
 0x769   :  { %v6345_v43 = vpop.eup %6344 }
 0x76a   :  { %v2774_v45 = vmul.f32 %v6345_v43, %v6341_v32  ;;  %v5962_v32 = vld [vmem:[#allocation11 + $0x164] ss:$16 sps:$4 sm:$0xff]   ;;  %v5960_v43 = vld [vmem:[#allocation11 + $0x160] ss:$16 sps:$4 sm:$0xff]  }
 0x76b   :  { %v6347_v55 = vpop.eup %6346 }
 0x76c   :  { %v2773_v33 = vmul.f32 %v6347_v55, %v8015_v7  ;;  %v5899_v7 = vld [vmem:[#allocation11 + $0xcc] ss:$16 sps:$4 sm:$0xff]   ;;  %v5968_v55 = vld [vmem:[#allocation11 + $0x144] ss:$16 sps:$4 sm:$0xff]  }
 0x76e   :  { %v8107_v39 = vadd.f32 %v2774_v45, %v2773_v33  ;;  %v5963_v45 = vld [vmem:[#allocation11 + $0x168] ss:$16 sps:$4 sm:$0xff]   ;;  %v5966_v33 = vld [vmem:[#allocation11 + $0x140] ss:$16 sps:$4 sm:$0xff]  }
 0x76f   :  { %v6349_v8 = vpop.eup %6348 }
 0x770   :  { %6350 = vtanh.f32 %v8107_v39 }
 0x77d   :  { %v6351_v5 = vpop.eup %6350 }
 0x77e   :  { %v8110_v15 = vmul.f32 %v6351_v5, %v6349_v8  ;;  %v5969_v8 = vld [vmem:[#allocation11 + $0x148] ss:$16 sps:$4 sm:$0xff]   ;;  %v5974_v5 = vld [vmem:[#allocation11 + $0x124] ss:$16 sps:$4 sm:$0xff]  }
 0x780   :  { %v2875_v14 = vpack.c.bf16 %v8110_v15, %v8110_v15 }
 0x782   :  { %2909 = vmatmul.mubr.bf16.vlgmr.msra.gmra.mxu0 %v2875_v14  ;;  %2950 = vmatmul.mubr.bf16.vlgmr.msra.gmra.mxu1 %v2875_v14  ;;  %v5977_v14 = vld [vmem:[#allocation11 + $0x12c] ss:$16 sps:$4 sm:$0xff]  }
 0x783   :  { %3443 = vmatpush1.bf16.msra.mxu0 %v5888_v46  ;;  %3516 = vmatpush1.bf16.msra.mxu1 %v5891_v24  ;;  %v5972_v46 = vld [vmem:[#allocation11 + $0x120] ss:$16 sps:$4 sm:$0xff]   ;;  %v5980_v24 = vld [vmem:[#allocation11 + $0x104] ss:$16 sps:$4 sm:$0xff]  }
 0x784   :  { %3444 = vmatprep.subr.bf16.mxu0 %v5896_v27  ;;  %3517 = vmatprep.subr.bf16.mxu1 %v5899_v7  ;;  %v5978_v27 = vld [vmem:[#allocation11 + $0x100] ss:$16 sps:$4 sm:$0xff]   ;;  %v5981_v7 = vld [vmem:[#allocation11 + $0x108] ss:$16 sps:$4 sm:$0xff]  }
 0x787   :  { %3445 = vmatpush1.bf16.msra.mxu0 %v5894_v49  ;;  %3518 = vmatpush1.bf16.msra.mxu1 %v5897_v31  ;;  %v5986_v49 = vld [vmem:[#allocation13 + $0xe4] ss:$16 sps:$4 sm:$0xff]   ;;  %v5989_v31 = vld [vmem:[#allocation13 + $0xec] ss:$16 sps:$4 sm:$0xff]  }
 0x788   :  { %3446 = vmatprep.subr.bf16.mxu0 %v5902_v63  ;;  %3519 = vmatprep.subr.bf16.mxu1 %v5905_v16 }
 0x78b   :  { %3447 = vmatpush1.bf16.msra.mxu0 %v5900_v17  ;;  %3520 = vmatpush1.bf16.msra.mxu1 %v5903_v62  ;;  %v9160_v17 = vld [vmem:[#allocation28_spill] sm:$0xff]  ;;  %v9161_v62 = vld [vmem:[#allocation51_spill] sm:$0xff] }
 0x78c   :  { %3448 = vmatprep.subr.bf16.mxu0 %v5908_v18  ;;  %3521 = vmatprep.subr.bf16.mxu1 %v5911_v20  ;;  %v447_v18 = vadd.f32 %v9161_v62, %v9160_v17  ;;  %v9162_v20 = vld [vmem:[#allocation31_spill] sm:$0xff] }
 0x78f   :  { %3449 = vmatpush1.bf16.msra.mxu0 %v5906_v21  ;;  %3522 = vmatpush1.bf16.msra.mxu1 %v5909_v34  ;;  %v9163_v21 = vld [vmem:[#allocation58_spill] sm:$0xff] }
 0x790   :  { %3450 = vmatprep.subr.bf16.mxu0 %v5914_v61  ;;  %3523 = vmatprep.subr.bf16.mxu1 %v5917_v44  ;;  %v520_v34 = vadd.f32 %v9163_v21, %v9162_v20  ;;  %v9164_v61 = vld [vmem:[#allocation50_spill] sm:$0xff] }
 0x793   :  { %3451 = vmatpush1.bf16.msra.mxu0 %v5912_v30  ;;  %3524 = vmatpush1.bf16.msra.mxu1 %v5915_v40  ;;  %v9165_v30 = vld [vmem:[#allocation57_spill] sm:$0xff] }
 0x794   :  { %3452 = vmatprep.subr.bf16.mxu0 %v5920_v4  ;;  %3525 = vmatprep.subr.bf16.mxu1 %v5923_v56 }
 0x797   :  { %3453 = vmatpush1.bf16.msra.mxu0 %v5918_v11  ;;  %3526 = vmatpush1.bf16.msra.mxu1 %v5921_v28 }
 0x798   :  { %3454 = vmatprep.subr.bf16.mxu0 %v5926_v29  ;;  %3527 = vmatprep.subr.bf16.mxu1 %v5929_v59 }
 0x79b   :  { %3455 = vmatpush1.bf16.msra.mxu0 %v5924_v9  ;;  %3528 = vmatpush1.bf16.msra.mxu1 %v5927_v48 }
 0x79c   :  { %3456 = vmatprep.subr.bf16.mxu0 %v5932_v23  ;;  %3529 = vmatprep.subr.bf16.mxu1 %v5935_v25 }
 0x79f   :  { %3457 = vmatpush1.bf16.msra.mxu0 %v5930_v60  ;;  %3530 = vmatpush1.bf16.msra.mxu1 %v5933_v36 }
 0x7a0   :  { %3458 = vmatprep.subr.bf16.mxu0 %v5938_v50  ;;  %3531 = vmatprep.subr.bf16.mxu1 %v5941_v22 }
 0x7a3   :  { %3459 = vmatpush2.bf16.msra.mxu0 %v5936_v54  ;;  %3532 = vmatpush2.bf16.msra.mxu1 %v5939_v35 }
 0x7a4   :  { %3460 = vmatprep.subr.bf16.mxu0 %v5944_v47  ;;  %3533 = vmatprep.subr.bf16.mxu1 %v5947_v1 }
 0x7a7   :  { %3461 = vmatpush2.bf16.msra.mxu0 %v5942_v2  ;;  %3534 = vmatpush2.bf16.msra.mxu1 %v5945_v3 }
 0x7a8   :  { %3462 = vmatprep.subr.bf16.mxu0 %v5950_v57  ;;  %3535 = vmatprep.subr.bf16.mxu1 %v5953_v6 }
 0x7ab   :  { %3463 = vmatpush2.bf16.msra.mxu0 %v5948_v0  ;;  %3536 = vmatpush2.bf16.msra.mxu1 %v5951_v52 }
 0x7ac   :  { %3464 = vmatprep.subr.bf16.mxu0 %v5956_v53  ;;  %3537 = vmatprep.subr.bf16.mxu1 %v5959_v42 }
 0x7af   :  { %3465 = vmatpush2.bf16.msra.mxu0 %v5954_v41  ;;  %3538 = vmatpush2.bf16.msra.mxu1 %v5957_v37 }
 0x7b0   :  { %3466 = vmatprep.subr.bf16.mxu0 %v5962_v32  ;;  %3539 = vmatprep.subr.bf16.mxu1 %v5965_v38  ;;  %v9166_v32 = vld [vmem:[#allocation54_spill] sm:$0xff] }
 0x7b3   :  { %3467 = vmatpush2.bf16.msra.mxu0 %v5960_v43  ;;  %3540 = vmatpush2.bf16.msra.mxu1 %v5963_v45 }
 0x7b4   :  { %3468 = vmatprep.subr.bf16.mxu0 %v5968_v55  ;;  %3541 = vmatprep.subr.bf16.mxu1 %v5971_v10  ;;  %v9167_v10 = vld [vmem:[#allocation56_spill] sm:$0xff] }
 0x7b7   :  { %3469 = vmatpush2.bf16.msra.mxu0 %v5966_v33  ;;  %3542 = vmatpush2.bf16.msra.mxu1 %v5969_v8 }
 0x7b8   :  { %3470 = vmatprep.subr.bf16.mxu0 %v5974_v5  ;;  %3543 = vmatprep.subr.bf16.mxu1 %v5977_v14 }
 0x7bb   :  { %3471 = vmatpush2.bf16.msra.mxu0 %v5972_v46  ;;  %3544 = vmatpush2.bf16.msra.mxu1 %v5975_v13  ;;  %v9168_v13 = vld [vmem:[#allocation64_spill] sm:$0xff] }
 0x7bc   :  { %3472 = vmatprep.subr.bf16.mxu0 %v5980_v24  ;;  %3545 = vmatprep.subr.bf16.mxu1 %v5983_v51  ;;  %v9169_v51 = vld [vmem:[#allocation62_spill] sm:$0xff] }
 0x7bf   :  { %3473 = vmatpush2.bf16.msra.mxu0 %v5978_v27  ;;  %3546 = vmatpush2.bf16.msra.mxu1 %v5981_v7 }
 0x7c0   :  { %4030 = vmatprep.subr.bf16.mxu0 %v5986_v49  ;;  %4071 = vmatprep.subr.bf16.mxu1 %v5989_v31 }
 0x806   :  { %v2823_v63 = vpop.f32.mrf.mxu0  ;;  %v2864_v16 = vpop.f32.mrf.mxu1 }
 0x807   :  { %v2871_v44 = vadd.f32 %v2823_v63, %v9164_v61  ;;  %v2873_v40 = vadd.f32 %v2864_v16, %v9165_v30 }
 0x808   :  { %v2825_v4 = vpop.f32.mrf.mxu0  ;;  %v2866_v56 = vpop.f32.mrf.mxu1 }
 0x809   :  { %v5454_v11 = vmul.f32 -1.442695, %v2871_v44  ;;  %v2872_v28 = vadd.f32 %v2825_v4, %v447_v18  ;;  %v2874_v29 = vadd.f32 %v2866_v56, %v520_v34 }
 0x80a   :  { %v2827_v59 = vpop.f32.mrf.mxu0  ;;  %v2868_v9 = vpop.f32.mrf.mxu1 }
 0x80b   :  { %6352 = vpow2.f32 %v5454_v11  ;;  %v5455_v48 = vmul.f32 -1.442695, %v2872_v28  ;;  %v5456_v60 = vmul.f32 -1.442695, %v2874_v29  ;;  %v5984_v11 = vld [vmem:[#allocation13 + $0xe0] ss:$16 sps:$4 sm:$0xff]  }
 0x80c   :  { %v2828_v23 = vpop.f32.mrf.mxu0  ;;  %v2869_v25 = vpop.f32.mrf.mxu1  ;;  %v5987_v28 = vld [vmem:[#allocation13 + $0xe8] ss:$16 sps:$4 sm:$0xff]   ;;  %v9170_v29 = vld [vmem:[#allocation78_spill] sm:$0xff] }
 0x80d   :  { %6354 = vpow2.f32 %v5455_v48  ;;  %v9171_v59 = vld [vmem:[#allocation111_spill] sm:$0xff]  ;;  %v5992_v48 = vld [vmem:[#allocation13 + $0xc4] ss:$16 sps:$4 sm:$0xff]  }
 0x80e   :  { %6356 = vtanh.f32 %v2873_v40  ;;  %v3028_v9 = vpack.c.bf16 %v9171_v59, %v9170_v29  ;;  %v5995_v23 = vld [vmem:[#allocation13 + $0xcc] ss:$16 sps:$4 sm:$0xff]   ;;  %v6053_v29 = vld [vmem:[#allocation13 + $0x188] ss:$16 sps:$4 sm:$0xff]   ;;  %v6058_v59 = vld [vmem:[#allocation13 + $0x164] ss:$16 sps:$4 sm:$0xff]  }
 0x80f   :  { %6358 = vpow2.f32 %v5456_v60  ;;  %v5990_v60 = vld [vmem:[#allocation13 + $0xc0] ss:$16 sps:$4 sm:$0xff]  }
 0x818   :  { %v6353_v36 = vpop.eup %6352 }
 0x819   :  { %v2965_v50 = vadd.f32 1.0, %v6353_v36  ;;  %v5993_v36 = vld [vmem:[#allocation13 + $0xc8] ss:$16 sps:$4 sm:$0xff]  }
 0x81a   :  { %v6355_v22 = vpop.eup %6354 }
 0x81b   :  { %6360 = vrcp.f32 %v2965_v50  ;;  %v2971_v54 = vadd.f32 1.0, %v6355_v22  ;;  %v6357_v35 = vpop.eup %6356  ;;  %v6001_v50 = vld [vmem:[#allocation13 + $0xac] ss:$16 sps:$4 sm:$0xff]   ;;  %v5996_v22 = vld [vmem:[#allocation13 + $0xa0] ss:$16 sps:$4 sm:$0xff]  }
 0x81c   :  { %v6359_v47 = vpop.eup %6358 }
 0x81d   :  { %6362 = vrcp.f32 %v2971_v54  ;;  %v2978_v57 = vadd.f32 1.0, %v6359_v47  ;;  %v5999_v54 = vld [vmem:[#allocation13 + $0xa8] ss:$16 sps:$4 sm:$0xff]   ;;  %v9174_v47 = vld [vmem:[#allocation84_spill] sm:$0xff] }
 0x81f   :  { %6364 = vrcp.f32 %v2978_v57  ;;  %v9176_v57 = vld [vmem:[#allocation87_spill] sm:$0xff] }
 0x828   :  { %v6361_v1 = vpop.eup %6360 }
 0x829   :  { %v2982_v2 = vmul.f32 %v6361_v1, %v6357_v35  ;;  %v9173_v35 = vld [vmem:[#allocation82_spill] sm:$0xff] }
 0x82a   :  { %v6363_v3 = vpop.eup %6362  ;;  %v3030_v1 = vpack.c.bf16 %v9174_v47, %v9173_v35  ;;  %v6076_v35 = vld [vmem:[#allocation13 + $0x104] ss:$16 sps:$4 sm:$0xff]   ;;  %v6079_v47 = vld [vmem:[#allocation13 + $0x10c] ss:$16 sps:$4 sm:$0xff]  }
 0x82b   :  { %v2981_v6 = vmul.f32 %v6363_v3, %v8061_v19  ;;  %v9175_v3 = vld [vmem:[#allocation83_spill] sm:$0xff] }
 0x82c   :  { %v6365_v52 = vpop.eup %6364 }
 0x82d   :  { %v2983_v0 = vadd.f32 %v2982_v2, %v2981_v6  ;;  %v6007_v2 = vld [vmem:[#allocation13 + $0x8c] ss:$16 sps:$4 sm:$0xff]   ;;  %v3033_v6 = vpack.c.bf16 %v9176_v57, %v9175_v3  ;;  %v8149_v3 = vld [vmem:[#allocation14 + $0xe4] ss:$16 sps:$4 sm:$0xff]  }
 0x82e   :  { %v8151_v57 = vld [vmem:[#allocation14 + $0xec] ss:$16 sps:$4 sm:$0xff]  }
 0x82f   :  { %6366 = vtanh.f32 %v2983_v0  ;;  %v6002_v0 = vld [vmem:[#allocation13 + $0x80] ss:$16 sps:$4 sm:$0xff]  }
 0x83c   :  { %v6367_v41 = vpop.eup %6366 }
 0x83d   :  { %v8121_v53 = vmul.f32 %v6367_v41, %v6365_v52  ;;  %v6005_v52 = vld [vmem:[#allocation13 + $0x88] ss:$16 sps:$4 sm:$0xff]   ;;  %v6010_v41 = vld [vmem:[#allocation13 + $0x64] ss:$16 sps:$4 sm:$0xff]  }
 0x842   :  { %v2910_v37 = vpop.f32.mrf.mxu0  ;;  %v2951_v42 = vpop.f32.mrf.mxu1 }
 0x843   :  { %v2958_v38 = vadd.f32 %v2910_v37, %v9166_v32  ;;  %v2960_v27 = vadd.f32 %v2951_v42, %v9169_v51  ;;  %v6013_v37 = vld [vmem:[#allocation13 + $0x6c] ss:$16 sps:$4 sm:$0xff]   ;;  %v6008_v42 = vld [vmem:[#allocation13 + $0x60] ss:$16 sps:$4 sm:$0xff]   ;;  %v6011_v32 = vld [vmem:[#allocation13 + $0x68] ss:$16 sps:$4 sm:$0xff]  }
 0x844   :  { %v2912_v43 = vpop.f32.mrf.mxu0  ;;  %v2953_v45 = vpop.f32.mrf.mxu1  ;;  %v6023_v51 = vld [vmem:[#allocation13 + $0x28] ss:$16 sps:$4 sm:$0xff]  }
 0x845   :  { %v5457_v55 = vmul.f32 -1.442695, %v2958_v38  ;;  %v2959_v33 = vadd.f32 %v2912_v43, %v9167_v10  ;;  %v2961_v24 = vadd.f32 %v2953_v45, %v9168_v13  ;;  %v9177_v38 = vld [vmem:[#allocation99_spill] sm:$0xff]  ;;  %v9178_v43 = vld [vmem:[#allocation88_spill] sm:$0xff] }
 0x846   :  { %v2914_v8 = vpop.f32.mrf.mxu0  ;;  %v2955_v5 = vpop.f32.mrf.mxu1  ;;  %v3032_v45 = vpack.c.bf16 %v9178_v43, %v9177_v38  ;;  %v6019_v10 = vld [vmem:[#allocation13 + $0x4c] ss:$16 sps:$4 sm:$0xff]   ;;  %v8177_v38 = vld [vmem:[#allocation14 + $0xa0] ss:$16 sps:$4 sm:$0xff]   ;;  %v8179_v43 = vld [vmem:[#allocation14 + $0xa8] ss:$16 sps:$4 sm:$0xff]  }
 0x847   :  { %6368 = vpow2.f32 %v5457_v55  ;;  %v5458_v19 = vmul.f32 -1.442695, %v2959_v33  ;;  %v5459_v7 = vmul.f32 -1.442695, %v2961_v24  ;;  %v6016_v55 = vld [vmem:[#allocation13 + $0x44] ss:$16 sps:$4 sm:$0xff]  }
 0x848   :  { %v2915_v14 = vpop.f32.mrf.mxu0  ;;  %v2956_v46 = vpop.f32.mrf.mxu1  ;;  %v9179_v33 = vld [vmem:[#allocation81_spill] sm:$0xff]  ;;  %v6020_v24 = vld [vmem:[#allocation13 + $0x20] ss:$16 sps:$4 sm:$0xff]  }
 0x849   :  { %6370 = vpow2.f32 %v5458_v19  ;;  %v9180_v8 = vld [vmem:[#allocation109_spill] sm:$0xff]  ;;  %v6014_v19 = vld [vmem:[#allocation13 + $0x40] ss:$16 sps:$4 sm:$0xff]   ;;  %v6022_v46 = vld [vmem:[#allocation13 + $0x24] ss:$16 sps:$4 sm:$0xff]  }
 0x84a   :  { %6372 = vtanh.f32 %v2960_v27  ;;  %v3035_v5 = vpack.c.bf16 %v9180_v8, %v9179_v33  ;;  %v6017_v14 = vld [vmem:[#allocation13 + $0x48] ss:$16 sps:$4 sm:$0xff]   ;;  %v6025_v13 = vld [vmem:[#allocation13 + $0x2c] ss:$16 sps:$4 sm:$0xff]   ;;  %v3034_v27 = vpack.c.bf16 %v8121_v53, %v8064_v26  ;;  %v8197_v8 = vld [vmem:[#allocation14 + $0x64] ss:$16 sps:$4 sm:$0xff]  }
 0x84b   :  { %6374 = vpow2.f32 %v5459_v7  ;;  %v6028_v7 = vld [vmem:[#allocation13 + $0x4] ss:$16 sps:$4 sm:$0xff]   ;;  %v6035_v26 = vld [vmem:[#allocation13 + $0x1e8] ss:$16 sps:$4 sm:$0xff]  }
 0x84c   :  { %v8191_v33 = vld [vmem:[#allocation14 + $0x88] ss:$16 sps:$4 sm:$0xff]  }
 0x854   :  { %v6369_v49 = vpop.eup %6368 }
 0x855   :  { %v2989_v31 = vadd.f32 1.0, %v6369_v49  ;;  %v6031_v49 = vld [vmem:[#allocation13 + $0xc] ss:$16 sps:$4 sm:$0xff]  }
 0x856   :  { %v6371_v63 = vpop.eup %6370 }
 0x857   :  { %6376 = vrcp.f32 %v2989_v31  ;;  %v2995_v16 = vadd.f32 1.0, %v6371_v63  ;;  %v6373_v17 = vpop.eup %6372  ;;  %v6026_v31 = vld [vmem:[#allocation13] ss:$16 sps:$4 sm:$0xff]   ;;  %v6029_v63 = vld [vmem:[#allocation13 + $0x8] ss:$16 sps:$4 sm:$0xff]  }
 0x858   :  { %v6375_v62 = vpop.eup %6374 }
 0x859   :  { %6378 = vrcp.f32 %v2995_v16  ;;  %v3002_v34 = vadd.f32 1.0, %v6375_v62  ;;  %v9181_v16 = vld [vmem:[#allocation110_spill] sm:$0xff]  ;;  %v6037_v62 = vld [vmem:[#allocation13 + $0x1ec] ss:$16 sps:$4 sm:$0xff]  }
 0x85b   :  { %6380 = vrcp.f32 %v3002_v34  ;;  %v6038_v34 = vld [vmem:[#allocation13 + $0x1c0] ss:$16 sps:$4 sm:$0xff]  }
 0x864   :  { %v6377_v18 = vpop.eup %6376 }
 0x865   :  { %v3006_v20 = vmul.f32 %v6377_v18, %v6373_v17  ;;  %v6034_v17 = vld [vmem:[#allocation13 + $0x1e4] ss:$16 sps:$4 sm:$0xff]   ;;  %v6032_v18 = vld [vmem:[#allocation13 + $0x1e0] ss:$16 sps:$4 sm:$0xff]  }
 0x866   :  { %v6379_v21 = vpop.eup %6378 }
 0x867   :  { %v3005_v61 = vmul.f32 %v6379_v21, %v8107_v39  ;;  %v9172_v39 = vld [vmem:[#allocation79_spill] sm:$0xff] }
 0x868   :  { %v6381_v30 = vpop.eup %6380  ;;  %v3031_v25 = vpack.c.bf16 %v9172_v39, %v8018_v12  ;;  %v6004_v12 = vld [vmem:[#allocation13 + $0x84] ss:$16 sps:$4 sm:$0xff]   ;;  %v6043_v21 = vld [vmem:[#allocation13 + $0x1cc] ss:$16 sps:$4 sm:$0xff]  }
 0x869   :  { %v3007_v44 = vadd.f32 %v3006_v20, %v3005_v61  ;;  %v6040_v20 = vld [vmem:[#allocation13 + $0x1c4] ss:$16 sps:$4 sm:$0xff]   ;;  %v6041_v61 = vld [vmem:[#allocation13 + $0x1c8] ss:$16 sps:$4 sm:$0xff]  }
 0x86a   :  { %v6064_v39 = vld [vmem:[#allocation13 + $0x144] ss:$16 sps:$4 sm:$0xff]  }
 0x86b   :  { %6382 = vtanh.f32 %v3007_v44  ;;  %v6046_v44 = vld [vmem:[#allocation13 + $0x1a4] ss:$16 sps:$4 sm:$0xff]  }
 0x878   :  { %v6383_v40 = vpop.eup %6382 }
 0x879   :  { %v3009_v4 = vmul.f32 %v6383_v40, %v6381_v30  ;;  %v6049_v30 = vld [vmem:[#allocation13 + $0x1ac] ss:$16 sps:$4 sm:$0xff]   ;;  %v6044_v40 = vld [vmem:[#allocation13 + $0x1a0] ss:$16 sps:$4 sm:$0xff]  }
 0x87b   :  { %v3029_v56 = vpack.c.bf16 %v8110_v15, %v3009_v4  ;;  %v5998_v15 = vld [vmem:[#allocation13 + $0xa4] ss:$16 sps:$4 sm:$0xff]   ;;  %v6047_v4 = vld [vmem:[#allocation13 + $0x1a8] ss:$16 sps:$4 sm:$0xff]  }
 0x87d   :  { %3474 = vmatprep.mubr.bf16.mxu0 %v3029_v56  ;;  %3547 = vmatprep.mubr.bf16.mxu1 %v3029_v56  ;;  %v6052_v56 = vld [vmem:[#allocation13 + $0x184] ss:$16 sps:$4 sm:$0xff]  }
 0x87e   :  { %3475 = vmatmul.mubr.bf16.vlgmr.msra.gmra.mxu0 %v3028_v9  ;;  %3548 = vmatmul.mubr.bf16.vlgmr.msra.gmra.mxu1 %v3028_v9  ;;  %v6061_v9 = vld [vmem:[#allocation13 + $0x16c] ss:$16 sps:$4 sm:$0xff]  }
 0x87f   :  { %4031 = vmatpush1.bf16.msra.mxu0 %v5984_v11  ;;  %4072 = vmatpush1.bf16.msra.mxu1 %v5987_v28  ;;  %v6055_v11 = vld [vmem:[#allocation13 + $0x18c] ss:$16 sps:$4 sm:$0xff]   ;;  %v6050_v28 = vld [vmem:[#allocation13 + $0x180] ss:$16 sps:$4 sm:$0xff]  }
 0x880   :  { %3484 = vmatprep.mubr.bf16.mxu0 %v3031_v25  ;;  %3557 = vmatprep.mubr.bf16.mxu1 %v3031_v25  ;;  %v6067_v25 = vld [vmem:[#allocation13 + $0x14c] ss:$16 sps:$4 sm:$0xff]  }
 0x881   :  { %4032 = vmatprep.subr.bf16.mxu0 %v5992_v48  ;;  %4073 = vmatprep.subr.bf16.mxu1 %v5995_v23  ;;  %v6056_v48 = vld [vmem:[#allocation13 + $0x160] ss:$16 sps:$4 sm:$0xff]   ;;  %v6059_v23 = vld [vmem:[#allocation13 + $0x168] ss:$16 sps:$4 sm:$0xff]  }
 0x883   :  { %4033 = vmatpush1.bf16.msra.mxu0 %v5990_v60  ;;  %4074 = vmatpush1.bf16.msra.mxu1 %v5993_v36  ;;  %v6062_v60 = vld [vmem:[#allocation13 + $0x140] ss:$16 sps:$4 sm:$0xff]   ;;  %v6065_v36 = vld [vmem:[#allocation13 + $0x148] ss:$16 sps:$4 sm:$0xff]  }
 0x884   :  { %4034 = vmatprep.subr.bf16.mxu0 %v5998_v15  ;;  %4075 = vmatprep.subr.bf16.mxu1 %v6001_v50  ;;  %v6070_v15 = vld [vmem:[#allocation13 + $0x124] ss:$16 sps:$4 sm:$0xff]   ;;  %v6073_v50 = vld [vmem:[#allocation13 + $0x12c] ss:$16 sps:$4 sm:$0xff]  }
 0x886   :  { %3485 = vmatmul.mubr.bf16.gmra.mxu0 %v3030_v1  ;;  %3558 = vmatmul.mubr.bf16.gmra.mxu1 %v3030_v1  ;;  %v6074_v1 = vld [vmem:[#allocation13 + $0x100] ss:$16 sps:$4 sm:$0xff]  }
 0x887   :  { %4035 = vmatpush1.bf16.msra.mxu0 %v5996_v22  ;;  %4076 = vmatpush1.bf16.msra.mxu1 %v5999_v54  ;;  %v6068_v22 = vld [vmem:[#allocation13 + $0x120] ss:$16 sps:$4 sm:$0xff]   ;;  %v6071_v54 = vld [vmem:[#allocation13 + $0x128] ss:$16 sps:$4 sm:$0xff]  }
 0x888   :  { %3494 = vmatprep.mubr.bf16.mxu0 %v3033_v6  ;;  %3567 = vmatprep.mubr.bf16.mxu1 %v3033_v6  ;;  %v8153_v6 = vld [vmem:[#allocation14 + $0xe0] ss:$16 sps:$4 sm:$0xff]  }
 0x889   :  { %4036 = vmatprep.subr.bf16.mxu0 %v6004_v12  ;;  %4077 = vmatprep.subr.bf16.mxu1 %v6007_v2  ;;  %v6077_v12 = vld [vmem:[#allocation13 + $0x108] ss:$16 sps:$4 sm:$0xff]   ;;  %v3622_v2 = vpack.c.bf16 %v8121_v53, %v8121_v53  ;;  %v8161_v53 = vld [vmem:[#allocation14 + $0xc4] ss:$16 sps:$4 sm:$0xff]  }
 0x88b   :  { %4037 = vmatpush1.bf16.msra.mxu0 %v6002_v0  ;;  %4078 = vmatpush1.bf16.msra.mxu1 %v6005_v52  ;;  %v8155_v0 = vld [vmem:[#allocation14 + $0xe8] ss:$16 sps:$4 sm:$0xff]   ;;  %v8163_v52 = vld [vmem:[#allocation14 + $0xcc] ss:$16 sps:$4 sm:$0xff]  }
 0x88c   :  { %4038 = vmatprep.subr.bf16.mxu0 %v6010_v41  ;;  %4079 = vmatprep.subr.bf16.mxu1 %v6013_v37  ;;  %v8165_v41 = vld [vmem:[#allocation14 + $0xc0] ss:$16 sps:$4 sm:$0xff]   ;;  %v8167_v37 = vld [vmem:[#allocation14 + $0xc8] ss:$16 sps:$4 sm:$0xff]  }
 0x88e   :  { %3495 = vmatmul.mubr.bf16.gmra.mxu0 %v3032_v45  ;;  %3568 = vmatmul.mubr.bf16.gmra.mxu1 %v3032_v45  ;;  %v8185_v45 = vld [vmem:[#allocation14 + $0x84] ss:$16 sps:$4 sm:$0xff]  }
 0x88f   :  { %4039 = vmatpush1.bf16.msra.mxu0 %v6008_v42  ;;  %4080 = vmatpush1.bf16.msra.mxu1 %v6011_v32  ;;  %v8173_v42 = vld [vmem:[#allocation14 + $0xa4] ss:$16 sps:$4 sm:$0xff]   ;;  %v8175_v32 = vld [vmem:[#allocation14 + $0xac] ss:$16 sps:$4 sm:$0xff]  }
 0x890   :  { %3504 = vmatprep.mubr.bf16.mxu0 %v3035_v5  ;;  %3577 = vmatprep.mubr.bf16.mxu1 %v3035_v5  ;;  %v8199_v5 = vld [vmem:[#allocation14 + $0x6c] ss:$16 sps:$4 sm:$0xff]  }
 0x891   :  { %4040 = vmatprep.subr.bf16.mxu0 %v6016_v55  ;;  %4081 = vmatprep.subr.bf16.mxu1 %v6019_v10  ;;  %v8187_v55 = vld [vmem:[#allocation14 + $0x8c] ss:$16 sps:$4 sm:$0xff]   ;;  %v8189_v10 = vld [vmem:[#allocation14 + $0x80] ss:$16 sps:$4 sm:$0xff]  }
 0x893   :  { %4041 = vmatpush1.bf16.msra.mxu0 %v6014_v19  ;;  %4082 = vmatpush1.bf16.msra.mxu1 %v6017_v14  ;;  %v8201_v19 = vld [vmem:[#allocation14 + $0x60] ss:$16 sps:$4 sm:$0xff]   ;;  %v8203_v14 = vld [vmem:[#allocation14 + $0x68] ss:$16 sps:$4 sm:$0xff]  }
 0x894   :  { %4042 = vmatprep.subr.bf16.mxu0 %v6022_v46  ;;  %4083 = vmatprep.subr.bf16.mxu1 %v6025_v13  ;;  %v8205_v46 = vld [vmem:[#allocation14 + $0x44] ss:$16 sps:$4 sm:$0xff]   ;;  %v8207_v13 = vld [vmem:[#allocation14 + $0x4c] ss:$16 sps:$4 sm:$0xff]  }
 0x896   :  { %3505 = vmatmul.mubr.bf16.gmra.mxu0 %v3034_v27  ;;  %3578 = vmatmul.mubr.bf16.gmra.mxu1 %v3034_v27  ;;  %v8219_v27 = vld [vmem:[#allocation14 + $0x24] ss:$16 sps:$4 sm:$0xff]  }
 0x897   :  { %4043 = vmatpush1.bf16.msra.mxu0 %v6020_v24  ;;  %4084 = vmatpush1.bf16.msra.mxu1 %v6023_v51  ;;  %v8213_v24 = vld [vmem:[#allocation14 + $0x40] ss:$16 sps:$4 sm:$0xff]   ;;  %v8215_v51 = vld [vmem:[#allocation14 + $0x48] ss:$16 sps:$4 sm:$0xff]  }
 0x898   :  { %4062 = vmatprep.mubr.bf16.mxu0 %v9181_v16  ;;  %4103 = vmatprep.mubr.bf16.mxu1 %v9181_v16  ;;  %v8233_v16 = vld [vmem:[#allocation14 + $0xc] ss:$16 sps:$4 sm:$0xff]  }
 0x899   :  { %4044 = vmatprep.subr.bf16.mxu0 %v6028_v7  ;;  %4085 = vmatprep.subr.bf16.mxu1 %v6031_v49  ;;  %v8221_v7 = vld [vmem:[#allocation14 + $0x2c] ss:$16 sps:$4 sm:$0xff]   ;;  %v8225_v49 = vld [vmem:[#allocation14 + $0x20] ss:$16 sps:$4 sm:$0xff]  }
 0x89b   :  { %4045 = vmatpush1.bf16.msra.mxu0 %v6026_v31  ;;  %4086 = vmatpush1.bf16.msra.mxu1 %v6029_v63  ;;  %v8227_v31 = vld [vmem:[#allocation14 + $0x28] ss:$16 sps:$4 sm:$0xff]   ;;  %v8231_v63 = vld [vmem:[#allocation14 + $0x4] ss:$16 sps:$4 sm:$0xff]  }
 0x89c   :  { %4046 = vmatprep.subr.bf16.mxu0 %v6034_v17  ;;  %4087 = vmatprep.subr.bf16.mxu1 %v6037_v62  ;;  %v8237_v17 = vld [vmem:[#allocation14] ss:$16 sps:$4 sm:$0xff]   ;;  %v8239_v62 = vld [vmem:[#allocation14 + $0x8] ss:$16 sps:$4 sm:$0xff]  }
 0x89f   :  { %4047 = vmatpush2.bf16.msra.mxu0 %v6032_v18  ;;  %4088 = vmatpush2.bf16.msra.mxu1 %v6035_v26  ;;  %v3100_v18 = vld [vmem:[%s8698_s10] sm:$0xf]  ;;  %v9182_v26 = vld [vmem:[#allocation26_spill] sm:$0xff] }
 0x8a0   :  { %4048 = vmatprep.subr.bf16.mxu0 %v6040_v20  ;;  %4089 = vmatprep.subr.bf16.mxu1 %v6043_v21  ;;  %v8251_v20 = vrot.slane %v3100_v18, %v9182_v26  ;;  %v9183_v21 = vld [vmem:[#allocation27_spill] sm:$0xff] }
 0x8a3   :  { %4049 = vmatpush2.bf16.msra.mxu0 %v6038_v34  ;;  %4090 = vmatpush2.bf16.msra.mxu1 %v6041_v61  ;;  %v8254_v34 = vrot.slane %v3100_v18, %v9183_v21 }
 0x8a4   :  { %4050 = vmatprep.subr.bf16.mxu0 %v6046_v44  ;;  %4091 = vmatprep.subr.bf16.mxu1 %v6049_v30 }
 0x8a7   :  { %4051 = vmatpush2.bf16.msra.mxu0 %v6044_v40  ;;  %4092 = vmatpush2.bf16.msra.mxu1 %v6047_v4 }
 0x8a8   :  { %4052 = vmatprep.subr.bf16.mxu0 %v6052_v56  ;;  %4093 = vmatprep.subr.bf16.mxu1 %v6055_v11 }
 0x8ab   :  { %4053 = vmatpush2.bf16.msra.mxu0 %v6050_v28  ;;  %4094 = vmatpush2.bf16.msra.mxu1 %v6053_v29  ;;  %v9184_v28 = vld [vmem:[#allocation29_spill] sm:$0xff] }
 0x8ac   :  { %4054 = vmatprep.subr.bf16.mxu0 %v6058_v59  ;;  %4095 = vmatprep.subr.bf16.mxu1 %v6061_v9  ;;  %v8259_v29 = vrot.slane %v3100_v18, %v9184_v28 }
 0x8af   :  { %4055 = vmatpush2.bf16.msra.mxu0 %v6056_v48  ;;  %4096 = vmatpush2.bf16.msra.mxu1 %v6059_v23  ;;  %v9185_v23 = vld [vmem:[#allocation30_spill] sm:$0xff] }
 0x8b0   :  { %4056 = vmatprep.subr.bf16.mxu0 %v6064_v39  ;;  %4097 = vmatprep.subr.bf16.mxu1 %v6067_v25  ;;  %v8262_v39 = vrot.slane %v3100_v18, %v9185_v23 }
 0x8b3   :  { %4057 = vmatpush2.bf16.msra.mxu0 %v6062_v60  ;;  %4098 = vmatpush2.bf16.msra.mxu1 %v6065_v36 }
 0x8b4   :  { %4058 = vmatprep.subr.bf16.mxu0 %v6070_v15  ;;  %4099 = vmatprep.subr.bf16.mxu1 %v6073_v50 }
 0x8b7   :  { %4059 = vmatpush2.bf16.msra.mxu0 %v6068_v22  ;;  %4100 = vmatpush2.bf16.msra.mxu1 %v6071_v54 }
 0x8b8   :  { %4060 = vmatprep.subr.bf16.mxu0 %v6076_v35  ;;  %4101 = vmatprep.subr.bf16.mxu1 %v6079_v47 }
 0x8bb   :  { %4061 = vmatpush2.bf16.msra.mxu0 %v6074_v1  ;;  %4102 = vmatpush2.bf16.msra.mxu1 %v6077_v12 }
 0x8bc   :  { %4361 = vmatprep.subr.bf16.mxu0 %v8149_v3  ;;  %4402 = vmatprep.subr.bf16.mxu1 %v8151_v57 }
 0x8be   :  { %4063 = vmatmul.mubr.bf16.vlgmr.msra.gmra.mxu0 %v3622_v2  ;;  %4104 = vmatmul.mubr.bf16.vlgmr.msra.gmra.mxu1 %v3622_v2 }
 0x8bf   :  { %4393 = vmatprep.mubr.bf16.mxu0 %v8944_v58  ;;  %4434 = vmatprep.mubr.bf16.mxu1 %v8944_v58 }
 0x8c0   :  { %4362 = vmatpush1.bf16.msra.mxu0 %v8153_v6  ;;  %4403 = vmatpush1.bf16.msra.mxu1 %v8155_v0 }
 0x8c1   :  { %4363 = vmatprep.subr.bf16.mxu0 %v8161_v53  ;;  %4404 = vmatprep.subr.bf16.mxu1 %v8163_v52 }
 0x8c4   :  { %4364 = vmatpush1.bf16.msra.mxu0 %v8165_v41  ;;  %4405 = vmatpush1.bf16.msra.mxu1 %v8167_v37 }
 0x8c5   :  { %4365 = vmatprep.subr.bf16.mxu0 %v8173_v42  ;;  %4406 = vmatprep.subr.bf16.mxu1 %v8175_v32 }
 0x8c8   :  { %4366 = vmatpush1.bf16.msra.mxu0 %v8177_v38  ;;  %4407 = vmatpush1.bf16.msra.mxu1 %v8179_v43 }
 0x8c9   :  { %4367 = vmatprep.subr.bf16.mxu0 %v8185_v45  ;;  %4408 = vmatprep.subr.bf16.mxu1 %v8187_v55 }
 0x8cc   :  { %4368 = vmatpush1.bf16.msra.mxu0 %v8189_v10  ;;  %4409 = vmatpush1.bf16.msra.mxu1 %v8191_v33 }
 0x8cd   :  { %4369 = vmatprep.subr.bf16.mxu0 %v8197_v8  ;;  %4410 = vmatprep.subr.bf16.mxu1 %v8199_v5 }
 0x8d0   :  { %4370 = vmatpush1.bf16.msra.mxu0 %v8201_v19  ;;  %4411 = vmatpush1.bf16.msra.mxu1 %v8203_v14 }
 0x8d1   :  { %4371 = vmatprep.subr.bf16.mxu0 %v8205_v46  ;;  %4412 = vmatprep.subr.bf16.mxu1 %v8207_v13 }
 0x8d4   :  { %4372 = vmatpush1.bf16.msra.mxu0 %v8213_v24  ;;  %4413 = vmatpush1.bf16.msra.mxu1 %v8215_v51 }
 0x8d5   :  { %4373 = vmatprep.subr.bf16.mxu0 %v8219_v27  ;;  %4414 = vmatprep.subr.bf16.mxu1 %v8221_v7 }
 0x8d8   :  { %4374 = vmatpush1.bf16.msra.mxu0 %v8225_v49  ;;  %4415 = vmatpush1.bf16.msra.mxu1 %v8227_v31 }
 0x8d9   :  { %4375 = vmatprep.subr.bf16.mxu0 %v8231_v63  ;;  %4416 = vmatprep.subr.bf16.mxu1 %v8233_v16 }
 0x8dc   :  { %4376 = vmatpush1.bf16.msra.mxu0 %v8237_v17  ;;  %4417 = vmatpush1.bf16.msra.mxu1 %v8239_v62 }
 0x8dd   :  { %4476 = vmatprep.subr.bf16.mxu0 %v8149_v3  ;;  %4517 = vmatprep.subr.bf16.mxu1 %v8151_v57 }
 0x93e   :  { %v3476_v61 = vpop.f32.mrf.mxu0  ;;  %v3549_v44 = vpop.f32.mrf.mxu1 }
 0x93f   :  { %v3477_v30 = vadd.f32 %v3476_v61, %v8251_v20 }
 0x940   :  { %v3478_v40 = vpop.f32.mrf.mxu0  ;;  %v3551_v4 = vpop.f32.mrf.mxu1 }
 0x941   :  { %v5591_v56 = vmul.f32 -1.442695, %v3477_v30  ;;  %v3479_v11 = vadd.f32 %v3478_v40, %v8254_v34  ;;  %v3552_v30 = vadd.f32 %v3551_v4, %v8262_v39 }
 0x942   :  { %v3480_v59 = vpop.f32.mrf.mxu0  ;;  %v3553_v9 = vpop.f32.mrf.mxu1 }
 0x943   :  { %6384 = vpow2.f32 %v5591_v56  ;;  %v5592_v48 = vmul.f32 -1.442695, %v3479_v11  ;;  %v8265_v25 = vadd.f32 %v3480_v59, %v8251_v20  ;;  %v8268_v60 = vadd.f32 %v3553_v9, %v8259_v29 }
 0x944   :  { %v3482_v36 = vpop.f32.mrf.mxu0  ;;  %v3555_v15 = vpop.f32.mrf.mxu1 }
 0x945   :  { %6386 = vpow2.f32 %v5592_v48  ;;  %v8271_v50 = vadd.f32 %v3482_v36, %v8254_v34  ;;  %v8274_v22 = vadd.f32 %v3555_v15, %v8262_v39 }
 0x946   :  { %v3486_v54 = vpop.f32.mrf.mxu0  ;;  %v3559_v35 = vpop.f32.mrf.mxu1 }
 0x947   :  { %v8277_v47 = vadd.f32 %v3486_v54, %v8251_v20  ;;  %v8280_v1 = vadd.f32 %v3559_v35, %v8259_v29  ;;  %v5593_v54 = vmul.f32 -1.442695, %v3552_v30 }
 0x948   :  { %v3488_v12 = vpop.f32.mrf.mxu0  ;;  %v3561_v2 = vpop.f32.mrf.mxu1 }
 0x949   :  { %9186 = vst [vmem:[#allocation90_spill] sm:$0xff] %v8280_v1  ;;  %v8283_v18 = vadd.f32 %v3488_v12, %v8254_v34  ;;  %v8286_v61 = vadd.f32 %v3561_v2, %v8262_v39  ;;  %6388 = vpow2.f32 %v5593_v54 }
 0x94a   :  { %v3490_v40 = vpop.f32.mrf.mxu0  ;;  %v3563_v56 = vpop.f32.mrf.mxu1 }
 0x94b   :  { %v8290_v11 = vadd.f32 %v3490_v40, %v8251_v20  ;;  %v8293_v59 = vadd.f32 %v3563_v56, %v8259_v29  ;;  %v3550_v56 = vadd.f32 %v3549_v44, %v8259_v29 }
 0x94c   :  { %v3492_v9 = vpop.f32.mrf.mxu0  ;;  %v3565_v48 = vpop.f32.mrf.mxu1 }
 0x94d   :  { %9187 = vst [vmem:[#allocation91_spill] sm:$0xff] %v8290_v11  ;;  %9188 = vst [vmem:[#allocation89_spill] sm:$0xff] %v8293_v59  ;;  %v8296_v36 = vadd.f32 %v3492_v9, %v8254_v34  ;;  %v8299_v15 = vadd.f32 %v3565_v48, %v8262_v39 }
 0x94e   :  { %v3496_v35 = vpop.f32.mrf.mxu0  ;;  %v3569_v12 = vpop.f32.mrf.mxu1 }
 0x94f   :  { %9189 = vst [vmem:[#allocation92_spill] sm:$0xff] %v8299_v15  ;;  %v8302_v4 = vadd.f32 %v3496_v35, %v8251_v20  ;;  %v8305_v2 = vadd.f32 %v3569_v12, %v8259_v29 }
 0x950   :  { %v6385_v40 = vpop.eup %6384  ;;  %v3498_v59 = vpop.f32.mrf.mxu0 }
 0x951   :  { %9190 = vst [vmem:[#allocation93_spill] sm:$0xff] %v8302_v4  ;;  %9191 = vst [vmem:[#allocation94_spill] sm:$0xff] %v8305_v2  ;;  %v3571_v11 = vpop.f32.mrf.mxu1  ;;  %v4175_v1 = vadd.f32 1.0, %v6385_v40  ;;  %v8309_v9 = vadd.f32 %v3498_v59, %v8254_v34 }
 0x952   :  { %v8312_v48 = vadd.f32 %v3571_v11, %v8262_v39  ;;  %v6387_v30 = vpop.eup %6386  ;;  %v3500_v15 = vpop.f32.mrf.mxu0 }
 0x953   :  { %9192 = vst [vmem:[#allocation95_spill] sm:$0xff] %v8309_v9  ;;  %v3573_v35 = vpop.f32.mrf.mxu1  ;;  %6390 = vrcp.f32 %v4175_v1  ;;  %v4181_v4 = vadd.f32 1.0, %v6387_v30  ;;  %v8315_v12 = vadd.f32 %v3500_v15, %v8251_v20 }
 0x954   :  { %9193 = vst [vmem:[#allocation86_spill] sm:$0xff] %v8312_v48  ;;  %v8318_v44 = vadd.f32 %v3573_v35, %v8259_v29  ;;  %6392 = vtanh.f32 %v3550_v56  ;;  %v3502_v40 = vpop.f32.mrf.mxu0 }
 0x955   :  { %9194 = vst [vmem:[#allocation96_spill] sm:$0xff] %v8315_v12  ;;  %v3575_v2 = vpop.f32.mrf.mxu1  ;;  %6394 = vrcp.f32 %v4181_v4  ;;  %v8321_v59 = vadd.f32 %v3502_v40, %v8254_v34 }
 0x956   :  { %9195 = vst [vmem:[#allocation97_spill] sm:$0xff] %v8318_v44  ;;  %v8324_v11 = vadd.f32 %v3575_v2, %v8262_v39  ;;  %v3506_v54 = vpop.f32.mrf.mxu0 }
 0x957   :  { %9196 = vst [vmem:[#allocation98_spill] sm:$0xff] %v8321_v59  ;;  %v3579_v48 = vpop.f32.mrf.mxu1  ;;  %v8327_v1 = vadd.f32 %v3506_v54, %v8251_v20 }
 0x958   :  { %9197 = vst [vmem:[#allocation105_spill] sm:$0xff] %v8324_v11  ;;  %v8330_v15 = vadd.f32 %v3579_v48, %v8259_v29  ;;  %v3508_v30 = vpop.f32.mrf.mxu0 }
 0x959   :  { %9198 = vst [vmem:[#allocation20_spill] sm:$0xff] %v8327_v1  ;;  %v3581_v35 = vpop.f32.mrf.mxu1  ;;  %v8333_v56 = vadd.f32 %v3508_v30, %v8254_v34  ;;  %v6389_v30 = vpop.eup %6388 }
 0x95a   :  { %9199 = vst [vmem:[#allocation21_spill] sm:$0xff] %v8330_v15  ;;  %v8336_v4 = vadd.f32 %v3581_v35, %v8262_v39  ;;  %v3510_v40 = vpop.f32.mrf.mxu0  ;;  %v4188_v59 = vadd.f32 1.0, %v6389_v30 }
 0x95b   :  { %9200 = vst [vmem:[#allocation22_spill] sm:$0xff] %v8333_v56  ;;  %v3583_v44 = vpop.f32.mrf.mxu1  ;;  %v8339_v2 = vadd.f32 %v3510_v40, %v8251_v20 }
 0x95c   :  { %9201 = vst [vmem:[#allocation37_spill] sm:$0xff] %v8336_v4  ;;  %v8342_v11 = vadd.f32 %v3583_v44, %v8259_v29  ;;  %v3512_v54 = vpop.f32.mrf.mxu0  ;;  %6396 = vrcp.f32 %v4188_v59 }
 0x95d   :  { %v3585_v1 = vpop.f32.mrf.mxu1  ;;  %v8345_v48 = vadd.f32 %v3512_v54, %v8254_v34 }
 0x95e   :  { %v8348_v15 = vadd.f32 %v3585_v1, %v8262_v39  ;;  %v3688_v39 = vld [vmem:[%s8699_s11] sm:$0xf] }
 0x960   :  { %v6391_v56 = vpop.eup %6390 }
 0x961   :  { %v6393_v35 = vpop.eup %6392 }
 0x962   :  { %v6395_v4 = vpop.eup %6394  ;;  %v4192_v9 = vmul.f32 %v6393_v35, %v6391_v56 }
 0x963   :  { %v4191_v12 = vmul.f32 0.0, %v6395_v4 }
 0x965   :  { %v8350_v20 = vadd.f32 %v4192_v9, %v4191_v12  ;;  %v3693_v9 = vrot.slane %v3688_v39, %v9182_v26  ;;  %v3697_v12 = vrot.slane %v3688_v39, %v9183_v21 }
 0x967   :  { %6398 = vtanh.f32 %v8350_v20 }
 0x969   :  { %v6397_v29 = vpop.eup %6396 }
 0x974   :  { %v6399_v44 = vpop.eup %6398 }
 0x975   :  { %v4195_v40 = vmul.f32 %v6399_v44, %v6397_v29 }
 0x977   :  { %v4200_v34 = vpack.c.bf16 %v4195_v40, %v4195_v40 }
 0x979   :  { %4394 = vmatmul.mubr.bf16.vlgmr.msra.gmra.mxu0 %v4200_v34  ;;  %4435 = vmatmul.mubr.bf16.vlgmr.msra.gmra.mxu1 %v4200_v34  ;;  %v3705_v34 = vrot.slane %v3688_v39, %v9185_v23 }
 0x97a   :  { %4477 = vmatpush1.bf16.msra.mxu0 %v8153_v6  ;;  %4518 = vmatpush1.bf16.msra.mxu1 %v8155_v0 }
 0x97b   :  { %4478 = vmatprep.subr.bf16.mxu0 %v8161_v53  ;;  %4519 = vmatprep.subr.bf16.mxu1 %v8163_v52 }
 0x97c   :  { %4508 = vmatprep.mubr.bf16.mxu0 %v8944_v58  ;;  %4549 = vmatprep.mubr.bf16.mxu1 %v8944_v58 }
 0x97e   :  { %v4064_v59 = vpop.f32.mrf.mxu0  ;;  %v4105_v1 = vpop.f32.mrf.mxu1  ;;  %4479 = vmatpush1.bf16.msra.mxu0 %v8165_v41  ;;  %4520 = vmatpush1.bf16.msra.mxu1 %v8167_v37 }
 0x97f   :  { %v4065_v56 = vadd.f32 %v4064_v59, %v3693_v9  ;;  %4480 = vmatprep.subr.bf16.mxu0 %v8173_v42  ;;  %4521 = vmatprep.subr.bf16.mxu1 %v8175_v32  ;;  %v3701_v9 = vrot.slane %v3688_v39, %v9184_v28 }
 0x980   :  { %v4066_v26 = vpop.f32.mrf.mxu0  ;;  %v4107_v4 = vpop.f32.mrf.mxu1 }
 0x981   :  { %v5588_v54 = vmul.f32 -1.442695, %v4065_v56  ;;  %v4067_v30 = vadd.f32 %v4066_v26, %v3697_v12  ;;  %v4108_v12 = vadd.f32 %v4107_v4, %v3705_v34  ;;  %v4106_v23 = vadd.f32 %v4105_v1, %v3701_v9 }
 0x982   :  { %v4068_v35 = vpop.f32.mrf.mxu0  ;;  %v4109_v29 = vpop.f32.mrf.mxu1  ;;  %4481 = vmatpush1.bf16.msra.mxu0 %v8177_v38  ;;  %4522 = vmatpush1.bf16.msra.mxu1 %v8179_v43 }
 0x983   :  { %6400 = vpow2.f32 %v5588_v54  ;;  %v5589_v21 = vmul.f32 -1.442695, %v4067_v30  ;;  %4482 = vmatprep.subr.bf16.mxu0 %v8185_v45  ;;  %4523 = vmatprep.subr.bf16.mxu1 %v8187_v55  ;;  %v5590_v59 = vmul.f32 -1.442695, %v4108_v12 }
 0x984   :  { %v4069_v44 = vpop.f32.mrf.mxu0  ;;  %v4110_v40 = vpop.f32.mrf.mxu1 }
 0x985   :  { %6402 = vpow2.f32 %v5589_v21 }
 0x986   :  { %4483 = vmatpush1.bf16.msra.mxu0 %v8189_v10  ;;  %4524 = vmatpush1.bf16.msra.mxu1 %v8191_v33  ;;  %6404 = vtanh.f32 %v4106_v23 }
 0x987   :  { %4484 = vmatprep.subr.bf16.mxu0 %v8197_v8  ;;  %4525 = vmatprep.subr.bf16.mxu1 %v8199_v5  ;;  %6406 = vpow2.f32 %v5590_v59 }
 0x98a   :  { %4485 = vmatpush1.bf16.msra.mxu0 %v8201_v19  ;;  %4526 = vmatpush1.bf16.msra.mxu1 %v8203_v14 }
 0x98b   :  { %4486 = vmatprep.subr.bf16.mxu0 %v8205_v46  ;;  %4527 = vmatprep.subr.bf16.mxu1 %v8207_v13 }
 0x98e   :  { %4487 = vmatpush1.bf16.msra.mxu0 %v8213_v24  ;;  %4528 = vmatpush1.bf16.msra.mxu1 %v8215_v51 }
 0x98f   :  { %4488 = vmatprep.subr.bf16.mxu0 %v8219_v27  ;;  %4529 = vmatprep.subr.bf16.mxu1 %v8221_v7 }
 0x990   :  { %v6401_v28 = vpop.eup %6400 }
 0x991   :  { %v4115_v39 = vadd.f32 1.0, %v6401_v28 }
 0x992   :  { %v6403_v56 = vpop.eup %6402  ;;  %4489 = vmatpush1.bf16.msra.mxu0 %v8225_v49  ;;  %4530 = vmatpush1.bf16.msra.mxu1 %v8227_v31 }
 0x993   :  { %6408 = vrcp.f32 %v4115_v39  ;;  %v4121_v1 = vadd.f32 1.0, %v6403_v56  ;;  %4490 = vmatprep.subr.bf16.mxu0 %v8231_v63  ;;  %4531 = vmatprep.subr.bf16.mxu1 %v8233_v16  ;;  %v6405_v26 = vpop.eup %6404 }
 0x994   :  { %v6407_v4 = vpop.eup %6406 }
 0x995   :  { %6410 = vrcp.f32 %v4121_v1  ;;  %v4128_v29 = vadd.f32 1.0, %v6407_v4 }
 0x996   :  { %4491 = vmatpush1.bf16.msra.mxu0 %v8237_v17  ;;  %4532 = vmatpush1.bf16.msra.mxu1 %v8239_v62 }
 0x997   :  { %4591 = vmatprep.subr.bf16.mxu0 %v8149_v3  ;;  %4632 = vmatprep.subr.bf16.mxu1 %v8151_v57  ;;  %6412 = vrcp.f32 %v4128_v29 }
 0x9a0   :  { %v6409_v54 = vpop.eup %6408 }
 0x9a1   :  { %v4132_v30 = vmul.f32 %v6409_v54, %v6405_v26 }
 0x9a2   :  { %v6411_v35 = vpop.eup %6410 }
 0x9a3   :  { %v4131_v21 = vmul.f32 0.0, %v6411_v35 }
 0x9a4   :  { %v6413_v40 = vpop.eup %6412 }
 0x9a5   :  { %v4133_v44 = vadd.f32 %v4132_v30, %v4131_v21 }
 0x9a7   :  { %6414 = vtanh.f32 %v4133_v44 }
 0x9b4   :  { %v6415_v34 = vpop.eup %6414 }
 0x9b5   :  { %v8394_v9 = vmul.f32 %v6415_v34, %v6413_v40 }
 0xa39   :  { %v4395_v12 = vpop.f32.mrf.mxu0  ;;  %v4436_v23 = vpop.f32.mrf.mxu1 }
 0xa3a   :  { %v4443_v59 = vadd.f32 %v4395_v12, %v8265_v25  ;;  %v4445_v21 = vadd.f32 %v4436_v23, %v8268_v60 }
 0xa3b   :  { %v4397_v28 = vpop.f32.mrf.mxu0  ;;  %v4438_v39 = vpop.f32.mrf.mxu1 }
 0xa3c   :  { %v5626_v56 = vmul.f32 -1.442695, %v4443_v59  ;;  %v4444_v1 = vadd.f32 %v4397_v28, %v8271_v50  ;;  %v4446_v29 = vadd.f32 %v4438_v39, %v8274_v22 }
 0xa3d   :  { %v4399_v26 = vpop.f32.mrf.mxu0  ;;  %v4440_v54 = vpop.f32.mrf.mxu1 }
 0xa3e   :  { %6416 = vpow2.f32 %v5626_v56  ;;  %v5627_v4 = vmul.f32 -1.442695, %v4444_v1  ;;  %v5628_v44 = vmul.f32 -1.442695, %v4446_v29 }
 0xa3f   :  { %v4400_v30 = vpop.f32.mrf.mxu0  ;;  %v4441_v35 = vpop.f32.mrf.mxu1 }
 0xa40   :  { %6418 = vpow2.f32 %v5627_v4 }
 0xa41   :  { %6420 = vtanh.f32 %v4445_v21 }
 0xa42   :  { %6422 = vpow2.f32 %v5628_v44 }
 0xa4b   :  { %v6417_v40 = vpop.eup %6416 }
 0xa4c   :  { %v4450_v34 = vadd.f32 1.0, %v6417_v40 }
 0xa4d   :  { %v6419_v25 = vpop.eup %6418 }
 0xa4e   :  { %6424 = vrcp.f32 %v4450_v34  ;;  %v4456_v12 = vadd.f32 1.0, %v6419_v25  ;;  %v6421_v50 = vpop.eup %6420 }
 0xa4f   :  { %v6423_v59 = vpop.eup %6422 }
 0xa50   :  { %6426 = vrcp.f32 %v4456_v12  ;;  %v4463_v26 = vadd.f32 1.0, %v6423_v59 }
 0xa52   :  { %6428 = vrcp.f32 %v4463_v26 }
 0xa5b   :  { %v6425_v28 = vpop.eup %6424 }
 0xa5c   :  { %v4467_v56 = vmul.f32 %v6425_v28, %v6421_v50 }
 0xa5d   :  { %v6427_v1 = vpop.eup %6426 }
 0xa5e   :  { %v4466_v54 = vmul.f32 %v6427_v1, %v8350_v20 }
 0xa5f   :  { %v6429_v60 = vpop.eup %6428 }
 0xa60   :  { %v8401_v22 = vadd.f32 %v4467_v56, %v4466_v54  ;;  %v9202_v56 = vld [vmem:[#allocation90_spill] sm:$0xff] }
 0xa62   :  { %6430 = vtanh.f32 %v8401_v22 }
 0xa6f   :  { %v6431_v23 = vpop.eup %6430 }
 0xa70   :  { %v4470_v39 = vmul.f32 %v6431_v23, %v6429_v60 }
 0xa72   :  { %v4475_v4 = vpack.c.bf16 %v4470_v39, %v4470_v39 }
 0xa74   :  { %4509 = vmatmul.mubr.bf16.vlgmr.msra.gmra.mxu0 %v4475_v4  ;;  %4550 = vmatmul.mubr.bf16.vlgmr.msra.gmra.mxu1 %v4475_v4 }
 0xa75   :  { %4592 = vmatpush1.bf16.msra.mxu0 %v8153_v6  ;;  %4633 = vmatpush1.bf16.msra.mxu1 %v8155_v0 }
 0xa76   :  { %4593 = vmatprep.subr.bf16.mxu0 %v8161_v53  ;;  %4634 = vmatprep.subr.bf16.mxu1 %v8163_v52 }
 0xa77   :  { %4623 = vmatprep.mubr.bf16.mxu0 %v8944_v58  ;;  %4664 = vmatprep.mubr.bf16.mxu1 %v8944_v58 }
 0xa79   :  { %4594 = vmatpush1.bf16.msra.mxu0 %v8165_v41  ;;  %4635 = vmatpush1.bf16.msra.mxu1 %v8167_v37 }
 0xa7a   :  { %4595 = vmatprep.subr.bf16.mxu0 %v8173_v42  ;;  %4636 = vmatprep.subr.bf16.mxu1 %v8175_v32 }
 0xa7d   :  { %4596 = vmatpush1.bf16.msra.mxu0 %v8177_v38  ;;  %4637 = vmatpush1.bf16.msra.mxu1 %v8179_v43 }
 0xa7e   :  { %4597 = vmatprep.subr.bf16.mxu0 %v8185_v45  ;;  %4638 = vmatprep.subr.bf16.mxu1 %v8187_v55 }
 0xa81   :  { %4598 = vmatpush1.bf16.msra.mxu0 %v8189_v10  ;;  %4639 = vmatpush1.bf16.msra.mxu1 %v8191_v33 }
 0xa82   :  { %4599 = vmatprep.subr.bf16.mxu0 %v8197_v8  ;;  %4640 = vmatprep.subr.bf16.mxu1 %v8199_v5 }
 0xa85   :  { %4600 = vmatpush1.bf16.msra.mxu0 %v8201_v19  ;;  %4641 = vmatpush1.bf16.msra.mxu1 %v8203_v14 }
 0xa86   :  { %4601 = vmatprep.subr.bf16.mxu0 %v8205_v46  ;;  %4642 = vmatprep.subr.bf16.mxu1 %v8207_v13 }
 0xa89   :  { %4602 = vmatpush1.bf16.msra.mxu0 %v8213_v24  ;;  %4643 = vmatpush1.bf16.msra.mxu1 %v8215_v51 }
 0xa8a   :  { %4603 = vmatprep.subr.bf16.mxu0 %v8219_v27  ;;  %4644 = vmatprep.subr.bf16.mxu1 %v8221_v7 }
 0xa8d   :  { %4604 = vmatpush1.bf16.msra.mxu0 %v8225_v49  ;;  %4645 = vmatpush1.bf16.msra.mxu1 %v8227_v31 }
 0xa8e   :  { %4605 = vmatprep.subr.bf16.mxu0 %v8231_v63  ;;  %4646 = vmatprep.subr.bf16.mxu1 %v8233_v16 }
 0xa91   :  { %4606 = vmatpush1.bf16.msra.mxu0 %v8237_v17  ;;  %4647 = vmatpush1.bf16.msra.mxu1 %v8239_v62 }
 0xa92   :  { %4706 = vmatprep.subr.bf16.mxu0 %v8149_v3  ;;  %4747 = vmatprep.subr.bf16.mxu1 %v8151_v57 }
 0xb34   :  { %v4510_v20 = vpop.f32.mrf.mxu0  ;;  %v4551_v30 = vpop.f32.mrf.mxu1 }
 0xb35   :  { %v4558_v35 = vadd.f32 %v4510_v20, %v8277_v47  ;;  %v4560_v1 = vadd.f32 %v4551_v30, %v9202_v56 }
 0xb36   :  { %v4512_v29 = vpop.f32.mrf.mxu0  ;;  %v4553_v21 = vpop.f32.mrf.mxu1 }
 0xb37   :  { %v5629_v44 = vmul.f32 -1.442695, %v4558_v35  ;;  %v4559_v40 = vadd.f32 %v4512_v29, %v8283_v18  ;;  %v4561_v28 = vadd.f32 %v4553_v21, %v8286_v61 }
 0xb38   :  { %v4514_v34 = vpop.f32.mrf.mxu0  ;;  %v4555_v25 = vpop.f32.mrf.mxu1 }
 0xb39   :  { %6432 = vpow2.f32 %v5629_v44  ;;  %v5630_v12 = vmul.f32 -1.442695, %v4559_v40  ;;  %v5631_v26 = vmul.f32 -1.442695, %v4561_v28 }
 0xb3a   :  { %v4515_v50 = vpop.f32.mrf.mxu0  ;;  %v4556_v59 = vpop.f32.mrf.mxu1 }
 0xb3b   :  { %6434 = vpow2.f32 %v5630_v12  ;;  %v9203_v12 = vld [vmem:[#allocation91_spill] sm:$0xff] }
 0xb3c   :  { %6436 = vtanh.f32 %v4560_v1 }
 0xb3d   :  { %6438 = vpow2.f32 %v5631_v26 }
 0xb46   :  { %v6433_v54 = vpop.eup %6432 }
 0xb47   :  { %v4565_v60 = vadd.f32 1.0, %v6433_v54 }
 0xb48   :  { %v6435_v47 = vpop.eup %6434 }
 0xb49   :  { %6440 = vrcp.f32 %v4565_v60  ;;  %v4571_v23 = vadd.f32 1.0, %v6435_v47  ;;  %v6437_v18 = vpop.eup %6436 }
 0xb4a   :  { %v6439_v39 = vpop.eup %6438 }
 0xb4b   :  { %6442 = vrcp.f32 %v4571_v23  ;;  %v4578_v29 = vadd.f32 1.0, %v6439_v39 }
 0xb4d   :  { %6444 = vrcp.f32 %v4578_v29 }
 0xb56   :  { %v6441_v4 = vpop.eup %6440 }
 0xb57   :  { %v4582_v20 = vmul.f32 %v6441_v4, %v6437_v18  ;;  %v9204_v18 = vld [vmem:[#allocation92_spill] sm:$0xff]  ;;  %v9205_v4 = vld [vmem:[#allocation89_spill] sm:$0xff] }
 0xb58   :  { %v6443_v35 = vpop.eup %6442 }
 0xb59   :  { %v4581_v44 = vmul.f32 %v6443_v35, %v8401_v22 }
 0xb5a   :  { %v6445_v30 = vpop.eup %6444 }
 0xb5b   :  { %v8443_v61 = vadd.f32 %v4582_v20, %v4581_v44 }
 0xb5d   :  { %6446 = vtanh.f32 %v8443_v61 }
 0xb6a   :  { %v6447_v21 = vpop.eup %6446 }
 0xb6b   :  { %v4585_v40 = vmul.f32 %v6447_v21, %v6445_v30 }
 0xb6d   :  { %v4590_v34 = vpack.c.bf16 %v4585_v40, %v4585_v40 }
 0xb6f   :  { %4624 = vmatmul.mubr.bf16.vlgmr.msra.gmra.mxu0 %v4590_v34  ;;  %4665 = vmatmul.mubr.bf16.vlgmr.msra.gmra.mxu1 %v4590_v34 }
 0xb70   :  { %4707 = vmatpush1.bf16.msra.mxu0 %v8153_v6  ;;  %4748 = vmatpush1.bf16.msra.mxu1 %v8155_v0 }
 0xb71   :  { %4708 = vmatprep.subr.bf16.mxu0 %v8161_v53  ;;  %4749 = vmatprep.subr.bf16.mxu1 %v8163_v52 }
 0xb72   :  { %4738 = vmatprep.mubr.bf16.mxu0 %v8944_v58  ;;  %4779 = vmatprep.mubr.bf16.mxu1 %v8944_v58 }
 0xb74   :  { %4709 = vmatpush1.bf16.msra.mxu0 %v8165_v41  ;;  %4750 = vmatpush1.bf16.msra.mxu1 %v8167_v37 }
 0xb75   :  { %4710 = vmatprep.subr.bf16.mxu0 %v8173_v42  ;;  %4751 = vmatprep.subr.bf16.mxu1 %v8175_v32 }
 0xb78   :  { %4711 = vmatpush1.bf16.msra.mxu0 %v8177_v38  ;;  %4752 = vmatpush1.bf16.msra.mxu1 %v8179_v43 }
 0xb79   :  { %4712 = vmatprep.subr.bf16.mxu0 %v8185_v45  ;;  %4753 = vmatprep.subr.bf16.mxu1 %v8187_v55 }
 0xb7c   :  { %4713 = vmatpush1.bf16.msra.mxu0 %v8189_v10  ;;  %4754 = vmatpush1.bf16.msra.mxu1 %v8191_v33 }
 0xb7d   :  { %4714 = vmatprep.subr.bf16.mxu0 %v8197_v8  ;;  %4755 = vmatprep.subr.bf16.mxu1 %v8199_v5 }
 0xb80   :  { %4715 = vmatpush1.bf16.msra.mxu0 %v8201_v19  ;;  %4756 = vmatpush1.bf16.msra.mxu1 %v8203_v14 }
 0xb81   :  { %4716 = vmatprep.subr.bf16.mxu0 %v8205_v46  ;;  %4757 = vmatprep.subr.bf16.mxu1 %v8207_v13 }
 0xb84   :  { %4717 = vmatpush1.bf16.msra.mxu0 %v8213_v24  ;;  %4758 = vmatpush1.bf16.msra.mxu1 %v8215_v51 }
 0xb85   :  { %4718 = vmatprep.subr.bf16.mxu0 %v8219_v27  ;;  %4759 = vmatprep.subr.bf16.mxu1 %v8221_v7 }
 0xb88   :  { %4719 = vmatpush1.bf16.msra.mxu0 %v8225_v49  ;;  %4760 = vmatpush1.bf16.msra.mxu1 %v8227_v31 }
 0xb89   :  { %4720 = vmatprep.subr.bf16.mxu0 %v8231_v63  ;;  %4761 = vmatprep.subr.bf16.mxu1 %v8233_v16 }
 0xb8c   :  { %4721 = vmatpush1.bf16.msra.mxu0 %v8237_v17  ;;  %4762 = vmatpush1.bf16.msra.mxu1 %v8239_v62 }
 0xb8d   :  { %4821 = vmatprep.subr.bf16.mxu0 %v8149_v3  ;;  %4862 = vmatprep.subr.bf16.mxu1 %v8151_v57 }
 0xc2f   :  { %v4625_v22 = vpop.f32.mrf.mxu0  ;;  %v4666_v25 = vpop.f32.mrf.mxu1 }
 0xc30   :  { %v4673_v50 = vadd.f32 %v4625_v22, %v9203_v12  ;;  %v4675_v20 = vadd.f32 %v4666_v25, %v9205_v4  ;;  %v9207_v4 = vld [vmem:[#allocation95_spill] sm:$0xff] }
 0xc31   :  { %v4627_v59 = vpop.f32.mrf.mxu0  ;;  %v4668_v28 = vpop.f32.mrf.mxu1 }
 0xc32   :  { %v5632_v56 = vmul.f32 -1.442695, %v4673_v50  ;;  %v4674_v1 = vadd.f32 %v4627_v59, %v8296_v36  ;;  %v4676_v39 = vadd.f32 %v4668_v28, %v9204_v18 }
 0xc33   :  { %v4629_v26 = vpop.f32.mrf.mxu0  ;;  %v4670_v54 = vpop.f32.mrf.mxu1 }
 0xc34   :  { %6448 = vpow2.f32 %v5632_v56  ;;  %v5633_v60 = vmul.f32 -1.442695, %v4674_v1  ;;  %v5634_v35 = vmul.f32 -1.442695, %v4676_v39 }
 0xc35   :  { %v4630_v47 = vpop.f32.mrf.mxu0  ;;  %v4671_v23 = vpop.f32.mrf.mxu1 }
 0xc36   :  { %6450 = vpow2.f32 %v5633_v60  ;;  %v9206_v60 = vld [vmem:[#allocation93_spill] sm:$0xff] }
 0xc37   :  { %6452 = vtanh.f32 %v4675_v20 }
 0xc38   :  { %6454 = vpow2.f32 %v5634_v35 }
 0xc41   :  { %v6449_v29 = vpop.eup %6448 }
 0xc42   :  { %v4680_v44 = vadd.f32 1.0, %v6449_v29 }
 0xc43   :  { %v6451_v30 = vpop.eup %6450 }
 0xc44   :  { %6456 = vrcp.f32 %v4680_v44  ;;  %v4686_v21 = vadd.f32 1.0, %v6451_v30  ;;  %v6453_v36 = vpop.eup %6452 }
 0xc45   :  { %v6455_v40 = vpop.eup %6454 }
 0xc46   :  { %6458 = vrcp.f32 %v4686_v21  ;;  %v4693_v50 = vadd.f32 1.0, %v6455_v40  ;;  %v9209_v40 = vld [vmem:[#allocation94_spill] sm:$0xff] }
 0xc48   :  { %6460 = vrcp.f32 %v4693_v50 }
 0xc51   :  { %v6457_v34 = vpop.eup %6456 }
 0xc52   :  { %v4697_v22 = vmul.f32 %v6457_v34, %v6453_v36  ;;  %v9208_v36 = vld [vmem:[#allocation86_spill] sm:$0xff] }
 0xc53   :  { %v6459_v12 = vpop.eup %6458 }
 0xc54   :  { %v4696_v59 = vmul.f32 %v6459_v12, %v8443_v61 }
 0xc55   :  { %v6461_v25 = vpop.eup %6460 }
 0xc56   :  { %v8485_v28 = vadd.f32 %v4697_v22, %v4696_v59 }
 0xc58   :  { %6462 = vtanh.f32 %v8485_v28 }
 0xc65   :  { %v6463_v56 = vpop.eup %6462 }
 0xc66   :  { %v4700_v1 = vmul.f32 %v6463_v56, %v6461_v25 }
 0xc68   :  { %v4705_v26 = vpack.c.bf16 %v4700_v1, %v4700_v1 }
 0xc6a   :  { %4739 = vmatmul.mubr.bf16.vlgmr.msra.gmra.mxu0 %v4705_v26  ;;  %4780 = vmatmul.mubr.bf16.vlgmr.msra.gmra.mxu1 %v4705_v26 }
 0xc6b   :  { %4822 = vmatpush1.bf16.msra.mxu0 %v8153_v6  ;;  %4863 = vmatpush1.bf16.msra.mxu1 %v8155_v0 }
 0xc6c   :  { %4823 = vmatprep.subr.bf16.mxu0 %v8161_v53  ;;  %4864 = vmatprep.subr.bf16.mxu1 %v8163_v52 }
 0xc6d   :  { %4853 = vmatprep.mubr.bf16.mxu0 %v8944_v58  ;;  %4894 = vmatprep.mubr.bf16.mxu1 %v8944_v58 }
 0xc6f   :  { %4824 = vmatpush1.bf16.msra.mxu0 %v8165_v41  ;;  %4865 = vmatpush1.bf16.msra.mxu1 %v8167_v37 }
 0xc70   :  { %4825 = vmatprep.subr.bf16.mxu0 %v8173_v42  ;;  %4866 = vmatprep.subr.bf16.mxu1 %v8175_v32 }
 0xc73   :  { %4826 = vmatpush1.bf16.msra.mxu0 %v8177_v38  ;;  %4867 = vmatpush1.bf16.msra.mxu1 %v8179_v43 }
 0xc74   :  { %4827 = vmatprep.subr.bf16.mxu0 %v8185_v45  ;;  %4868 = vmatprep.subr.bf16.mxu1 %v8187_v55 }
 0xc77   :  { %4828 = vmatpush1.bf16.msra.mxu0 %v8189_v10  ;;  %4869 = vmatpush1.bf16.msra.mxu1 %v8191_v33 }
 0xc78   :  { %4829 = vmatprep.subr.bf16.mxu0 %v8197_v8  ;;  %4870 = vmatprep.subr.bf16.mxu1 %v8199_v5 }
 0xc7b   :  { %4830 = vmatpush1.bf16.msra.mxu0 %v8201_v19  ;;  %4871 = vmatpush1.bf16.msra.mxu1 %v8203_v14 }
 0xc7c   :  { %4831 = vmatprep.subr.bf16.mxu0 %v8205_v46  ;;  %4872 = vmatprep.subr.bf16.mxu1 %v8207_v13 }
 0xc7f   :  { %4832 = vmatpush1.bf16.msra.mxu0 %v8213_v24  ;;  %4873 = vmatpush1.bf16.msra.mxu1 %v8215_v51 }
 0xc80   :  { %4833 = vmatprep.subr.bf16.mxu0 %v8219_v27  ;;  %4874 = vmatprep.subr.bf16.mxu1 %v8221_v7 }
 0xc83   :  { %4834 = vmatpush1.bf16.msra.mxu0 %v8225_v49  ;;  %4875 = vmatpush1.bf16.msra.mxu1 %v8227_v31 }
 0xc84   :  { %4835 = vmatprep.subr.bf16.mxu0 %v8231_v63  ;;  %4876 = vmatprep.subr.bf16.mxu1 %v8233_v16 }
 0xc87   :  { %4836 = vmatpush1.bf16.msra.mxu0 %v8237_v17  ;;  %4877 = vmatpush1.bf16.msra.mxu1 %v8239_v62 }
 0xc88   :  { %4936 = vmatprep.subr.bf16.mxu0 %v8149_v3  ;;  %4977 = vmatprep.subr.bf16.mxu1 %v8151_v57 }
 0xd2a   :  { %v4740_v61 = vpop.f32.mrf.mxu0  ;;  %v4781_v54 = vpop.f32.mrf.mxu1 }
 0xd2b   :  { %v4788_v47 = vadd.f32 %v4740_v61, %v9206_v60  ;;  %v4790_v57 = vadd.f32 %v4781_v54, %v9209_v40  ;;  %v6596_v40 = vld [vmem:[#allocation14 + $0xc4] ss:$16 sps:$4 sm:$0xff]  }
 0xd2c   :  { %v4742_v23 = vpop.f32.mrf.mxu0  ;;  %v4783_v18 = vpop.f32.mrf.mxu1 }
 0xd2d   :  { %v5635_v39 = vmul.f32 -1.442695, %v4788_v47  ;;  %v4789_v20 = vadd.f32 %v4742_v23, %v9207_v4  ;;  %v4791_v3 = vadd.f32 %v4783_v18, %v9208_v36  ;;  %v6594_v36 = vld [vmem:[#allocation14 + $0xe0] ss:$16 sps:$4 sm:$0xff]  }
 0xd2e   :  { %v4744_v35 = vpop.f32.mrf.mxu0  ;;  %v4785_v29 = vpop.f32.mrf.mxu1 }
 0xd2f   :  { %6464 = vpow2.f32 %v5635_v39  ;;  %v5636_v44 = vmul.f32 -1.442695, %v4789_v20  ;;  %v5637_v34 = vmul.f32 -1.442695, %v4791_v3  ;;  %v6595_v3 = vld [vmem:[#allocation14 + $0xe8] ss:$16 sps:$4 sm:$0xff]  }
 0xd30   :  { %v4745_v30 = vpop.f32.mrf.mxu0  ;;  %v4786_v21 = vpop.f32.mrf.mxu1 }
 0xd31   :  { %6466 = vpow2.f32 %v5636_v44 }
 0xd32   :  { %6468 = vtanh.f32 %v4790_v57  ;;  %v6597_v57 = vld [vmem:[#allocation14 + $0xcc] ss:$16 sps:$4 sm:$0xff]  }
 0xd33   :  { %6470 = vpow2.f32 %v5637_v34  ;;  %v6598_v34 = vld [vmem:[#allocation14 + $0xc0] ss:$16 sps:$4 sm:$0xff]  }
 0xd3c   :  { %v6465_v22 = vpop.eup %6464 }
 0xd3d   :  { %v4795_v12 = vadd.f32 1.0, %v6465_v22  ;;  %v6599_v22 = vld [vmem:[#allocation14 + $0xc8] ss:$16 sps:$4 sm:$0xff]  }
 0xd3e   :  { %v6467_v50 = vpop.eup %6466 }
 0xd3f   :  { %6472 = vrcp.f32 %v4795_v12  ;;  %v4801_v59 = vadd.f32 1.0, %v6467_v50  ;;  %v6469_v25 = vpop.eup %6468  ;;  %v6600_v12 = vld [vmem:[#allocation14 + $0xa4] ss:$16 sps:$4 sm:$0xff]   ;;  %v6601_v50 = vld [vmem:[#allocation14 + $0xac] ss:$16 sps:$4 sm:$0xff]  }
 0xd40   :  { %v6471_v56 = vpop.eup %6470 }
 0xd41   :  { %6474 = vrcp.f32 %v4801_v59  ;;  %v4808_v60 = vadd.f32 1.0, %v6471_v56  ;;  %v6602_v59 = vld [vmem:[#allocation14 + $0xa0] ss:$16 sps:$4 sm:$0xff]   ;;  %v6604_v56 = vld [vmem:[#allocation14 + $0x84] ss:$16 sps:$4 sm:$0xff]  }
 0xd43   :  { %6476 = vrcp.f32 %v4808_v60  ;;  %v6609_v60 = vld [vmem:[#allocation14 + $0x6c] ss:$16 sps:$4 sm:$0xff]  }
 0xd4c   :  { %v6473_v1 = vpop.eup %6472 }
 0xd4d   :  { %v4812_v26 = vmul.f32 %v6473_v1, %v6469_v25  ;;  %v6603_v25 = vld [vmem:[#allocation14 + $0xa8] ss:$16 sps:$4 sm:$0xff]   ;;  %v6605_v1 = vld [vmem:[#allocation14 + $0x8c] ss:$16 sps:$4 sm:$0xff]  }
 0xd4e   :  { %v6475_v61 = vpop.eup %6474 }
 0xd4f   :  { %v4811_v47 = vmul.f32 %v6475_v61, %v8485_v28  ;;  %v6607_v61 = vld [vmem:[#allocation14 + $0x88] ss:$16 sps:$4 sm:$0xff]  }
 0xd50   :  { %v6477_v54 = vpop.eup %6476 }
 0xd51   :  { %v8527_v23 = vadd.f32 %v4812_v26, %v4811_v47  ;;  %v6606_v26 = vld [vmem:[#allocation14 + $0x80] ss:$16 sps:$4 sm:$0xff]  }
 0xd52   :  { %v6610_v47 = vld [vmem:[#allocation14 + $0x60] ss:$16 sps:$4 sm:$0xff]  }
 0xd53   :  { %6478 = vtanh.f32 %v8527_v23 }
 0xd60   :  { %v6479_v18 = vpop.eup %6478 }
 0xd61   :  { %v4815_v39 = vmul.f32 %v6479_v18, %v6477_v54  ;;  %v6612_v54 = vld [vmem:[#allocation14 + $0x44] ss:$16 sps:$4 sm:$0xff]   ;;  %v6613_v18 = vld [vmem:[#allocation14 + $0x4c] ss:$16 sps:$4 sm:$0xff]  }
 0xd63   :  { %v4820_v4 = vpack.c.bf16 %v4815_v39, %v4815_v39  ;;  %v6614_v39 = vld [vmem:[#allocation14 + $0x40] ss:$16 sps:$4 sm:$0xff]  }
 0xd65   :  { %4854 = vmatmul.mubr.bf16.vlgmr.msra.gmra.mxu0 %v4820_v4  ;;  %4895 = vmatmul.mubr.bf16.vlgmr.msra.gmra.mxu1 %v4820_v4  ;;  %v6615_v4 = vld [vmem:[#allocation14 + $0x48] ss:$16 sps:$4 sm:$0xff]  }
 0xd66   :  { %4937 = vmatpush1.bf16.msra.mxu0 %v8153_v6  ;;  %4978 = vmatpush1.bf16.msra.mxu1 %v8155_v0  ;;  %v6592_v6 = vld [vmem:[#allocation14 + $0xe4] ss:$16 sps:$4 sm:$0xff]   ;;  %v6593_v0 = vld [vmem:[#allocation14 + $0xec] ss:$16 sps:$4 sm:$0xff]  }
 0xd67   :  { %4938 = vmatprep.subr.bf16.mxu0 %v8161_v53  ;;  %4979 = vmatprep.subr.bf16.mxu1 %v8163_v52 }
 0xd68   :  { %4968 = vmatprep.mubr.bf16.mxu0 %v8944_v58  ;;  %5009 = vmatprep.mubr.bf16.mxu1 %v8944_v58 }
 0xd6a   :  { %4939 = vmatpush1.bf16.msra.mxu0 %v8165_v41  ;;  %4980 = vmatpush1.bf16.msra.mxu1 %v8167_v37  ;;  %v9210_v41 = vld [vmem:[#allocation96_spill] sm:$0xff] }
 0xd6b   :  { %4940 = vmatprep.subr.bf16.mxu0 %v8173_v42  ;;  %4981 = vmatprep.subr.bf16.mxu1 %v8175_v32 }
 0xd6e   :  { %4941 = vmatpush1.bf16.msra.mxu0 %v8177_v38  ;;  %4982 = vmatpush1.bf16.msra.mxu1 %v8179_v43  ;;  %v9211_v43 = vld [vmem:[#allocation98_spill] sm:$0xff] }
 0xd6f   :  { %4942 = vmatprep.subr.bf16.mxu0 %v8185_v45  ;;  %4983 = vmatprep.subr.bf16.mxu1 %v8187_v55 }
 0xd72   :  { %4943 = vmatpush1.bf16.msra.mxu0 %v8189_v10  ;;  %4984 = vmatpush1.bf16.msra.mxu1 %v8191_v33 }
 0xd73   :  { %4944 = vmatprep.subr.bf16.mxu0 %v8197_v8  ;;  %4985 = vmatprep.subr.bf16.mxu1 %v8199_v5 }
 0xd76   :  { %4945 = vmatpush1.bf16.msra.mxu0 %v8201_v19  ;;  %4986 = vmatpush1.bf16.msra.mxu1 %v8203_v14  ;;  %v9212_v19 = vld [vmem:[#allocation105_spill] sm:$0xff] }
 0xd77   :  { %4946 = vmatprep.subr.bf16.mxu0 %v8205_v46  ;;  %4987 = vmatprep.subr.bf16.mxu1 %v8207_v13  ;;  %v9213_v46 = vld [vmem:[#allocation97_spill] sm:$0xff] }
 0xd7a   :  { %4947 = vmatpush1.bf16.msra.mxu0 %v8213_v24  ;;  %4988 = vmatpush1.bf16.msra.mxu1 %v8215_v51 }
 0xd7b   :  { %4948 = vmatprep.subr.bf16.mxu0 %v8219_v27  ;;  %4989 = vmatprep.subr.bf16.mxu1 %v8221_v7 }
 0xd7e   :  { %4949 = vmatpush1.bf16.msra.mxu0 %v8225_v49  ;;  %4990 = vmatpush1.bf16.msra.mxu1 %v8227_v31 }
 0xd7f   :  { %4950 = vmatprep.subr.bf16.mxu0 %v8231_v63  ;;  %4991 = vmatprep.subr.bf16.mxu1 %v8233_v16 }
 0xd82   :  { %4951 = vmatpush1.bf16.msra.mxu0 %v8237_v17  ;;  %4992 = vmatpush1.bf16.msra.mxu1 %v8239_v62 }
 0xd83   :  { %5051 = vmatprep.subr.bf16.mxu0 %v6592_v6  ;;  %5092 = vmatprep.subr.bf16.mxu1 %v6593_v0  ;;  %v6616_v6 = vld [vmem:[#allocation14 + $0x24] ss:$16 sps:$4 sm:$0xff]   ;;  %v6617_v0 = vld [vmem:[#allocation14 + $0x2c] ss:$16 sps:$4 sm:$0xff]  }
 0xe25   :  { %v4855_v53 = vpop.f32.mrf.mxu0  ;;  %v4896_v52 = vpop.f32.mrf.mxu1 }
 0xe26   :  { %v4903_v37 = vadd.f32 %v4855_v53, %v9210_v41  ;;  %v4905_v13 = vadd.f32 %v4896_v52, %v9213_v46  ;;  %v6618_v53 = vld [vmem:[#allocation14 + $0x20] ss:$16 sps:$4 sm:$0xff]   ;;  %v6619_v52 = vld [vmem:[#allocation14 + $0x28] ss:$16 sps:$4 sm:$0xff]   ;;  %v6620_v41 = vld [vmem:[#allocation14 + $0x4] ss:$16 sps:$4 sm:$0xff]  }
 0xe27   :  { %v4857_v42 = vpop.f32.mrf.mxu0  ;;  %v4898_v32 = vpop.f32.mrf.mxu1 }
 0xe28   :  { %v5638_v38 = vmul.f32 -1.442695, %v4903_v37  ;;  %v4904_v45 = vadd.f32 %v4857_v42, %v9211_v43  ;;  %v4906_v14 = vadd.f32 %v4898_v32, %v9212_v19  ;;  %v6621_v37 = vld [vmem:[#allocation14 + $0xc] ss:$16 sps:$4 sm:$0xff]   ;;  %v6622_v42 = vld [vmem:[#allocation14] ss:$16 sps:$4 sm:$0xff]  }
 0xe29   :  { %v4859_v55 = vpop.f32.mrf.mxu0  ;;  %v4900_v10 = vpop.f32.mrf.mxu1  ;;  %v6623_v32 = vld [vmem:[#allocation14 + $0x8] ss:$16 sps:$4 sm:$0xff]  }
 0xe2a   :  { %6480 = vpow2.f32 %v5638_v38  ;;  %v5639_v33 = vmul.f32 -1.442695, %v4904_v45  ;;  %v5640_v24 = vmul.f32 -1.442695, %v4906_v14  ;;  %v9214_v45 = vld [vmem:[#allocation20_spill] sm:$0xff] }
 0xe2b   :  { %v4860_v8 = vpop.f32.mrf.mxu0  ;;  %v4901_v5 = vpop.f32.mrf.mxu1 }
 0xe2c   :  { %6482 = vpow2.f32 %v5639_v33  ;;  %v9215_v5 = vld [vmem:[#allocation22_spill] sm:$0xff] }
 0xe2d   :  { %6484 = vtanh.f32 %v4905_v13 }
 0xe2e   :  { %6486 = vpow2.f32 %v5640_v24 }
 0xe37   :  { %v6481_v51 = vpop.eup %6480 }
 0xe38   :  { %v4910_v27 = vadd.f32 1.0, %v6481_v51 }
 0xe39   :  { %v6483_v7 = vpop.eup %6482 }
 0xe3a   :  { %6488 = vrcp.f32 %v4910_v27  ;;  %v4916_v49 = vadd.f32 1.0, %v6483_v7  ;;  %v6485_v31 = vpop.eup %6484  ;;  %v9216_v27 = vld [vmem:[#allocation37_spill] sm:$0xff] }
 0xe3b   :  { %v6487_v63 = vpop.eup %6486 }
 0xe3c   :  { %6490 = vrcp.f32 %v4916_v49  ;;  %v4923_v28 = vadd.f32 1.0, %v6487_v63  ;;  %v9217_v49 = vld [vmem:[#allocation21_spill] sm:$0xff] }
 0xe3e   :  { %6492 = vrcp.f32 %v4923_v28 }
 0xe47   :  { %v6489_v16 = vpop.eup %6488 }
 0xe48   :  { %v4927_v17 = vmul.f32 %v6489_v16, %v6485_v31 }
 0xe49   :  { %v6491_v62 = vpop.eup %6490 }
 0xe4a   :  { %v4926_v20 = vmul.f32 %v6491_v62, %v8527_v23  ;;  %v6611_v23 = vld [vmem:[#allocation14 + $0x68] ss:$16 sps:$4 sm:$0xff]  }
 0xe4b   :  { %v6493_v29 = vpop.eup %6492 }
 0xe4c   :  { %v8567_v35 = vadd.f32 %v4927_v17, %v4926_v20 }
 0xe4e   :  { %6494 = vtanh.f32 %v8567_v35 }
 0xe5b   :  { %v6495_v44 = vpop.eup %6494 }
 0xe5c   :  { %v4930_v30 = vmul.f32 %v6495_v44, %v6493_v29 }
 0xe5e   :  { %v4935_v21 = vpack.c.bf16 %v4930_v30, %v4930_v30 }
 0xe60   :  { %4969 = vmatmul.mubr.bf16.vlgmr.msra.gmra.mxu0 %v4935_v21  ;;  %5010 = vmatmul.mubr.bf16.vlgmr.msra.gmra.mxu1 %v4935_v21 }
 0xe61   :  { %5052 = vmatpush1.bf16.msra.mxu0 %v6594_v36  ;;  %5093 = vmatpush1.bf16.msra.mxu1 %v6595_v3 }
 0xe62   :  { %5053 = vmatprep.subr.bf16.mxu0 %v6596_v40  ;;  %5094 = vmatprep.subr.bf16.mxu1 %v6597_v57 }
 0xe63   :  { %5083 = vmatprep.mubr.bf16.mxu0 %v8944_v58  ;;  %5124 = vmatprep.mubr.bf16.mxu1 %v8944_v58  ;;  %v6608_v58 = vld [vmem:[#allocation14 + $0x64] ss:$16 sps:$4 sm:$0xff]  }
 0xe65   :  { %5054 = vmatpush1.bf16.msra.mxu0 %v6598_v34  ;;  %5095 = vmatpush1.bf16.msra.mxu1 %v6599_v22 }
 0xe66   :  { %5055 = vmatprep.subr.bf16.mxu0 %v6600_v12  ;;  %5096 = vmatprep.subr.bf16.mxu1 %v6601_v50  ;;  %v5192_v50 = vld [vmem:[%s8700_s12 + $0xf8] sm:$0xff] }
 0xe69   :  { %5056 = vmatpush1.bf16.msra.mxu0 %v6602_v59  ;;  %5097 = vmatpush1.bf16.msra.mxu1 %v6603_v25  ;;  %v5191_v59 = vld [vmem:[%s8700_s12 + $0xf0] sm:$0xff] }
 0xe6a   :  { %5057 = vmatprep.subr.bf16.mxu0 %v6604_v56  ;;  %5098 = vmatprep.subr.bf16.mxu1 %v6605_v1  ;;  %v5175_v25 = vld [vmem:[%s8700_s12 + $0x70] sm:$0xff]  ;;  %v5174_v56 = vld [vmem:[%s8700_s12 + $0x68] sm:$0xff]  ;;  %v5189_v1 = vld [vmem:[%s8700_s12 + $0xe0] sm:$0xff] }
 0xe6d   :  { %5058 = vmatpush1.bf16.msra.mxu0 %v6606_v26  ;;  %5099 = vmatpush1.bf16.msra.mxu1 %v6607_v61  ;;  %v5173_v26 = vld [vmem:[%s8700_s12 + $0x60] sm:$0xff]  ;;  %v5188_v61 = vld [vmem:[%s8700_s12 + $0xd8] sm:$0xff] }
 0xe6e   :  { %5059 = vmatprep.subr.bf16.mxu0 %v6608_v58  ;;  %5100 = vmatprep.subr.bf16.mxu1 %v6609_v60  ;;  %v5172_v58 = vld [vmem:[%s8700_s12 + $0x58] sm:$0xff]  ;;  %v5187_v60 = vld [vmem:[%s8700_s12 + $0xd0] sm:$0xff] }
 0xe71   :  { %5060 = vmatpush1.bf16.msra.mxu0 %v6610_v47  ;;  %5101 = vmatpush1.bf16.msra.mxu1 %v6611_v23  ;;  %v5171_v47 = vld [vmem:[%s8700_s12 + $0x50] sm:$0xff]  ;;  %v5186_v23 = vld [vmem:[%s8700_s12 + $0xc8] sm:$0xff] }
 0xe72   :  { %5061 = vmatprep.subr.bf16.mxu0 %v6612_v54  ;;  %5102 = vmatprep.subr.bf16.mxu1 %v6613_v18  ;;  %v5170_v54 = vld [vmem:[%s8700_s12 + $0x48] sm:$0xff]  ;;  %v5185_v18 = vld [vmem:[%s8700_s12 + $0xc0] sm:$0xff] }
 0xe75   :  { %5062 = vmatpush1.bf16.msra.mxu0 %v6614_v39  ;;  %5103 = vmatpush1.bf16.msra.mxu1 %v6615_v4  ;;  %v5169_v39 = vld [vmem:[%s8700_s12 + $0x40] sm:$0xff]  ;;  %v5184_v4 = vld [vmem:[%s8700_s12 + $0xb8] sm:$0xff] }
 0xe76   :  { %5063 = vmatprep.subr.bf16.mxu0 %v6616_v6  ;;  %5104 = vmatprep.subr.bf16.mxu1 %v6617_v0  ;;  %v5168_v6 = vld [vmem:[%s8700_s12 + $0x38] sm:$0xff]  ;;  %v5183_v0 = vld [vmem:[%s8700_s12 + $0xb0] sm:$0xff] }
 0xe79   :  { %5064 = vmatpush1.bf16.msra.mxu0 %v6618_v53  ;;  %5105 = vmatpush1.bf16.msra.mxu1 %v6619_v52  ;;  %v5167_v53 = vld [vmem:[%s8700_s12 + $0x30] sm:$0xff]  ;;  %v5182_v52 = vld [vmem:[%s8700_s12 + $0xa8] sm:$0xff] }
 0xe7a   :  { %5065 = vmatprep.subr.bf16.mxu0 %v6620_v41  ;;  %5106 = vmatprep.subr.bf16.mxu1 %v6621_v37  ;;  %v5166_v41 = vld [vmem:[%s8700_s12 + $0x28] sm:$0xff]  ;;  %v5181_v37 = vld [vmem:[%s8700_s12 + $0xa0] sm:$0xff] }
 0xe7d   :  { %5066 = vmatpush1.bf16.msra.mxu0 %v6622_v42  ;;  %5107 = vmatpush1.bf16.msra.mxu1 %v6623_v32  ;;  %v5165_v42 = vld [vmem:[%s8700_s12 + $0x20] sm:$0xff]  ;;  %v5180_v32 = vld [vmem:[%s8700_s12 + $0x98] sm:$0xff] }
 0xe7e   :  { %5648 = vmatprep.subr.mxu0 %v5192_v50  ;;  %v5647_v50 = vld [vmem:[%s8701_s13] ss:$0 sm:$0xff] }
 0xf20   :  { %v4970_v38 = vpop.f32.mrf.mxu0  ;;  %v5011_v43 = vpop.f32.mrf.mxu1 }
 0xf21   :  { %v5018_v55 = vadd.f32 %v4970_v38, %v9214_v45  ;;  %v5020_v31 = vadd.f32 %v5011_v43, %v9217_v49  ;;  %v5164_v38 = vld [vmem:[%s8700_s12 + $0x18] sm:$0xff]  ;;  %v5179_v43 = vld [vmem:[%s8700_s12 + $0x90] sm:$0xff] }
 0xf22   :  { %v4972_v10 = vpop.f32.mrf.mxu0  ;;  %v5013_v33 = vpop.f32.mrf.mxu1  ;;  %v5163_v45 = vld [vmem:[%s8700_s12 + $0x10] sm:$0xff] }
 0xf23   :  { %v5641_v8 = vmul.f32 -1.442695, %v5018_v55  ;;  %v5019_v19 = vadd.f32 %v4972_v10, %v9215_v5  ;;  %v5021_v7 = vadd.f32 %v5013_v33, %v9216_v27  ;;  %v5178_v55 = vld [vmem:[%s8700_s12 + $0x88] sm:$0xff]  ;;  %v5177_v33 = vld [vmem:[%s8700_s12 + $0x80] sm:$0xff] }
 0xf24   :  { %v4974_v14 = vpop.f32.mrf.mxu0  ;;  %v5015_v46 = vpop.f32.mrf.mxu1  ;;  %v5162_v10 = vld [vmem:[%s8700_s12 + $0x8] sm:$0xff] }
 0xf25   :  { %6496 = vpow2.f32 %v5641_v8  ;;  %v5642_v13 = vmul.f32 -1.442695, %v5019_v19  ;;  %v5643_v63 = vmul.f32 -1.442695, %v5021_v7  ;;  %v5161_v8 = vld [vmem:[%s8700_s12] sm:$0xff] }
 0xf26   :  { %v4975_v24 = vpop.f32.mrf.mxu0  ;;  %v5016_v51 = vpop.f32.mrf.mxu1 }
 0xf27   :  { %6498 = vpow2.f32 %v5642_v13 }
 0xf28   :  { %6500 = vtanh.f32 %v5020_v31 }
 0xf29   :  { %6502 = vpow2.f32 %v5643_v63 }
 0xf32   :  { %v6497_v16 = vpop.eup %6496 }
 0xf33   :  { %v5025_v17 = vadd.f32 1.0, %v6497_v16 }
 0xf34   :  { %v6499_v62 = vpop.eup %6498 }
 0xf35   :  { %6504 = vrcp.f32 %v5025_v17  ;;  %v5031_v28 = vadd.f32 1.0, %v6499_v62  ;;  %v6501_v20 = vpop.eup %6500 }
 0xf36   :  { %v6503_v29 = vpop.eup %6502 }
 0xf37   :  { %6506 = vrcp.f32 %v5031_v28  ;;  %v5038_v36 = vadd.f32 1.0, %v6503_v29 }
 0xf39   :  { %6508 = vrcp.f32 %v5038_v36 }
 0xf42   :  { %v6505_v44 = vpop.eup %6504 }
 0xf43   :  { %v5042_v30 = vmul.f32 %v6505_v44, %v6501_v20 }
 0xf44   :  { %v6507_v21 = vpop.eup %6506 }
 0xf45   :  { %v5041_v3 = vmul.f32 %v6507_v21, %v8567_v35  ;;  %v5176_v35 = vld [vmem:[%s8700_s12 + $0x78] sm:$0xff] }
 0xf46   :  { %v6509_v57 = vpop.eup %6508 }
 0xf47   :  { %v8577_v40 = vadd.f32 %v5042_v30, %v5041_v3 }
 0xf49   :  { %6510 = vtanh.f32 %v8577_v40 }
 0xf56   :  { %v6511_v34 = vpop.eup %6510 }
 0xf57   :  { %v5045_v22 = vmul.f32 %v6511_v34, %v6509_v57 }
 0xf59   :  { %v5050_v12 = vpack.c.bf16 %v5045_v22, %v5045_v22 }
 0xf5b   :  { %5084 = vmatmul.mubr.bf16.vlgmr.msra.gmra.mxu0 %v5050_v12  ;;  %5125 = vmatmul.mubr.bf16.vlgmr.msra.gmra.mxu1 %v5050_v12 }
 0xf5c   :  { %5264 = vmatprep.mubr.f32.mxu0 %v8394_v9  ;;  %5649 = vmatpush3.msra.mxu0 %v5176_v35  ;;  %v5190_v9 = vld [vmem:[%s8700_s12 + $0xe8] sm:$0xff] }
 0xf5d   :  { %5650 = vmatprep.subr.mxu0 %v5191_v59 }
 0xf5e   :  { %5651 = vmatpush3.msra.mxu0 %v5175_v25 }
 0xf5f   :  { %5652 = vmatprep.subr.mxu0 %v5190_v9 }
 0xf60   :  { %5653 = vmatpush3.msra.mxu0 %v5174_v56 }
 0xf61   :  { %5654 = vmatprep.subr.mxu0 %v5189_v1 }
 0xf62   :  { %5655 = vmatpush3.msra.mxu0 %v5173_v26 }
 0xf63   :  { %5656 = vmatprep.subr.mxu0 %v5188_v61 }
 0xf64   :  { %5657 = vmatpush3.msra.mxu0 %v5172_v58 }
 0xf65   :  { %5658 = vmatprep.subr.mxu0 %v5187_v60 }
 0xf66   :  { %5659 = vmatpush3.msra.mxu0 %v5171_v47 }
 0xf67   :  { %5660 = vmatprep.subr.mxu0 %v5186_v23 }
 0xf68   :  { %5661 = vmatpush3.msra.mxu0 %v5170_v54 }
 0xf69   :  { %5662 = vmatprep.subr.mxu0 %v5185_v18 }
 0xf6a   :  { %5663 = vmatpush3.msra.mxu0 %v5169_v39 }
 0xf6b   :  { %5664 = vmatprep.subr.mxu0 %v5184_v4 }
 0xf6c   :  { %5665 = vmatpush3.msra.mxu0 %v5168_v6 }
 0xf6d   :  { %5666 = vmatprep.subr.mxu0 %v5183_v0 }
 0xf6e   :  { %5667 = vmatpush3.msra.mxu0 %v5167_v53 }
 0xf6f   :  { %5668 = vmatprep.subr.mxu0 %v5182_v52 }
 0xf70   :  { %5669 = vmatpush3.msra.mxu0 %v5166_v41 }
 0xf71   :  { %5670 = vmatprep.subr.mxu0 %v5181_v37 }
 0xf72   :  { %5671 = vmatpush3.msra.mxu0 %v5165_v42 }
 0xf73   :  { %5672 = vmatprep.subr.mxu0 %v5180_v32 }
 0xf74   :  { %5673 = vmatpush3.msra.mxu0 %v5164_v38 }
 0xf75   :  { %5674 = vmatprep.subr.mxu0 %v5179_v43 }
 0xf76   :  { %5675 = vmatpush3.msra.mxu0 %v5163_v45 }
 0xf77   :  { %5676 = vmatprep.subr.mxu0 %v5178_v55 }
 0xf78   :  { %5677 = vmatpush3.msra.mxu0 %v5162_v10 }
 0xf79   :  { %5678 = vmatprep.subr.mxu0 %v5177_v33 }
 0xf7a   :  { %5679 = vmatpush3.msra.mxu0 %v5161_v8 }
0x101b   :  { %v5085_v5 = vpop.f32.mrf.mxu0  ;;  %v5126_v19 = vpop.f32.mrf.mxu1 }
0x101c   :  { %v5133_v14 = vadd.f32 %v5085_v5, %v8339_v2  ;;  %v5135_v17 = vadd.f32 %v5126_v19, %v8342_v11 }
0x101d   :  { %v5087_v46 = vpop.f32.mrf.mxu0  ;;  %v5128_v13 = vpop.f32.mrf.mxu1 }
0x101e   :  { %v5644_v24 = vmul.f32 -1.442695, %v5133_v14  ;;  %v5134_v51 = vadd.f32 %v5087_v46, %v8345_v48  ;;  %v5136_v16 = vadd.f32 %v5128_v13, %v8348_v15 }
0x101f   :  { %v5089_v27 = vpop.f32.mrf.mxu0  ;;  %v5130_v7 = vpop.f32.mrf.mxu1 }
0x1020   :  { %6512 = vpow2.f32 %v5644_v24  ;;  %v5645_v49 = vmul.f32 -1.442695, %v5134_v51  ;;  %v5646_v62 = vmul.f32 -1.442695, %v5136_v16 }
0x1021   :  { %v5090_v31 = vpop.f32.mrf.mxu0  ;;  %v5131_v63 = vpop.f32.mrf.mxu1 }
0x1022   :  { %6514 = vpow2.f32 %v5645_v49 }
0x1023   :  { %6516 = vtanh.f32 %v5135_v17 }
0x1024   :  { %6518 = vpow2.f32 %v5646_v62 }
0x102d   :  { %v6513_v28 = vpop.eup %6512 }
0x102e   :  { %v5140_v20 = vadd.f32 1.0, %v6513_v28 }
0x102f   :  { %v6515_v2 = vpop.eup %6514 }
0x1030   :  { %6520 = vrcp.f32 %v5140_v20  ;;  %v5146_v29 = vadd.f32 1.0, %v6515_v2  ;;  %v6517_v48 = vpop.eup %6516 }
0x1031   :  { %v6519_v44 = vpop.eup %6518 }
0x1032   :  { %6522 = vrcp.f32 %v5146_v29  ;;  %v5153_v3 = vadd.f32 1.0, %v6519_v44 }
0x1034   :  { %6524 = vrcp.f32 %v5153_v3 }
0x103d   :  { %v6521_v30 = vpop.eup %6520 }
0x103e   :  { %v5157_v21 = vmul.f32 %v6521_v30, %v6517_v48 }
0x103f   :  { %v6523_v36 = vpop.eup %6522 }
0x1040   :  { %v5156_v57 = vmul.f32 %v6523_v36, %v8577_v40 }
0x1041   :  { %v6525_v11 = vpop.eup %6524 }
0x1042   :  { %v5158_v15 = vadd.f32 %v5157_v21, %v5156_v57 }
0x1044   :  { %6526 = vtanh.f32 %v5158_v15 }
0x1051   :  { %v6527_v34 = vpop.eup %6526 }
0x1052   :  { %v5160_v22 = vmul.f32 %v6527_v34, %v6525_v11 }
0x1054   :  { %5265 = vmatmul.mubr.f32.vlgmr.msra.gmra.mxu0 %v5160_v22 }
0x1114   :  { %v5680_v12 = vpop.f32.mrf.mxu0 }
0x1116   :  { %v5681_v35 = vpop.f32.mrf.mxu0 }
0x1117   :  { %v5682_v59 = vadd.f32 %v5681_v35, %v5680_v12 }
0x1119   :  { %v5267_v25 = vadd.f32 %v5682_v59, %v5647_v50 }
0x111b   :  { %5271 = vst.msk [vmem:[%s8702_s14] sm:$0xff] %vm5270_vm0, %v5267_v25 }
0x111c   :  { %5276 = vsyncpa [#allocation7], 1 }
0x111d   :  { %5277 = vsyncpa [#allocation9], 1 }
0x111e   :  { %5278 = vsyncpa [#allocation12], 1 }
0x111f   :  { %5279 = vsyncpa [#allocation15], 1 }

</bundles_post_ra>
